<compile_context>
chip_gen: v6e
topology: v6e:2x2x1
jax: 0.10.0
libtpu: 0.0.40
codegen_flags: <defaults>
</compile_context>

<pallas_src>
import jax
import jax.numpy as jnp
from jax import lax
from jax.experimental import pallas as pl
from jax.experimental.pallas import tpu as pltpu


# ----------------------------------------------------------------------------
# helpers
# ----------------------------------------------------------------------------
def _full_spec(shape):
    """BlockSpec covering the whole array, trivial grid=(1,)."""
    return pl.BlockSpec(shape, lambda i: tuple(0 for _ in shape))


_COMPILER_PARAMS = pltpu.CompilerParams(dimension_semantics=("arbitrary",))


# ----------------------------------------------------------------------------
# fused forward kernel
# ----------------------------------------------------------------------------
def _make_fused_kernel(L, B, H, n_lstm_layers, n_static, n_fusion, n_task):
    def kernel(*refs):
        out_ref = refs[-1]
        it = iter(refs[:-1])
        x_ref = next(it)                                    # (L, B, D) time-major
        lstm = [(next(it), next(it)) for _ in range(n_lstm_layers)]   # (Wcat, b)
        xst_ref = next(it)                                  # (B, D_st)
        static_p = [(next(it), next(it)) for _ in range(n_static)]
        fusion_p = [(next(it), next(it)) for _ in range(n_fusion)]
        task_p = [(next(it), next(it)) for _ in range(n_task)]

        f32 = jnp.float32

        def leaky(v):                                        # LeakyReLU(0.05)
            return jnp.where(v > 0, v, 0.05 * v)

        def mlp(h, params):
            for i, (w_ref, b_ref) in enumerate(params):
                h = jnp.dot(h, w_ref[...], preferred_element_type=f32) + b_ref[...]
                if i < len(params) - 1:
                    h = leaky(h)
            return h

        # ---- static-feature MLP (independent of the LSTM; scheduler interleaves)
        mlp_out = mlp(xst_ref[...], static_p)                # (B, H)

        # ---- 3-layer LSTM, single fully-unrolled time loop
        Ws = [w_ref[...] for (w_ref, _) in lstm]             # [(in+H, 4H)]
        bs = [jnp.broadcast_to(b_ref[...], (B, 4 * H))       # hoisted bias bcast
              for (_, b_ref) in lstm]
        h = [jnp.zeros((B, H), f32) for _ in range(n_lstm_layers)]
        c = [jnp.zeros((B, H), f32) for _ in range(n_lstm_layers)]

        def cell(inp, h_prev, c_prev, W, b_bc):
            # one MXU push per layer-step: [inp | h_prev] @ [[W_ih],[W_hh]]
            gates = jnp.dot(jnp.concatenate([inp, h_prev], axis=1), W,
                            preferred_element_type=f32) + b_bc        # (B, 4H)
            sig = jax.nn.sigmoid(gates)          # full-width EUP call
            tg = jnp.tanh(gates)                 # full-width EUP call
            i_g = sig[:, 0:H]
            f_g = sig[:, H:2 * H]
            o_g = sig[:, 3 * H:4 * H]
            g_g = tg[:, 2 * H:3 * H]
            c_new = f_g * c_prev + i_g * g_g
            h_new = o_g * jnp.tanh(c_new)
            return h_new, c_new

        for t in range(L):                       # L is small & static: full unroll
            inp = x_ref[t]                       # (B, D)
            for l in range(n_lstm_layers):
                h[l], c[l] = cell(inp, h[l], c[l], Ws[l], bs[l])
                inp = h[l]

        lstm_last = h[-1]                        # == lstm_out[:, -1]   (B, H)

        # ---- fusion MLP on concat([lstm_last, mlp_out]) (concat stays in VMEM)
        fusion_in = jnp.concatenate([lstm_last, mlp_out], axis=1)      # (B, 2H)
        fit = mlp(fusion_in, fusion_p)                                  # (B, H)

        # ---- merged (block-diagonal) multitask heads, lane-dense output slab
        out_ref[...] = mlp(fit, task_p)                                 # (B, out_pad)

    return kernel


# ----------------------------------------------------------------------------
# task-head merging: T small heads -> one block-diagonal MLP with a 128-wide,
# zero-padded, lane-dense output
# ----------------------------------------------------------------------------
def _merge_task_heads(task_mlps, task_dims, hid_dim, out_pad):
    n_tasks = len(task_mlps)
    n_lin = len(task_mlps[0])
    merged = []

    # first linear: concat along output dim -> (H, T*H)
    w0 = jnp.concatenate([p[0][0] for p in task_mlps], axis=1)
    b0 = jnp.concatenate([p[0][1] for p in task_mlps], axis=1)
    merged.append((w0, b0))

    # hidden linears: block-diagonal (T*H, T*H)
    for li in range(1, n_lin - 1):
        w = jnp.zeros((n_tasks * hid_dim, n_tasks * hid_dim), jnp.float32)
        for ti in range(n_tasks):
            w = w.at[ti * hid_dim:(ti + 1) * hid_dim,
                     ti * hid_dim:(ti + 1) * hid_dim].set(task_mlps[ti][li][0])
        b = jnp.concatenate([p[li][1] for p in task_mlps], axis=1)
        merged.append((w, b))

    # final linear: (T*H, out_pad), zero-padded so the kernel store is lane-dense
    w_last = jnp.zeros((n_tasks * hid_dim, out_pad), jnp.float32)
    b_last = jnp.zeros((1, out_pad), jnp.float32)
    slices = []
    off = 0
    for ti, od in enumerate(task_dims):
        w_last = w_last.at[ti * hid_dim:(ti + 1) * hid_dim,
                           off:off + od].set(task_mlps[ti][-1][0])
        b_last = b_last.at[:, off:off + od].set(task_mlps[ti][-1][1])
        slices.append((off, off + od))
        off += od
    merged.append((w_last, b_last))
    return merged, slices


# ----------------------------------------------------------------------------
# MultitaskLSTM forward (ref='zero') — one fused pallas_call
# ----------------------------------------------------------------------------
def multitask_lstm_forward(x_dy, x_st, mask_dy, mask_st,
                           lstm_params, static_mlp, fusion_mlp, task_mlps,
                           task_dims):
    B, L, n_dy, d_dy = x_dy.shape
    _, n_st, d_st = x_st.shape
    H = lstm_params[0][1].shape[0]
    n_layers = len(lstm_params)

    # causal_masking with ref='zero' (2-D mask case): pure elementwise mask.
    x_dy_flat = (x_dy * mask_dy[:, None, :, None]).reshape(B, L, n_dy * d_dy)
    x_st_flat = (x_st * mask_st[:, :, None]).reshape(B, n_st * d_st)
    x_tm = jnp.transpose(x_dy_flat, (1, 0, 2))               # (L, B, D) time-major

    # fuse [W_ih; W_hh] per LSTM layer -> one matmul per layer per step
    lstm_cat = [(jnp.concatenate([wih, whh], axis=0), b)
                for (wih, whh, b) in lstm_params]

    # merge all task heads; pad output columns to a 128-lane-dense slab
    out_total = sum(task_dims)
    out_pad = ((out_total + 127) // 128) * 128
    merged_task, out_slices = _merge_task_heads(task_mlps, task_dims, H, out_pad)

    args = [x_tm]
    in_specs = [_full_spec(x_tm.shape)]
    for (w, b) in lstm_cat:
        args += [w, b]
        in_specs += [_full_spec(w.shape), _full_spec(b.shape)]
    args.append(x_st_flat)
    in_specs.append(_full_spec(x_st_flat.shape))
    for params in (static_mlp, fusion_mlp, merged_task):
        for (w, b) in params:
            args += [w, b]
            in_specs += [_full_spec(w.shape), _full_spec(b.shape)]

    kernel = _make_fused_kernel(L, B, H, n_layers,
                                len(static_mlp), len(fusion_mlp), len(merged_task))

    # TODO(synk): on v7x a second 'parallel' grid axis could run the static MLP
    # on the other TensorCore; kept single-core for portability (v5e/v6e = 1 TC).
    out = pl.pallas_call(
        kernel,
        out_shape=jax.ShapeDtypeStruct((B, out_pad), jnp.float32),
        grid=(1,),
        in_specs=in_specs,
        out_specs=_full_spec((B, out_pad)),
        compiler_params=_COMPILER_PARAMS,
    )(*args)

    return [out[:, s:e] for (s, e) in out_slices]


# ----------------------------------------------------------------------------
# Parameter construction (deterministic, synthetic init)
# ----------------------------------------------------------------------------
def _uniform(key, shape, scale):
    return jax.random.uniform(key, shape, jnp.float32, -scale, scale)


def make_lstm_params(key, in_dim, hid_dim, num_layers=3):
    params = []
    scale = 1.0 / jnp.sqrt(hid_dim)
    for layer in range(num_layers):
        d_in = in_dim if layer == 0 else hid_dim
        key, k1, k2, k3 = jax.random.split(key, 4)
        wih = _uniform(k1, (d_in, 4 * hid_dim), scale)       # (in, 4H)
        whh = _uniform(k2, (hid_dim, 4 * hid_dim), scale)    # (H, 4H)
        b = _uniform(k3, (1, 4 * hid_dim), scale)            # b_ih + b_hh merged
        params.append((wih, whh, b))
    return params


def make_mlp_params(key, in_dim, n_hid, out_dim, n_layer):
    dims = [(in_dim, n_hid)] + [(n_hid, n_hid)] * (n_layer - 1) + [(n_hid, out_dim)]
    params = []
    for (d_in, d_out) in dims:
        key, kw, kb = jax.random.split(key, 3)
        bound = jnp.sqrt(6.0 / (d_in + d_out))                # xavier_uniform
        w = _uniform(kw, (d_in, d_out), bound)
        b = _uniform(kb, (1, d_out), 1.0 / jnp.sqrt(d_in))
        params.append((w, b))
    return params


# ----------------------------------------------------------------------------
# Pure-JAX reference for verification
# ----------------------------------------------------------------------------
def _lstm_ref(x_bld, lstm_params):
    h_seq = x_bld
    B = x_bld.shape[0]
    for (wih, whh, b) in lstm_params:
        H = whh.shape[0]

        def step(carry, xt):
            h, c = carry
            gates = xt @ wih + h @ whh + b
            i = jax.nn.sigmoid(gates[:, :H])
            f = jax.nn.sigmoid(gates[:, H:2 * H])
            g = jnp.tanh(gates[:, 2 * H:3 * H])
            o = jax.nn.sigmoid(gates[:, 3 * H:])
            c = f * c + i * g
            h = o * jnp.tanh(c)
            return (h, c), h

        init = (jnp.zeros((B, H), jnp.float32), jnp.zeros((B, H), jnp.float32))
        _, hs = lax.scan(step, init, jnp.swapaxes(h_seq, 0, 1))
        h_seq = jnp.swapaxes(hs, 0, 1)
    return h_seq[:, -1]


def _mlp_ref(x, params):
    h = x
    for i, (w, b) in enumerate(params):
        h = h @ w + b
        if i < len(params) - 1:
            h = jnp.where(h > 0, h, 0.05 * h)
    return h


def _forward_ref(x_dy, x_st, mask_dy, mask_st,
                 lstm_params, static_mlp, fusion_mlp, task_mlps):
    B, L, n_dy, d_dy = x_dy.shape
    _, n_st, d_st = x_st.shape
    x_dy_flat = (x_dy * mask_dy[:, None, :, None]).reshape(B, L, n_dy * d_dy)
    x_st_flat = (x_st * mask_st[:, :, None]).reshape(B, n_st * d_st)
    lstm_last = _lstm_ref(x_dy_flat, lstm_params)
    mlp_out = _mlp_ref(x_st_flat, static_mlp)
    fit = _mlp_ref(jnp.concatenate([lstm_last, mlp_out], axis=1), fusion_mlp)
    return [_mlp_ref(fit, p) for p in task_mlps]


# ----------------------------------------------------------------------------
# main
# ----------------------------------------------------------------------------
if __name__ == "__main__":
    B, L = 2, 8
    n_dy, d_dy = 4, 2          # dynamic_dim = 8
    n_st, d_st = 4, 2          # static_dim  = 8
    hid_dim = 32
    task_dims = (3, 5)
    mlp_layers = 2
    dynamic_dim = n_dy * d_dy
    static_dim = n_st * d_st

    root = jax.random.PRNGKey(0)
    k_in, k_lstm, k_stat, k_fus, k_tasks, k_mask = jax.random.split(root, 6)

    # inputs
    k1, k2 = jax.random.split(k_in)
    x_dy = jax.random.normal(k1, (B, L, n_dy, d_dy), jnp.float32)
    x_st = jax.random.normal(k2, (B, n_st, d_st), jnp.float32)
    km1, km2 = jax.random.split(k_mask)
    mask_dy = jax.random.bernoulli(km1, 0.7, (B, n_dy)).astype(jnp.float32)
    mask_st = jax.random.bernoulli(km2, 0.7, (B, n_st)).astype(jnp.float32)

    # parameters (deterministic synthetic init)
    lstm_params = make_lstm_params(k_lstm, dynamic_dim, hid_dim, num_layers=3)
    static_mlp = make_mlp_params(k_stat, static_dim, hid_dim, hid_dim, mlp_layers)
    fusion_mlp = make_mlp_params(k_fus, hid_dim * 2, hid_dim, hid_dim, mlp_layers)
    task_mlps = []
    for td in task_dims:
        k_tasks, kt = jax.random.split(k_tasks)
        task_mlps.append(make_mlp_params(kt, hid_dim, hid_dim, td, mlp_layers))

    # run fused Pallas forward
    preds = multitask_lstm_forward(x_dy, x_st, mask_dy, mask_st,
                                   lstm_params, static_mlp, fusion_mlp,
                                   task_mlps, task_dims)
    preds = [jax.block_until_ready(p) for p in preds]

    # verify against pure-JAX reference
    refs = _forward_ref(x_dy, x_st, mask_dy, mask_st,
                        lstm_params, static_mlp, fusion_mlp, task_mlps)
    for p, r, td in zip(preds, refs, task_dims):
        assert p.shape == (B, td), f"bad shape {p.shape}"
        assert jnp.allclose(p, r, atol=1e-3, rtol=1e-3), "mismatch vs reference"

    # TODO(synk): dropout (eval mode / dropout=0) and the tensor-valued `ref`
    # branch of causal_masking are not exercised; only ref='zero' is implemented,
    # matching the module's default forward arguments.
    print("KERNEL_OK")
</pallas_src>

<mosaic_0001>
module attributes {stable_mosaic.version = 11 : i64} {
  func.func @kernel(%arg0: i32, %arg1: memref<8x2x8xf32, #tpu.memory_space<vmem>>, %arg2: memref<40x128xf32, #tpu.memory_space<vmem>>, %arg3: memref<1x128xf32, #tpu.memory_space<vmem>>, %arg4: memref<64x128xf32, #tpu.memory_space<vmem>>, %arg5: memref<1x128xf32, #tpu.memory_space<vmem>>, %arg6: memref<64x128xf32, #tpu.memory_space<vmem>>, %arg7: memref<1x128xf32, #tpu.memory_space<vmem>>, %arg8: memref<2x8xf32, #tpu.memory_space<vmem>>, %arg9: memref<8x32xf32, #tpu.memory_space<vmem>>, %arg10: memref<1x32xf32, #tpu.memory_space<vmem>>, %arg11: memref<32x32xf32, #tpu.memory_space<vmem>>, %arg12: memref<1x32xf32, #tpu.memory_space<vmem>>, %arg13: memref<32x32xf32, #tpu.memory_space<vmem>>, %arg14: memref<1x32xf32, #tpu.memory_space<vmem>>, %arg15: memref<64x32xf32, #tpu.memory_space<vmem>>, %arg16: memref<1x32xf32, #tpu.memory_space<vmem>>, %arg17: memref<32x32xf32, #tpu.memory_space<vmem>>, %arg18: memref<1x32xf32, #tpu.memory_space<vmem>>, %arg19: memref<32x32xf32, #tpu.memory_space<vmem>>, %arg20: memref<1x32xf32, #tpu.memory_space<vmem>>, %arg21: memref<32x64xf32, #tpu.memory_space<vmem>>, %arg22: memref<1x64xf32, #tpu.memory_space<vmem>>, %arg23: memref<64x64xf32, #tpu.memory_space<vmem>>, %arg24: memref<1x64xf32, #tpu.memory_space<vmem>>, %arg25: memref<64x128xf32, #tpu.memory_space<vmem>>, %arg26: memref<1x128xf32, #tpu.memory_space<vmem>>, %arg27: memref<2x128xf32, #tpu.memory_space<vmem>>) attributes {dimension_semantics = [#tpu.dimension_semantics<arbitrary>], iteration_bounds = array<i64: 1>, scalar_prefetch = 0 : i64, scratch_operands = 0 : i64, tpu.core_type = #tpu.core_type<tc>, window_params = [{pipeline_mode = #tpu.pipeline_mode<synchronous>, transform_indices = @transform_0, window_bounds = array<i64: 8, 2, 8>}, {pipeline_mode = #tpu.pipeline_mode<synchronous>, transform_indices = @transform_1, window_bounds = array<i64: 40, 128>}, {pipeline_mode = #tpu.pipeline_mode<synchronous>, transform_indices = @transform_2, window_bounds = array<i64: 1, 128>}, {pipeline_mode = #tpu.pipeline_mode<synchronous>, transform_indices = @transform_3, window_bounds = array<i64: 64, 128>}, {pipeline_mode = #tpu.pipeline_mode<synchronous>, transform_indices = @transform_4, window_bounds = array<i64: 1, 128>}, {pipeline_mode = #tpu.pipeline_mode<synchronous>, transform_indices = @transform_5, window_bounds = array<i64: 64, 128>}, {pipeline_mode = #tpu.pipeline_mode<synchronous>, transform_indices = @transform_6, window_bounds = array<i64: 1, 128>}, {pipeline_mode = #tpu.pipeline_mode<synchronous>, transform_indices = @transform_7, window_bounds = array<i64: 2, 8>}, {pipeline_mode = #tpu.pipeline_mode<synchronous>, transform_indices = @transform_8, window_bounds = array<i64: 8, 32>}, {pipeline_mode = #tpu.pipeline_mode<synchronous>, transform_indices = @transform_9, window_bounds = array<i64: 1, 32>}, {pipeline_mode = #tpu.pipeline_mode<synchronous>, transform_indices = @transform_10, window_bounds = array<i64: 32, 32>}, {pipeline_mode = #tpu.pipeline_mode<synchronous>, transform_indices = @transform_11, window_bounds = array<i64: 1, 32>}, {pipeline_mode = #tpu.pipeline_mode<synchronous>, transform_indices = @transform_12, window_bounds = array<i64: 32, 32>}, {pipeline_mode = #tpu.pipeline_mode<synchronous>, transform_indices = @transform_13, window_bounds = array<i64: 1, 32>}, {pipeline_mode = #tpu.pipeline_mode<synchronous>, transform_indices = @transform_14, window_bounds = array<i64: 64, 32>}, {pipeline_mode = #tpu.pipeline_mode<synchronous>, transform_indices = @transform_15, window_bounds = array<i64: 1, 32>}, {pipeline_mode = #tpu.pipeline_mode<synchronous>, transform_indices = @transform_16, window_bounds = array<i64: 32, 32>}, {pipeline_mode = #tpu.pipeline_mode<synchronous>, transform_indices = @transform_17, window_bounds = array<i64: 1, 32>}, {pipeline_mode = #tpu.pipeline_mode<synchronous>, transform_indices = @transform_18, window_bounds = array<i64: 32, 32>}, {pipeline_mode = #tpu.pipeline_mode<synchronous>, transform_indices = @transform_19, window_bounds = array<i64: 1, 32>}, {pipeline_mode = #tpu.pipeline_mode<synchronous>, transform_indices = @transform_20, window_bounds = array<i64: 32, 64>}, {pipeline_mode = #tpu.pipeline_mode<synchronous>, transform_indices = @transform_21, window_bounds = array<i64: 1, 64>}, {pipeline_mode = #tpu.pipeline_mode<synchronous>, transform_indices = @transform_22, window_bounds = array<i64: 64, 64>}, {pipeline_mode = #tpu.pipeline_mode<synchronous>, transform_indices = @transform_23, window_bounds = array<i64: 1, 64>}, {pipeline_mode = #tpu.pipeline_mode<synchronous>, transform_indices = @transform_24, window_bounds = array<i64: 64, 128>}, {pipeline_mode = #tpu.pipeline_mode<synchronous>, transform_indices = @transform_25, window_bounds = array<i64: 1, 128>}, {pipeline_mode = #tpu.pipeline_mode<synchronous>, transform_indices = @transform_26, window_bounds = array<i64: 2, 128>}]} {
    %c0 = arith.constant 0 : index
    %c0_0 = arith.constant 0 : index
    %0 = vector.load %arg8[%c0, %c0_0] : memref<2x8xf32, #tpu.memory_space<vmem>>, vector<2x8xf32>
    %c0_1 = arith.constant 0 : index
    %c0_2 = arith.constant 0 : index
    %1 = vector.load %arg9[%c0_1, %c0_2] : memref<8x32xf32, #tpu.memory_space<vmem>>, vector<8x32xf32>
    %cst = arith.constant dense<0.000000e+00> : vector<2x32xf32>
    %2 = tpu.matmul %0, %1, %cst {dimension_numbers = #tpu.dot_dimension_numbers<[1], [0], [0], [1], [0, 0, 1, 1], [], []>} : vector<2x8xf32>, vector<8x32xf32>, vector<2x32xf32> -> vector<2x32xf32>
    %c0_3 = arith.constant 0 : index
    %c0_4 = arith.constant 0 : index
    %3 = vector.load %arg10[%c0_3, %c0_4] : memref<1x32xf32, #tpu.memory_space<vmem>>, vector<1x32xf32>
    %4 = vector.broadcast %3 : vector<1x32xf32> to vector<2x32xf32>
    %5 = arith.addf %2, %4 : vector<2x32xf32>
    %cst_5 = arith.constant 0.000000e+00 : f32
    %6 = vector.broadcast %cst_5 : f32 to vector<2x32xf32>
    %7 = arith.cmpf ogt, %5, %6 : vector<2x32xf32>
    %cst_6 = arith.constant 5.000000e-02 : f32
    %8 = vector.broadcast %cst_6 : f32 to vector<2x32xf32>
    %9 = arith.mulf %8, %5 : vector<2x32xf32>
    %10 = arith.select %7, %5, %9 : vector<2x32xi1>, vector<2x32xf32>
    %c0_7 = arith.constant 0 : index
    %c0_8 = arith.constant 0 : index
    %11 = vector.load %arg11[%c0_7, %c0_8] : memref<32x32xf32, #tpu.memory_space<vmem>>, vector<32x32xf32>
    %cst_9 = arith.constant dense<0.000000e+00> : vector<2x32xf32>
    %12 = tpu.matmul %10, %11, %cst_9 {dimension_numbers = #tpu.dot_dimension_numbers<[1], [0], [0], [1], [0, 0, 1, 1], [], []>} : vector<2x32xf32>, vector<32x32xf32>, vector<2x32xf32> -> vector<2x32xf32>
    %c0_10 = arith.constant 0 : index
    %c0_11 = arith.constant 0 : index
    %13 = vector.load %arg12[%c0_10, %c0_11] : memref<1x32xf32, #tpu.memory_space<vmem>>, vector<1x32xf32>
    %14 = vector.broadcast %13 : vector<1x32xf32> to vector<2x32xf32>
    %15 = arith.addf %12, %14 : vector<2x32xf32>
    %cst_12 = arith.constant 0.000000e+00 : f32
    %16 = vector.broadcast %cst_12 : f32 to vector<2x32xf32>
    %17 = arith.cmpf ogt, %15, %16 : vector<2x32xf32>
    %cst_13 = arith.constant 5.000000e-02 : f32
    %18 = vector.broadcast %cst_13 : f32 to vector<2x32xf32>
    %19 = arith.mulf %18, %15 : vector<2x32xf32>
    %20 = arith.select %17, %15, %19 : vector<2x32xi1>, vector<2x32xf32>
    %c0_14 = arith.constant 0 : index
    %c0_15 = arith.constant 0 : index
    %21 = vector.load %arg13[%c0_14, %c0_15] : memref<32x32xf32, #tpu.memory_space<vmem>>, vector<32x32xf32>
    %cst_16 = arith.constant dense<0.000000e+00> : vector<2x32xf32>
    %22 = tpu.matmul %20, %21, %cst_16 {dimension_numbers = #tpu.dot_dimension_numbers<[1], [0], [0], [1], [0, 0, 1, 1], [], []>} : vector<2x32xf32>, vector<32x32xf32>, vector<2x32xf32> -> vector<2x32xf32>
    %c0_17 = arith.constant 0 : index
    %c0_18 = arith.constant 0 : index
    %23 = vector.load %arg14[%c0_17, %c0_18] : memref<1x32xf32, #tpu.memory_space<vmem>>, vector<1x32xf32>
    %24 = vector.broadcast %23 : vector<1x32xf32> to vector<2x32xf32>
    %25 = arith.addf %22, %24 : vector<2x32xf32>
    %c0_19 = arith.constant 0 : index
    %c0_20 = arith.constant 0 : index
    %26 = vector.load %arg2[%c0_19, %c0_20] : memref<40x128xf32, #tpu.memory_space<vmem>>, vector<40x128xf32>
    %c0_21 = arith.constant 0 : index
    %c0_22 = arith.constant 0 : index
    %27 = vector.load %arg4[%c0_21, %c0_22] : memref<64x128xf32, #tpu.memory_space<vmem>>, vector<64x128xf32>
    %c0_23 = arith.constant 0 : index
    %c0_24 = arith.constant 0 : index
    %28 = vector.load %arg6[%c0_23, %c0_24] : memref<64x128xf32, #tpu.memory_space<vmem>>, vector<64x128xf32>
    %c0_25 = arith.constant 0 : index
    %c0_26 = arith.constant 0 : index
    %29 = vector.load %arg3[%c0_25, %c0_26] : memref<1x128xf32, #tpu.memory_space<vmem>>, vector<1x128xf32>
    %30 = vector.shape_cast %29 : vector<1x128xf32> to vector<1x128xf32>
    %31 = vector.broadcast %30 : vector<1x128xf32> to vector<2x128xf32>
    %c0_27 = arith.constant 0 : index
    %c0_28 = arith.constant 0 : index
    %32 = vector.load %arg5[%c0_27, %c0_28] : memref<1x128xf32, #tpu.memory_space<vmem>>, vector<1x128xf32>
    %33 = vector.shape_cast %32 : vector<1x128xf32> to vector<1x128xf32>
    %34 = vector.broadcast %33 : vector<1x128xf32> to vector<2x128xf32>
    %c0_29 = arith.constant 0 : index
    %c0_30 = arith.constant 0 : index
    %35 = vector.load %arg7[%c0_29, %c0_30] : memref<1x128xf32, #tpu.memory_space<vmem>>, vector<1x128xf32>
    %36 = vector.shape_cast %35 : vector<1x128xf32> to vector<1x128xf32>
    %37 = vector.broadcast %36 : vector<1x128xf32> to vector<2x128xf32>
    %cst_31 = arith.constant 0.000000e+00 : f32
    %38 = vector.broadcast %cst_31 : f32 to vector<2x32xf32>
    %cst_32 = arith.constant 0.000000e+00 : f32
    %39 = vector.broadcast %cst_32 : f32 to vector<2x32xf32>
    %cst_33 = arith.constant 0.000000e+00 : f32
    %40 = vector.broadcast %cst_33 : f32 to vector<2x32xf32>
    %cst_34 = arith.constant 0.000000e+00 : f32
    %41 = vector.broadcast %cst_34 : f32 to vector<2x32xf32>
    %cst_35 = arith.constant 0.000000e+00 : f32
    %42 = vector.broadcast %cst_35 : f32 to vector<2x32xf32>
    %cst_36 = arith.constant 0.000000e+00 : f32
    %43 = vector.broadcast %cst_36 : f32 to vector<2x32xf32>
    %c0_37 = arith.constant 0 : index
    %c0_38 = arith.constant 0 : index
    %c0_39 = arith.constant 0 : index
    %44 = vector.load %arg1[%c0_37, %c0_38, %c0_39] : memref<8x2x8xf32, #tpu.memory_space<vmem>>, vector<1x2x8xf32>
    %45 = vector.shape_cast %44 : vector<1x2x8xf32> to vector<2x8xf32>
    %46 = tpu.concatenate %45, %38 in 1 : vector<2x8xf32>, vector<2x32xf32> -> vector<2x40xf32>
    %cst_40 = arith.constant dense<0.000000e+00> : vector<2x128xf32>
    %47 = tpu.matmul %46, %26, %cst_40 {dimension_numbers = #tpu.dot_dimension_numbers<[1], [0], [0], [1], [0, 0, 1, 1], [], []>} : vector<2x40xf32>, vector<40x128xf32>, vector<2x128xf32> -> vector<2x128xf32>
    %48 = arith.addf %47, %31 : vector<2x128xf32>
    %49 = arith.negf %48 : vector<2x128xf32>
    %50 = math.exp %49 : vector<2x128xf32>
    %cst_41 = arith.constant 1.000000e+00 : f32
    %51 = vector.broadcast %cst_41 : f32 to vector<2x128xf32>
    %52 = arith.addf %51, %50 : vector<2x128xf32>
    %53 = arith.divf %51, %52 : vector<2x128xf32>
    %54 = math.tanh %48 : vector<2x128xf32>
    %55 = vector.extract_strided_slice %53 {offsets = [0, 0], sizes = [2, 32], strides = [1, 1]} : vector<2x128xf32> to vector<2x32xf32>
    %56 = vector.extract_strided_slice %53 {offsets = [0, 32], sizes = [2, 32], strides = [1, 1]} : vector<2x128xf32> to vector<2x32xf32>
    %57 = vector.extract_strided_slice %53 {offsets = [0, 96], sizes = [2, 32], strides = [1, 1]} : vector<2x128xf32> to vector<2x32xf32>
    %58 = vector.extract_strided_slice %54 {offsets = [0, 64], sizes = [2, 32], strides = [1, 1]} : vector<2x128xf32> to vector<2x32xf32>
    %59 = arith.mulf %56, %41 : vector<2x32xf32>
    %60 = arith.mulf %55, %58 : vector<2x32xf32>
    %61 = arith.addf %59, %60 : vector<2x32xf32>
    %62 = math.tanh %61 : vector<2x32xf32>
    %63 = arith.mulf %57, %62 : vector<2x32xf32>
    %64 = tpu.concatenate %63, %39 in 1 : vector<2x32xf32>, vector<2x32xf32> -> vector<2x64xf32>
    %cst_42 = arith.constant dense<0.000000e+00> : vector<2x128xf32>
    %65 = tpu.matmul %64, %27, %cst_42 {dimension_numbers = #tpu.dot_dimension_numbers<[1], [0], [0], [1], [0, 0, 1, 1], [], []>} : vector<2x64xf32>, vector<64x128xf32>, vector<2x128xf32> -> vector<2x128xf32>
    %66 = arith.addf %65, %34 : vector<2x128xf32>
    %67 = arith.negf %66 : vector<2x128xf32>
    %68 = math.exp %67 : vector<2x128xf32>
    %cst_43 = arith.constant 1.000000e+00 : f32
    %69 = vector.broadcast %cst_43 : f32 to vector<2x128xf32>
    %70 = arith.addf %69, %68 : vector<2x128xf32>
    %71 = arith.divf %69, %70 : vector<2x128xf32>
    %72 = math.tanh %66 : vector<2x128xf32>
    %73 = vector.extract_strided_slice %71 {offsets = [0, 0], sizes = [2, 32], strides = [1, 1]} : vector<2x128xf32> to vector<2x32xf32>
    %74 = vector.extract_strided_slice %71 {offsets = [0, 32], sizes = [2, 32], strides = [1, 1]} : vector<2x128xf32> to vector<2x32xf32>
    %75 = vector.extract_strided_slice %71 {offsets = [0, 96], sizes = [2, 32], strides = [1, 1]} : vector<2x128xf32> to vector<2x32xf32>
    %76 = vector.extract_strided_slice %72 {offsets = [0, 64], sizes = [2, 32], strides = [1, 1]} : vector<2x128xf32> to vector<2x32xf32>
    %77 = arith.mulf %74, %42 : vector<2x32xf32>
    %78 = arith.mulf %73, %76 : vector<2x32xf32>
    %79 = arith.addf %77, %78 : vector<2x32xf32>
    %80 = math.tanh %79 : vector<2x32xf32>
    %81 = arith.mulf %75, %80 : vector<2x32xf32>
    %82 = tpu.concatenate %81, %40 in 1 : vector<2x32xf32>, vector<2x32xf32> -> vector<2x64xf32>
    %cst_44 = arith.constant dense<0.000000e+00> : vector<2x128xf32>
    %83 = tpu.matmul %82, %28, %cst_44 {dimension_numbers = #tpu.dot_dimension_numbers<[1], [0], [0], [1], [0, 0, 1, 1], [], []>} : vector<2x64xf32>, vector<64x128xf32>, vector<2x128xf32> -> vector<2x128xf32>
    %84 = arith.addf %83, %37 : vector<2x128xf32>
    %85 = arith.negf %84 : vector<2x128xf32>
    %86 = math.exp %85 : vector<2x128xf32>
    %cst_45 = arith.constant 1.000000e+00 : f32
    %87 = vector.broadcast %cst_45 : f32 to vector<2x128xf32>
    %88 = arith.addf %87, %86 : vector<2x128xf32>
    %89 = arith.divf %87, %88 : vector<2x128xf32>
    %90 = math.tanh %84 : vector<2x128xf32>
    %91 = vector.extract_strided_slice %89 {offsets = [0, 0], sizes = [2, 32], strides = [1, 1]} : vector<2x128xf32> to vector<2x32xf32>
    %92 = vector.extract_strided_slice %89 {offsets = [0, 32], sizes = [2, 32], strides = [1, 1]} : vector<2x128xf32> to vector<2x32xf32>
    %93 = vector.extract_strided_slice %89 {offsets = [0, 96], sizes = [2, 32], strides = [1, 1]} : vector<2x128xf32> to vector<2x32xf32>
    %94 = vector.extract_strided_slice %90 {offsets = [0, 64], sizes = [2, 32], strides = [1, 1]} : vector<2x128xf32> to vector<2x32xf32>
    %95 = arith.mulf %92, %43 : vector<2x32xf32>
    %96 = arith.mulf %91, %94 : vector<2x32xf32>
    %97 = arith.addf %95, %96 : vector<2x32xf32>
    %98 = math.tanh %97 : vector<2x32xf32>
    %99 = arith.mulf %93, %98 : vector<2x32xf32>
    %c1 = arith.constant 1 : index
    %c0_46 = arith.constant 0 : index
    %c0_47 = arith.constant 0 : index
    %100 = vector.load %arg1[%c1, %c0_46, %c0_47] : memref<8x2x8xf32, #tpu.memory_space<vmem>>, vector<1x2x8xf32>
    %101 = vector.shape_cast %100 : vector<1x2x8xf32> to vector<2x8xf32>
    %102 = tpu.concatenate %101, %63 in 1 : vector<2x8xf32>, vector<2x32xf32> -> vector<2x40xf32>
    %cst_48 = arith.constant dense<0.000000e+00> : vector<2x128xf32>
    %103 = tpu.matmul %102, %26, %cst_48 {dimension_numbers = #tpu.dot_dimension_numbers<[1], [0], [0], [1], [0, 0, 1, 1], [], []>} : vector<2x40xf32>, vector<40x128xf32>, vector<2x128xf32> -> vector<2x128xf32>
    %104 = arith.addf %103, %31 : vector<2x128xf32>
    %105 = arith.negf %104 : vector<2x128xf32>
    %106 = math.exp %105 : vector<2x128xf32>
    %cst_49 = arith.constant 1.000000e+00 : f32
    %107 = vector.broadcast %cst_49 : f32 to vector<2x128xf32>
    %108 = arith.addf %107, %106 : vector<2x128xf32>
    %109 = arith.divf %107, %108 : vector<2x128xf32>
    %110 = math.tanh %104 : vector<2x128xf32>
    %111 = vector.extract_strided_slice %109 {offsets = [0, 0], sizes = [2, 32], strides = [1, 1]} : vector<2x128xf32> to vector<2x32xf32>
    %112 = vector.extract_strided_slice %109 {offsets = [0, 32], sizes = [2, 32], strides = [1, 1]} : vector<2x128xf32> to vector<2x32xf32>
    %113 = vector.extract_strided_slice %109 {offsets = [0, 96], sizes = [2, 32], strides = [1, 1]} : vector<2x128xf32> to vector<2x32xf32>
    %114 = vector.extract_strided_slice %110 {offsets = [0, 64], sizes = [2, 32], strides = [1, 1]} : vector<2x128xf32> to vector<2x32xf32>
    %115 = arith.mulf %112, %61 : vector<2x32xf32>
    %116 = arith.mulf %111, %114 : vector<2x32xf32>
    %117 = arith.addf %115, %116 : vector<2x32xf32>
    %118 = math.tanh %117 : vector<2x32xf32>
    %119 = arith.mulf %113, %118 : vector<2x32xf32>
    %120 = tpu.concatenate %119, %81 in 1 : vector<2x32xf32>, vector<2x32xf32> -> vector<2x64xf32>
    %cst_50 = arith.constant dense<0.000000e+00> : vector<2x128xf32>
    %121 = tpu.matmul %120, %27, %cst_50 {dimension_numbers = #tpu.dot_dimension_numbers<[1], [0], [0], [1], [0, 0, 1, 1], [], []>} : vector<2x64xf32>, vector<64x128xf32>, vector<2x128xf32> -> vector<2x128xf32>
    %122 = arith.addf %121, %34 : vector<2x128xf32>
    %123 = arith.negf %122 : vector<2x128xf32>
    %124 = math.exp %123 : vector<2x128xf32>
    %cst_51 = arith.constant 1.000000e+00 : f32
    %125 = vector.broadcast %cst_51 : f32 to vector<2x128xf32>
    %126 = arith.addf %125, %124 : vector<2x128xf32>
    %127 = arith.divf %125, %126 : vector<2x128xf32>
    %128 = math.tanh %122 : vector<2x128xf32>
    %129 = vector.extract_strided_slice %127 {offsets = [0, 0], sizes = [2, 32], strides = [1, 1]} : vector<2x128xf32> to vector<2x32xf32>
    %130 = vector.extract_strided_slice %127 {offsets = [0, 32], sizes = [2, 32], strides = [1, 1]} : vector<2x128xf32> to vector<2x32xf32>
    %131 = vector.extract_strided_slice %127 {offsets = [0, 96], sizes = [2, 32], strides = [1, 1]} : vector<2x128xf32> to vector<2x32xf32>
    %132 = vector.extract_strided_slice %128 {offsets = [0, 64], sizes = [2, 32], strides = [1, 1]} : vector<2x128xf32> to vector<2x32xf32>
    %133 = arith.mulf %130, %79 : vector<2x32xf32>
    %134 = arith.mulf %129, %132 : vector<2x32xf32>
    %135 = arith.addf %133, %134 : vector<2x32xf32>
    %136 = math.tanh %135 : vector<2x32xf32>
    %137 = arith.mulf %131, %136 : vector<2x32xf32>
    %138 = tpu.concatenate %137, %99 in 1 : vector<2x32xf32>, vector<2x32xf32> -> vector<2x64xf32>
    %cst_52 = arith.constant dense<0.000000e+00> : vector<2x128xf32>
    %139 = tpu.matmul %138, %28, %cst_52 {dimension_numbers = #tpu.dot_dimension_numbers<[1], [0], [0], [1], [0, 0, 1, 1], [], []>} : vector<2x64xf32>, vector<64x128xf32>, vector<2x128xf32> -> vector<2x128xf32>
    %140 = arith.addf %139, %37 : vector<2x128xf32>
    %141 = arith.negf %140 : vector<2x128xf32>
    %142 = math.exp %141 : vector<2x128xf32>
    %cst_53 = arith.constant 1.000000e+00 : f32
    %143 = vector.broadcast %cst_53 : f32 to vector<2x128xf32>
    %144 = arith.addf %143, %142 : vector<2x128xf32>
    %145 = arith.divf %143, %144 : vector<2x128xf32>
    %146 = math.tanh %140 : vector<2x128xf32>
    %147 = vector.extract_strided_slice %145 {offsets = [0, 0], sizes = [2, 32], strides = [1, 1]} : vector<2x128xf32> to vector<2x32xf32>
    %148 = vector.extract_strided_slice %145 {offsets = [0, 32], sizes = [2, 32], strides = [1, 1]} : vector<2x128xf32> to vector<2x32xf32>
    %149 = vector.extract_strided_slice %145 {offsets = [0, 96], sizes = [2, 32], strides = [1, 1]} : vector<2x128xf32> to vector<2x32xf32>
    %150 = vector.extract_strided_slice %146 {offsets = [0, 64], sizes = [2, 32], strides = [1, 1]} : vector<2x128xf32> to vector<2x32xf32>
    %151 = arith.mulf %148, %97 : vector<2x32xf32>
    %152 = arith.mulf %147, %150 : vector<2x32xf32>
    %153 = arith.addf %151, %152 : vector<2x32xf32>
    %154 = math.tanh %153 : vector<2x32xf32>
    %155 = arith.mulf %149, %154 : vector<2x32xf32>
    %c2 = arith.constant 2 : index
    %c0_54 = arith.constant 0 : index
    %c0_55 = arith.constant 0 : index
    %156 = vector.load %arg1[%c2, %c0_54, %c0_55] : memref<8x2x8xf32, #tpu.memory_space<vmem>>, vector<1x2x8xf32>
    %157 = vector.shape_cast %156 : vector<1x2x8xf32> to vector<2x8xf32>
    %158 = tpu.concatenate %157, %119 in 1 : vector<2x8xf32>, vector<2x32xf32> -> vector<2x40xf32>
    %cst_56 = arith.constant dense<0.000000e+00> : vector<2x128xf32>
    %159 = tpu.matmul %158, %26, %cst_56 {dimension_numbers = #tpu.dot_dimension_numbers<[1], [0], [0], [1], [0, 0, 1, 1], [], []>} : vector<2x40xf32>, vector<40x128xf32>, vector<2x128xf32> -> vector<2x128xf32>
    %160 = arith.addf %159, %31 : vector<2x128xf32>
    %161 = arith.negf %160 : vector<2x128xf32>
    %162 = math.exp %161 : vector<2x128xf32>
    %cst_57 = arith.constant 1.000000e+00 : f32
    %163 = vector.broadcast %cst_57 : f32 to vector<2x128xf32>
    %164 = arith.addf %163, %162 : vector<2x128xf32>
    %165 = arith.divf %163, %164 : vector<2x128xf32>
    %166 = math.tanh %160 : vector<2x128xf32>
    %167 = vector.extract_strided_slice %165 {offsets = [0, 0], sizes = [2, 32], strides = [1, 1]} : vector<2x128xf32> to vector<2x32xf32>
    %168 = vector.extract_strided_slice %165 {offsets = [0, 32], sizes = [2, 32], strides = [1, 1]} : vector<2x128xf32> to vector<2x32xf32>
    %169 = vector.extract_strided_slice %165 {offsets = [0, 96], sizes = [2, 32], strides = [1, 1]} : vector<2x128xf32> to vector<2x32xf32>
    %170 = vector.extract_strided_slice %166 {offsets = [0, 64], sizes = [2, 32], strides = [1, 1]} : vector<2x128xf32> to vector<2x32xf32>
    %171 = arith.mulf %168, %117 : vector<2x32xf32>
    %172 = arith.mulf %167, %170 : vector<2x32xf32>
    %173 = arith.addf %171, %172 : vector<2x32xf32>
    %174 = math.tanh %173 : vector<2x32xf32>
    %175 = arith.mulf %169, %174 : vector<2x32xf32>
    %176 = tpu.concatenate %175, %137 in 1 : vector<2x32xf32>, vector<2x32xf32> -> vector<2x64xf32>
    %cst_58 = arith.constant dense<0.000000e+00> : vector<2x128xf32>
    %177 = tpu.matmul %176, %27, %cst_58 {dimension_numbers = #tpu.dot_dimension_numbers<[1], [0], [0], [1], [0, 0, 1, 1], [], []>} : vector<2x64xf32>, vector<64x128xf32>, vector<2x128xf32> -> vector<2x128xf32>
    %178 = arith.addf %177, %34 : vector<2x128xf32>
    %179 = arith.negf %178 : vector<2x128xf32>
    %180 = math.exp %179 : vector<2x128xf32>
    %cst_59 = arith.constant 1.000000e+00 : f32
    %181 = vector.broadcast %cst_59 : f32 to vector<2x128xf32>
    %182 = arith.addf %181, %180 : vector<2x128xf32>
    %183 = arith.divf %181, %182 : vector<2x128xf32>
    %184 = math.tanh %178 : vector<2x128xf32>
    %185 = vector.extract_strided_slice %183 {offsets = [0, 0], sizes = [2, 32], strides = [1, 1]} : vector<2x128xf32> to vector<2x32xf32>
    %186 = vector.extract_strided_slice %183 {offsets = [0, 32], sizes = [2, 32], strides = [1, 1]} : vector<2x128xf32> to vector<2x32xf32>
    %187 = vector.extract_strided_slice %183 {offsets = [0, 96], sizes = [2, 32], strides = [1, 1]} : vector<2x128xf32> to vector<2x32xf32>
    %188 = vector.extract_strided_slice %184 {offsets = [0, 64], sizes = [2, 32], strides = [1, 1]} : vector<2x128xf32> to vector<2x32xf32>
    %189 = arith.mulf %186, %135 : vector<2x32xf32>
    %190 = arith.mulf %185, %188 : vector<2x32xf32>
    %191 = arith.addf %189, %190 : vector<2x32xf32>
    %192 = math.tanh %191 : vector<2x32xf32>
    %193 = arith.mulf %187, %192 : vector<2x32xf32>
    %194 = tpu.concatenate %193, %155 in 1 : vector<2x32xf32>, vector<2x32xf32> -> vector<2x64xf32>
    %cst_60 = arith.constant dense<0.000000e+00> : vector<2x128xf32>
    %195 = tpu.matmul %194, %28, %cst_60 {dimension_numbers = #tpu.dot_dimension_numbers<[1], [0], [0], [1], [0, 0, 1, 1], [], []>} : vector<2x64xf32>, vector<64x128xf32>, vector<2x128xf32> -> vector<2x128xf32>
    %196 = arith.addf %195, %37 : vector<2x128xf32>
    %197 = arith.negf %196 : vector<2x128xf32>
    %198 = math.exp %197 : vector<2x128xf32>
    %cst_61 = arith.constant 1.000000e+00 : f32
    %199 = vector.broadcast %cst_61 : f32 to vector<2x128xf32>
    %200 = arith.addf %199, %198 : vector<2x128xf32>
    %201 = arith.divf %199, %200 : vector<2x128xf32>
    %202 = math.tanh %196 : vector<2x128xf32>
    %203 = vector.extract_strided_slice %201 {offsets = [0, 0], sizes = [2, 32], strides = [1, 1]} : vector<2x128xf32> to vector<2x32xf32>
    %204 = vector.extract_strided_slice %201 {offsets = [0, 32], sizes = [2, 32], strides = [1, 1]} : vector<2x128xf32> to vector<2x32xf32>
    %205 = vector.extract_strided_slice %201 {offsets = [0, 96], sizes = [2, 32], strides = [1, 1]} : vector<2x128xf32> to vector<2x32xf32>
    %206 = vector.extract_strided_slice %202 {offsets = [0, 64], sizes = [2, 32], strides = [1, 1]} : vector<2x128xf32> to vector<2x32xf32>
    %207 = arith.mulf %204, %153 : vector<2x32xf32>
    %208 = arith.mulf %203, %206 : vector<2x32xf32>
    %209 = arith.addf %207, %208 : vector<2x32xf32>
    %210 = math.tanh %209 : vector<2x32xf32>
    %211 = arith.mulf %205, %210 : vector<2x32xf32>
    %c3 = arith.constant 3 : index
    %c0_62 = arith.constant 0 : index
    %c0_63 = arith.constant 0 : index
    %212 = vector.load %arg1[%c3, %c0_62, %c0_63] : memref<8x2x8xf32, #tpu.memory_space<vmem>>, vector<1x2x8xf32>
    %213 = vector.shape_cast %212 : vector<1x2x8xf32> to vector<2x8xf32>
    %214 = tpu.concatenate %213, %175 in 1 : vector<2x8xf32>, vector<2x32xf32> -> vector<2x40xf32>
    %cst_64 = arith.constant dense<0.000000e+00> : vector<2x128xf32>
    %215 = tpu.matmul %214, %26, %cst_64 {dimension_numbers = #tpu.dot_dimension_numbers<[1], [0], [0], [1], [0, 0, 1, 1], [], []>} : vector<2x40xf32>, vector<40x128xf32>, vector<2x128xf32> -> vector<2x128xf32>
    %216 = arith.addf %215, %31 : vector<2x128xf32>
    %217 = arith.negf %216 : vector<2x128xf32>
    %218 = math.exp %217 : vector<2x128xf32>
    %cst_65 = arith.constant 1.000000e+00 : f32
    %219 = vector.broadcast %cst_65 : f32 to vector<2x128xf32>
    %220 = arith.addf %219, %218 : vector<2x128xf32>
    %221 = arith.divf %219, %220 : vector<2x128xf32>
    %222 = math.tanh %216 : vector<2x128xf32>
    %223 = vector.extract_strided_slice %221 {offsets = [0, 0], sizes = [2, 32], strides = [1, 1]} : vector<2x128xf32> to vector<2x32xf32>
    %224 = vector.extract_strided_slice %221 {offsets = [0, 32], sizes = [2, 32], strides = [1, 1]} : vector<2x128xf32> to vector<2x32xf32>
    %225 = vector.extract_strided_slice %221 {offsets = [0, 96], sizes = [2, 32], strides = [1, 1]} : vector<2x128xf32> to vector<2x32xf32>
    %226 = vector.extract_strided_slice %222 {offsets = [0, 64], sizes = [2, 32], strides = [1, 1]} : vector<2x128xf32> to vector<2x32xf32>
    %227 = arith.mulf %224, %173 : vector<2x32xf32>
    %228 = arith.mulf %223, %226 : vector<2x32xf32>
    %229 = arith.addf %227, %228 : vector<2x32xf32>
    %230 = math.tanh %229 : vector<2x32xf32>
    %231 = arith.mulf %225, %230 : vector<2x32xf32>
    %232 = tpu.concatenate %231, %193 in 1 : vector<2x32xf32>, vector<2x32xf32> -> vector<2x64xf32>
    %cst_66 = arith.constant dense<0.000000e+00> : vector<2x128xf32>
    %233 = tpu.matmul %232, %27, %cst_66 {dimension_numbers = #tpu.dot_dimension_numbers<[1], [0], [0], [1], [0, 0, 1, 1], [], []>} : vector<2x64xf32>, vector<64x128xf32>, vector<2x128xf32> -> vector<2x128xf32>
    %234 = arith.addf %233, %34 : vector<2x128xf32>
    %235 = arith.negf %234 : vector<2x128xf32>
    %236 = math.exp %235 : vector<2x128xf32>
    %cst_67 = arith.constant 1.000000e+00 : f32
    %237 = vector.broadcast %cst_67 : f32 to vector<2x128xf32>
    %238 = arith.addf %237, %236 : vector<2x128xf32>
    %239 = arith.divf %237, %238 : vector<2x128xf32>
    %240 = math.tanh %234 : vector<2x128xf32>
    %241 = vector.extract_strided_slice %239 {offsets = [0, 0], sizes = [2, 32], strides = [1, 1]} : vector<2x128xf32> to vector<2x32xf32>
    %242 = vector.extract_strided_slice %239 {offsets = [0, 32], sizes = [2, 32], strides = [1, 1]} : vector<2x128xf32> to vector<2x32xf32>
    %243 = vector.extract_strided_slice %239 {offsets = [0, 96], sizes = [2, 32], strides = [1, 1]} : vector<2x128xf32> to vector<2x32xf32>
    %244 = vector.extract_strided_slice %240 {offsets = [0, 64], sizes = [2, 32], strides = [1, 1]} : vector<2x128xf32> to vector<2x32xf32>
    %245 = arith.mulf %242, %191 : vector<2x32xf32>
    %246 = arith.mulf %241, %244 : vector<2x32xf32>
    %247 = arith.addf %245, %246 : vector<2x32xf32>
    %248 = math.tanh %247 : vector<2x32xf32>
    %249 = arith.mulf %243, %248 : vector<2x32xf32>
    %250 = tpu.concatenate %249, %211 in 1 : vector<2x32xf32>, vector<2x32xf32> -> vector<2x64xf32>
    %cst_68 = arith.constant dense<0.000000e+00> : vector<2x128xf32>
    %251 = tpu.matmul %250, %28, %cst_68 {dimension_numbers = #tpu.dot_dimension_numbers<[1], [0], [0], [1], [0, 0, 1, 1], [], []>} : vector<2x64xf32>, vector<64x128xf32>, vector<2x128xf32> -> vector<2x128xf32>
    %252 = arith.addf %251, %37 : vector<2x128xf32>
    %253 = arith.negf %252 : vector<2x128xf32>
    %254 = math.exp %253 : vector<2x128xf32>
    %cst_69 = arith.constant 1.000000e+00 : f32
    %255 = vector.broadcast %cst_69 : f32 to vector<2x128xf32>
    %256 = arith.addf %255, %254 : vector<2x128xf32>
    %257 = arith.divf %255, %256 : vector<2x128xf32>
    %258 = math.tanh %252 : vector<2x128xf32>
    %259 = vector.extract_strided_slice %257 {offsets = [0, 0], sizes = [2, 32], strides = [1, 1]} : vector<2x128xf32> to vector<2x32xf32>
    %260 = vector.extract_strided_slice %257 {offsets = [0, 32], sizes = [2, 32], strides = [1, 1]} : vector<2x128xf32> to vector<2x32xf32>
    %261 = vector.extract_strided_slice %257 {offsets = [0, 96], sizes = [2, 32], strides = [1, 1]} : vector<2x128xf32> to vector<2x32xf32>
    %262 = vector.extract_strided_slice %258 {offsets = [0, 64], sizes = [2, 32], strides = [1, 1]} : vector<2x128xf32> to vector<2x32xf32>
    %263 = arith.mulf %260, %209 : vector<2x32xf32>
    %264 = arith.mulf %259, %262 : vector<2x32xf32>
    %265 = arith.addf %263, %264 : vector<2x32xf32>
    %266 = math.tanh %265 : vector<2x32xf32>
    %267 = arith.mulf %261, %266 : vector<2x32xf32>
    %c4 = arith.constant 4 : index
    %c0_70 = arith.constant 0 : index
    %c0_71 = arith.constant 0 : index
    %268 = vector.load %arg1[%c4, %c0_70, %c0_71] : memref<8x2x8xf32, #tpu.memory_space<vmem>>, vector<1x2x8xf32>
    %269 = vector.shape_cast %268 : vector<1x2x8xf32> to vector<2x8xf32>
    %270 = tpu.concatenate %269, %231 in 1 : vector<2x8xf32>, vector<2x32xf32> -> vector<2x40xf32>
    %cst_72 = arith.constant dense<0.000000e+00> : vector<2x128xf32>
    %271 = tpu.matmul %270, %26, %cst_72 {dimension_numbers = #tpu.dot_dimension_numbers<[1], [0], [0], [1], [0, 0, 1, 1], [], []>} : vector<2x40xf32>, vector<40x128xf32>, vector<2x128xf32> -> vector<2x128xf32>
    %272 = arith.addf %271, %31 : vector<2x128xf32>
    %273 = arith.negf %272 : vector<2x128xf32>
    %274 = math.exp %273 : vector<2x128xf32>
    %cst_73 = arith.constant 1.000000e+00 : f32
    %275 = vector.broadcast %cst_73 : f32 to vector<2x128xf32>
    %276 = arith.addf %275, %274 : vector<2x128xf32>
    %277 = arith.divf %275, %276 : vector<2x128xf32>
    %278 = math.tanh %272 : vector<2x128xf32>
    %279 = vector.extract_strided_slice %277 {offsets = [0, 0], sizes = [2, 32], strides = [1, 1]} : vector<2x128xf32> to vector<2x32xf32>
    %280 = vector.extract_strided_slice %277 {offsets = [0, 32], sizes = [2, 32], strides = [1, 1]} : vector<2x128xf32> to vector<2x32xf32>
    %281 = vector.extract_strided_slice %277 {offsets = [0, 96], sizes = [2, 32], strides = [1, 1]} : vector<2x128xf32> to vector<2x32xf32>
    %282 = vector.extract_strided_slice %278 {offsets = [0, 64], sizes = [2, 32], strides = [1, 1]} : vector<2x128xf32> to vector<2x32xf32>
    %283 = arith.mulf %280, %229 : vector<2x32xf32>
    %284 = arith.mulf %279, %282 : vector<2x32xf32>
    %285 = arith.addf %283, %284 : vector<2x32xf32>
    %286 = math.tanh %285 : vector<2x32xf32>
    %287 = arith.mulf %281, %286 : vector<2x32xf32>
    %288 = tpu.concatenate %287, %249 in 1 : vector<2x32xf32>, vector<2x32xf32> -> vector<2x64xf32>
    %cst_74 = arith.constant dense<0.000000e+00> : vector<2x128xf32>
    %289 = tpu.matmul %288, %27, %cst_74 {dimension_numbers = #tpu.dot_dimension_numbers<[1], [0], [0], [1], [0, 0, 1, 1], [], []>} : vector<2x64xf32>, vector<64x128xf32>, vector<2x128xf32> -> vector<2x128xf32>
    %290 = arith.addf %289, %34 : vector<2x128xf32>
    %291 = arith.negf %290 : vector<2x128xf32>
    %292 = math.exp %291 : vector<2x128xf32>
    %cst_75 = arith.constant 1.000000e+00 : f32
    %293 = vector.broadcast %cst_75 : f32 to vector<2x128xf32>
    %294 = arith.addf %293, %292 : vector<2x128xf32>
    %295 = arith.divf %293, %294 : vector<2x128xf32>
    %296 = math.tanh %290 : vector<2x128xf32>
    %297 = vector.extract_strided_slice %295 {offsets = [0, 0], sizes = [2, 32], strides = [1, 1]} : vector<2x128xf32> to vector<2x32xf32>
    %298 = vector.extract_strided_slice %295 {offsets = [0, 32], sizes = [2, 32], strides = [1, 1]} : vector<2x128xf32> to vector<2x32xf32>
    %299 = vector.extract_strided_slice %295 {offsets = [0, 96], sizes = [2, 32], strides = [1, 1]} : vector<2x128xf32> to vector<2x32xf32>
    %300 = vector.extract_strided_slice %296 {offsets = [0, 64], sizes = [2, 32], strides = [1, 1]} : vector<2x128xf32> to vector<2x32xf32>
    %301 = arith.mulf %298, %247 : vector<2x32xf32>
    %302 = arith.mulf %297, %300 : vector<2x32xf32>
    %303 = arith.addf %301, %302 : vector<2x32xf32>
    %304 = math.tanh %303 : vector<2x32xf32>
    %305 = arith.mulf %299, %304 : vector<2x32xf32>
    %306 = tpu.concatenate %305, %267 in 1 : vector<2x32xf32>, vector<2x32xf32> -> vector<2x64xf32>
    %cst_76 = arith.constant dense<0.000000e+00> : vector<2x128xf32>
    %307 = tpu.matmul %306, %28, %cst_76 {dimension_numbers = #tpu.dot_dimension_numbers<[1], [0], [0], [1], [0, 0, 1, 1], [], []>} : vector<2x64xf32>, vector<64x128xf32>, vector<2x128xf32> -> vector<2x128xf32>
    %308 = arith.addf %307, %37 : vector<2x128xf32>
    %309 = arith.negf %308 : vector<2x128xf32>
    %310 = math.exp %309 : vector<2x128xf32>
    %cst_77 = arith.constant 1.000000e+00 : f32
    %311 = vector.broadcast %cst_77 : f32 to vector<2x128xf32>
    %312 = arith.addf %311, %310 : vector<2x128xf32>
    %313 = arith.divf %311, %312 : vector<2x128xf32>
    %314 = math.tanh %308 : vector<2x128xf32>
    %315 = vector.extract_strided_slice %313 {offsets = [0, 0], sizes = [2, 32], strides = [1, 1]} : vector<2x128xf32> to vector<2x32xf32>
    %316 = vector.extract_strided_slice %313 {offsets = [0, 32], sizes = [2, 32], strides = [1, 1]} : vector<2x128xf32> to vector<2x32xf32>
    %317 = vector.extract_strided_slice %313 {offsets = [0, 96], sizes = [2, 32], strides = [1, 1]} : vector<2x128xf32> to vector<2x32xf32>
    %318 = vector.extract_strided_slice %314 {offsets = [0, 64], sizes = [2, 32], strides = [1, 1]} : vector<2x128xf32> to vector<2x32xf32>
    %319 = arith.mulf %316, %265 : vector<2x32xf32>
    %320 = arith.mulf %315, %318 : vector<2x32xf32>
    %321 = arith.addf %319, %320 : vector<2x32xf32>
    %322 = math.tanh %321 : vector<2x32xf32>
    %323 = arith.mulf %317, %322 : vector<2x32xf32>
    %c5 = arith.constant 5 : index
    %c0_78 = arith.constant 0 : index
    %c0_79 = arith.constant 0 : index
    %324 = vector.load %arg1[%c5, %c0_78, %c0_79] : memref<8x2x8xf32, #tpu.memory_space<vmem>>, vector<1x2x8xf32>
    %325 = vector.shape_cast %324 : vector<1x2x8xf32> to vector<2x8xf32>
    %326 = tpu.concatenate %325, %287 in 1 : vector<2x8xf32>, vector<2x32xf32> -> vector<2x40xf32>
    %cst_80 = arith.constant dense<0.000000e+00> : vector<2x128xf32>
    %327 = tpu.matmul %326, %26, %cst_80 {dimension_numbers = #tpu.dot_dimension_numbers<[1], [0], [0], [1], [0, 0, 1, 1], [], []>} : vector<2x40xf32>, vector<40x128xf32>, vector<2x128xf32> -> vector<2x128xf32>
    %328 = arith.addf %327, %31 : vector<2x128xf32>
    %329 = arith.negf %328 : vector<2x128xf32>
    %330 = math.exp %329 : vector<2x128xf32>
    %cst_81 = arith.constant 1.000000e+00 : f32
    %331 = vector.broadcast %cst_81 : f32 to vector<2x128xf32>
    %332 = arith.addf %331, %330 : vector<2x128xf32>
    %333 = arith.divf %331, %332 : vector<2x128xf32>
    %334 = math.tanh %328 : vector<2x128xf32>
    %335 = vector.extract_strided_slice %333 {offsets = [0, 0], sizes = [2, 32], strides = [1, 1]} : vector<2x128xf32> to vector<2x32xf32>
    %336 = vector.extract_strided_slice %333 {offsets = [0, 32], sizes = [2, 32], strides = [1, 1]} : vector<2x128xf32> to vector<2x32xf32>
    %337 = vector.extract_strided_slice %333 {offsets = [0, 96], sizes = [2, 32], strides = [1, 1]} : vector<2x128xf32> to vector<2x32xf32>
    %338 = vector.extract_strided_slice %334 {offsets = [0, 64], sizes = [2, 32], strides = [1, 1]} : vector<2x128xf32> to vector<2x32xf32>
    %339 = arith.mulf %336, %285 : vector<2x32xf32>
    %340 = arith.mulf %335, %338 : vector<2x32xf32>
    %341 = arith.addf %339, %340 : vector<2x32xf32>
    %342 = math.tanh %341 : vector<2x32xf32>
    %343 = arith.mulf %337, %342 : vector<2x32xf32>
    %344 = tpu.concatenate %343, %305 in 1 : vector<2x32xf32>, vector<2x32xf32> -> vector<2x64xf32>
    %cst_82 = arith.constant dense<0.000000e+00> : vector<2x128xf32>
    %345 = tpu.matmul %344, %27, %cst_82 {dimension_numbers = #tpu.dot_dimension_numbers<[1], [0], [0], [1], [0, 0, 1, 1], [], []>} : vector<2x64xf32>, vector<64x128xf32>, vector<2x128xf32> -> vector<2x128xf32>
    %346 = arith.addf %345, %34 : vector<2x128xf32>
    %347 = arith.negf %346 : vector<2x128xf32>
    %348 = math.exp %347 : vector<2x128xf32>
    %cst_83 = arith.constant 1.000000e+00 : f32
    %349 = vector.broadcast %cst_83 : f32 to vector<2x128xf32>
    %350 = arith.addf %349, %348 : vector<2x128xf32>
    %351 = arith.divf %349, %350 : vector<2x128xf32>
    %352 = math.tanh %346 : vector<2x128xf32>
    %353 = vector.extract_strided_slice %351 {offsets = [0, 0], sizes = [2, 32], strides = [1, 1]} : vector<2x128xf32> to vector<2x32xf32>
    %354 = vector.extract_strided_slice %351 {offsets = [0, 32], sizes = [2, 32], strides = [1, 1]} : vector<2x128xf32> to vector<2x32xf32>
    %355 = vector.extract_strided_slice %351 {offsets = [0, 96], sizes = [2, 32], strides = [1, 1]} : vector<2x128xf32> to vector<2x32xf32>
    %356 = vector.extract_strided_slice %352 {offsets = [0, 64], sizes = [2, 32], strides = [1, 1]} : vector<2x128xf32> to vector<2x32xf32>
    %357 = arith.mulf %354, %303 : vector<2x32xf32>
    %358 = arith.mulf %353, %356 : vector<2x32xf32>
    %359 = arith.addf %357, %358 : vector<2x32xf32>
    %360 = math.tanh %359 : vector<2x32xf32>
    %361 = arith.mulf %355, %360 : vector<2x32xf32>
    %362 = tpu.concatenate %361, %323 in 1 : vector<2x32xf32>, vector<2x32xf32> -> vector<2x64xf32>
    %cst_84 = arith.constant dense<0.000000e+00> : vector<2x128xf32>
    %363 = tpu.matmul %362, %28, %cst_84 {dimension_numbers = #tpu.dot_dimension_numbers<[1], [0], [0], [1], [0, 0, 1, 1], [], []>} : vector<2x64xf32>, vector<64x128xf32>, vector<2x128xf32> -> vector<2x128xf32>
    %364 = arith.addf %363, %37 : vector<2x128xf32>
    %365 = arith.negf %364 : vector<2x128xf32>
    %366 = math.exp %365 : vector<2x128xf32>
    %cst_85 = arith.constant 1.000000e+00 : f32
    %367 = vector.broadcast %cst_85 : f32 to vector<2x128xf32>
    %368 = arith.addf %367, %366 : vector<2x128xf32>
    %369 = arith.divf %367, %368 : vector<2x128xf32>
    %370 = math.tanh %364 : vector<2x128xf32>
    %371 = vector.extract_strided_slice %369 {offsets = [0, 0], sizes = [2, 32], strides = [1, 1]} : vector<2x128xf32> to vector<2x32xf32>
    %372 = vector.extract_strided_slice %369 {offsets = [0, 32], sizes = [2, 32], strides = [1, 1]} : vector<2x128xf32> to vector<2x32xf32>
    %373 = vector.extract_strided_slice %369 {offsets = [0, 96], sizes = [2, 32], strides = [1, 1]} : vector<2x128xf32> to vector<2x32xf32>
    %374 = vector.extract_strided_slice %370 {offsets = [0, 64], sizes = [2, 32], strides = [1, 1]} : vector<2x128xf32> to vector<2x32xf32>
    %375 = arith.mulf %372, %321 : vector<2x32xf32>
    %376 = arith.mulf %371, %374 : vector<2x32xf32>
    %377 = arith.addf %375, %376 : vector<2x32xf32>
    %378 = math.tanh %377 : vector<2x32xf32>
    %379 = arith.mulf %373, %378 : vector<2x32xf32>
    %c6 = arith.constant 6 : index
    %c0_86 = arith.constant 0 : index
    %c0_87 = arith.constant 0 : index
    %380 = vector.load %arg1[%c6, %c0_86, %c0_87] : memref<8x2x8xf32, #tpu.memory_space<vmem>>, vector<1x2x8xf32>
    %381 = vector.shape_cast %380 : vector<1x2x8xf32> to vector<2x8xf32>
    %382 = tpu.concatenate %381, %343 in 1 : vector<2x8xf32>, vector<2x32xf32> -> vector<2x40xf32>
    %cst_88 = arith.constant dense<0.000000e+00> : vector<2x128xf32>
    %383 = tpu.matmul %382, %26, %cst_88 {dimension_numbers = #tpu.dot_dimension_numbers<[1], [0], [0], [1], [0, 0, 1, 1], [], []>} : vector<2x40xf32>, vector<40x128xf32>, vector<2x128xf32> -> vector<2x128xf32>
    %384 = arith.addf %383, %31 : vector<2x128xf32>
    %385 = arith.negf %384 : vector<2x128xf32>
    %386 = math.exp %385 : vector<2x128xf32>
    %cst_89 = arith.constant 1.000000e+00 : f32
    %387 = vector.broadcast %cst_89 : f32 to vector<2x128xf32>
    %388 = arith.addf %387, %386 : vector<2x128xf32>
    %389 = arith.divf %387, %388 : vector<2x128xf32>
    %390 = math.tanh %384 : vector<2x128xf32>
    %391 = vector.extract_strided_slice %389 {offsets = [0, 0], sizes = [2, 32], strides = [1, 1]} : vector<2x128xf32> to vector<2x32xf32>
    %392 = vector.extract_strided_slice %389 {offsets = [0, 32], sizes = [2, 32], strides = [1, 1]} : vector<2x128xf32> to vector<2x32xf32>
    %393 = vector.extract_strided_slice %389 {offsets = [0, 96], sizes = [2, 32], strides = [1, 1]} : vector<2x128xf32> to vector<2x32xf32>
    %394 = vector.extract_strided_slice %390 {offsets = [0, 64], sizes = [2, 32], strides = [1, 1]} : vector<2x128xf32> to vector<2x32xf32>
    %395 = arith.mulf %392, %341 : vector<2x32xf32>
    %396 = arith.mulf %391, %394 : vector<2x32xf32>
    %397 = arith.addf %395, %396 : vector<2x32xf32>
    %398 = math.tanh %397 : vector<2x32xf32>
    %399 = arith.mulf %393, %398 : vector<2x32xf32>
    %400 = tpu.concatenate %399, %361 in 1 : vector<2x32xf32>, vector<2x32xf32> -> vector<2x64xf32>
    %cst_90 = arith.constant dense<0.000000e+00> : vector<2x128xf32>
    %401 = tpu.matmul %400, %27, %cst_90 {dimension_numbers = #tpu.dot_dimension_numbers<[1], [0], [0], [1], [0, 0, 1, 1], [], []>} : vector<2x64xf32>, vector<64x128xf32>, vector<2x128xf32> -> vector<2x128xf32>
    %402 = arith.addf %401, %34 : vector<2x128xf32>
    %403 = arith.negf %402 : vector<2x128xf32>
    %404 = math.exp %403 : vector<2x128xf32>
    %cst_91 = arith.constant 1.000000e+00 : f32
    %405 = vector.broadcast %cst_91 : f32 to vector<2x128xf32>
    %406 = arith.addf %405, %404 : vector<2x128xf32>
    %407 = arith.divf %405, %406 : vector<2x128xf32>
    %408 = math.tanh %402 : vector<2x128xf32>
    %409 = vector.extract_strided_slice %407 {offsets = [0, 0], sizes = [2, 32], strides = [1, 1]} : vector<2x128xf32> to vector<2x32xf32>
    %410 = vector.extract_strided_slice %407 {offsets = [0, 32], sizes = [2, 32], strides = [1, 1]} : vector<2x128xf32> to vector<2x32xf32>
    %411 = vector.extract_strided_slice %407 {offsets = [0, 96], sizes = [2, 32], strides = [1, 1]} : vector<2x128xf32> to vector<2x32xf32>
    %412 = vector.extract_strided_slice %408 {offsets = [0, 64], sizes = [2, 32], strides = [1, 1]} : vector<2x128xf32> to vector<2x32xf32>
    %413 = arith.mulf %410, %359 : vector<2x32xf32>
    %414 = arith.mulf %409, %412 : vector<2x32xf32>
    %415 = arith.addf %413, %414 : vector<2x32xf32>
    %416 = math.tanh %415 : vector<2x32xf32>
    %417 = arith.mulf %411, %416 : vector<2x32xf32>
    %418 = tpu.concatenate %417, %379 in 1 : vector<2x32xf32>, vector<2x32xf32> -> vector<2x64xf32>
    %cst_92 = arith.constant dense<0.000000e+00> : vector<2x128xf32>
    %419 = tpu.matmul %418, %28, %cst_92 {dimension_numbers = #tpu.dot_dimension_numbers<[1], [0], [0], [1], [0, 0, 1, 1], [], []>} : vector<2x64xf32>, vector<64x128xf32>, vector<2x128xf32> -> vector<2x128xf32>
    %420 = arith.addf %419, %37 : vector<2x128xf32>
    %421 = arith.negf %420 : vector<2x128xf32>
    %422 = math.exp %421 : vector<2x128xf32>
    %cst_93 = arith.constant 1.000000e+00 : f32
    %423 = vector.broadcast %cst_93 : f32 to vector<2x128xf32>
    %424 = arith.addf %423, %422 : vector<2x128xf32>
    %425 = arith.divf %423, %424 : vector<2x128xf32>
    %426 = math.tanh %420 : vector<2x128xf32>
    %427 = vector.extract_strided_slice %425 {offsets = [0, 0], sizes = [2, 32], strides = [1, 1]} : vector<2x128xf32> to vector<2x32xf32>
    %428 = vector.extract_strided_slice %425 {offsets = [0, 32], sizes = [2, 32], strides = [1, 1]} : vector<2x128xf32> to vector<2x32xf32>
    %429 = vector.extract_strided_slice %425 {offsets = [0, 96], sizes = [2, 32], strides = [1, 1]} : vector<2x128xf32> to vector<2x32xf32>
    %430 = vector.extract_strided_slice %426 {offsets = [0, 64], sizes = [2, 32], strides = [1, 1]} : vector<2x128xf32> to vector<2x32xf32>
    %431 = arith.mulf %428, %377 : vector<2x32xf32>
    %432 = arith.mulf %427, %430 : vector<2x32xf32>
    %433 = arith.addf %431, %432 : vector<2x32xf32>
    %434 = math.tanh %433 : vector<2x32xf32>
    %435 = arith.mulf %429, %434 : vector<2x32xf32>
    %c7 = arith.constant 7 : index
    %c0_94 = arith.constant 0 : index
    %c0_95 = arith.constant 0 : index
    %436 = vector.load %arg1[%c7, %c0_94, %c0_95] : memref<8x2x8xf32, #tpu.memory_space<vmem>>, vector<1x2x8xf32>
    %437 = vector.shape_cast %436 : vector<1x2x8xf32> to vector<2x8xf32>
    %438 = tpu.concatenate %437, %399 in 1 : vector<2x8xf32>, vector<2x32xf32> -> vector<2x40xf32>
    %cst_96 = arith.constant dense<0.000000e+00> : vector<2x128xf32>
    %439 = tpu.matmul %438, %26, %cst_96 {dimension_numbers = #tpu.dot_dimension_numbers<[1], [0], [0], [1], [0, 0, 1, 1], [], []>} : vector<2x40xf32>, vector<40x128xf32>, vector<2x128xf32> -> vector<2x128xf32>
    %440 = arith.addf %439, %31 : vector<2x128xf32>
    %441 = arith.negf %440 : vector<2x128xf32>
    %442 = math.exp %441 : vector<2x128xf32>
    %cst_97 = arith.constant 1.000000e+00 : f32
    %443 = vector.broadcast %cst_97 : f32 to vector<2x128xf32>
    %444 = arith.addf %443, %442 : vector<2x128xf32>
    %445 = arith.divf %443, %444 : vector<2x128xf32>
    %446 = math.tanh %440 : vector<2x128xf32>
    %447 = vector.extract_strided_slice %445 {offsets = [0, 0], sizes = [2, 32], strides = [1, 1]} : vector<2x128xf32> to vector<2x32xf32>
    %448 = vector.extract_strided_slice %445 {offsets = [0, 32], sizes = [2, 32], strides = [1, 1]} : vector<2x128xf32> to vector<2x32xf32>
    %449 = vector.extract_strided_slice %445 {offsets = [0, 96], sizes = [2, 32], strides = [1, 1]} : vector<2x128xf32> to vector<2x32xf32>
    %450 = vector.extract_strided_slice %446 {offsets = [0, 64], sizes = [2, 32], strides = [1, 1]} : vector<2x128xf32> to vector<2x32xf32>
    %451 = arith.mulf %448, %397 : vector<2x32xf32>
    %452 = arith.mulf %447, %450 : vector<2x32xf32>
    %453 = arith.addf %451, %452 : vector<2x32xf32>
    %454 = math.tanh %453 : vector<2x32xf32>
    %455 = arith.mulf %449, %454 : vector<2x32xf32>
    %456 = tpu.concatenate %455, %417 in 1 : vector<2x32xf32>, vector<2x32xf32> -> vector<2x64xf32>
    %cst_98 = arith.constant dense<0.000000e+00> : vector<2x128xf32>
    %457 = tpu.matmul %456, %27, %cst_98 {dimension_numbers = #tpu.dot_dimension_numbers<[1], [0], [0], [1], [0, 0, 1, 1], [], []>} : vector<2x64xf32>, vector<64x128xf32>, vector<2x128xf32> -> vector<2x128xf32>
    %458 = arith.addf %457, %34 : vector<2x128xf32>
    %459 = arith.negf %458 : vector<2x128xf32>
    %460 = math.exp %459 : vector<2x128xf32>
    %cst_99 = arith.constant 1.000000e+00 : f32
    %461 = vector.broadcast %cst_99 : f32 to vector<2x128xf32>
    %462 = arith.addf %461, %460 : vector<2x128xf32>
    %463 = arith.divf %461, %462 : vector<2x128xf32>
    %464 = math.tanh %458 : vector<2x128xf32>
    %465 = vector.extract_strided_slice %463 {offsets = [0, 0], sizes = [2, 32], strides = [1, 1]} : vector<2x128xf32> to vector<2x32xf32>
    %466 = vector.extract_strided_slice %463 {offsets = [0, 32], sizes = [2, 32], strides = [1, 1]} : vector<2x128xf32> to vector<2x32xf32>
    %467 = vector.extract_strided_slice %463 {offsets = [0, 96], sizes = [2, 32], strides = [1, 1]} : vector<2x128xf32> to vector<2x32xf32>
    %468 = vector.extract_strided_slice %464 {offsets = [0, 64], sizes = [2, 32], strides = [1, 1]} : vector<2x128xf32> to vector<2x32xf32>
    %469 = arith.mulf %466, %415 : vector<2x32xf32>
    %470 = arith.mulf %465, %468 : vector<2x32xf32>
    %471 = arith.addf %469, %470 : vector<2x32xf32>
    %472 = math.tanh %471 : vector<2x32xf32>
    %473 = arith.mulf %467, %472 : vector<2x32xf32>
    %474 = tpu.concatenate %473, %435 in 1 : vector<2x32xf32>, vector<2x32xf32> -> vector<2x64xf32>
    %cst_100 = arith.constant dense<0.000000e+00> : vector<2x128xf32>
    %475 = tpu.matmul %474, %28, %cst_100 {dimension_numbers = #tpu.dot_dimension_numbers<[1], [0], [0], [1], [0, 0, 1, 1], [], []>} : vector<2x64xf32>, vector<64x128xf32>, vector<2x128xf32> -> vector<2x128xf32>
    %476 = arith.addf %475, %37 : vector<2x128xf32>
    %477 = arith.negf %476 : vector<2x128xf32>
    %478 = math.exp %477 : vector<2x128xf32>
    %cst_101 = arith.constant 1.000000e+00 : f32
    %479 = vector.broadcast %cst_101 : f32 to vector<2x128xf32>
    %480 = arith.addf %479, %478 : vector<2x128xf32>
    %481 = arith.divf %479, %480 : vector<2x128xf32>
    %482 = math.tanh %476 : vector<2x128xf32>
    %483 = vector.extract_strided_slice %481 {offsets = [0, 0], sizes = [2, 32], strides = [1, 1]} : vector<2x128xf32> to vector<2x32xf32>
    %484 = vector.extract_strided_slice %481 {offsets = [0, 32], sizes = [2, 32], strides = [1, 1]} : vector<2x128xf32> to vector<2x32xf32>
    %485 = vector.extract_strided_slice %481 {offsets = [0, 96], sizes = [2, 32], strides = [1, 1]} : vector<2x128xf32> to vector<2x32xf32>
    %486 = vector.extract_strided_slice %482 {offsets = [0, 64], sizes = [2, 32], strides = [1, 1]} : vector<2x128xf32> to vector<2x32xf32>
    %487 = arith.mulf %484, %433 : vector<2x32xf32>
    %488 = arith.mulf %483, %486 : vector<2x32xf32>
    %489 = arith.addf %487, %488 : vector<2x32xf32>
    %490 = math.tanh %489 : vector<2x32xf32>
    %491 = arith.mulf %485, %490 : vector<2x32xf32>
    %492 = tpu.concatenate %491, %25 in 1 : vector<2x32xf32>, vector<2x32xf32> -> vector<2x64xf32>
    %c0_102 = arith.constant 0 : index
    %c0_103 = arith.constant 0 : index
    %493 = vector.load %arg15[%c0_102, %c0_103] : memref<64x32xf32, #tpu.memory_space<vmem>>, vector<64x32xf32>
    %cst_104 = arith.constant dense<0.000000e+00> : vector<2x32xf32>
    %494 = tpu.matmul %492, %493, %cst_104 {dimension_numbers = #tpu.dot_dimension_numbers<[1], [0], [0], [1], [0, 0, 1, 1], [], []>} : vector<2x64xf32>, vector<64x32xf32>, vector<2x32xf32> -> vector<2x32xf32>
    %c0_105 = arith.constant 0 : index
    %c0_106 = arith.constant 0 : index
    %495 = vector.load %arg16[%c0_105, %c0_106] : memref<1x32xf32, #tpu.memory_space<vmem>>, vector<1x32xf32>
    %496 = vector.broadcast %495 : vector<1x32xf32> to vector<2x32xf32>
    %497 = arith.addf %494, %496 : vector<2x32xf32>
    %cst_107 = arith.constant 0.000000e+00 : f32
    %498 = vector.broadcast %cst_107 : f32 to vector<2x32xf32>
    %499 = arith.cmpf ogt, %497, %498 : vector<2x32xf32>
    %cst_108 = arith.constant 5.000000e-02 : f32
    %500 = vector.broadcast %cst_108 : f32 to vector<2x32xf32>
    %501 = arith.mulf %500, %497 : vector<2x32xf32>
    %502 = arith.select %499, %497, %501 : vector<2x32xi1>, vector<2x32xf32>
    %c0_109 = arith.constant 0 : index
    %c0_110 = arith.constant 0 : index
    %503 = vector.load %arg17[%c0_109, %c0_110] : memref<32x32xf32, #tpu.memory_space<vmem>>, vector<32x32xf32>
    %cst_111 = arith.constant dense<0.000000e+00> : vector<2x32xf32>
    %504 = tpu.matmul %502, %503, %cst_111 {dimension_numbers = #tpu.dot_dimension_numbers<[1], [0], [0], [1], [0, 0, 1, 1], [], []>} : vector<2x32xf32>, vector<32x32xf32>, vector<2x32xf32> -> vector<2x32xf32>
    %c0_112 = arith.constant 0 : index
    %c0_113 = arith.constant 0 : index
    %505 = vector.load %arg18[%c0_112, %c0_113] : memref<1x32xf32, #tpu.memory_space<vmem>>, vector<1x32xf32>
    %506 = vector.broadcast %505 : vector<1x32xf32> to vector<2x32xf32>
    %507 = arith.addf %504, %506 : vector<2x32xf32>
    %cst_114 = arith.constant 0.000000e+00 : f32
    %508 = vector.broadcast %cst_114 : f32 to vector<2x32xf32>
    %509 = arith.cmpf ogt, %507, %508 : vector<2x32xf32>
    %cst_115 = arith.constant 5.000000e-02 : f32
    %510 = vector.broadcast %cst_115 : f32 to vector<2x32xf32>
    %511 = arith.mulf %510, %507 : vector<2x32xf32>
    %512 = arith.select %509, %507, %511 : vector<2x32xi1>, vector<2x32xf32>
    %c0_116 = arith.constant 0 : index
    %c0_117 = arith.constant 0 : index
    %513 = vector.load %arg19[%c0_116, %c0_117] : memref<32x32xf32, #tpu.memory_space<vmem>>, vector<32x32xf32>
    %cst_118 = arith.constant dense<0.000000e+00> : vector<2x32xf32>
    %514 = tpu.matmul %512, %513, %cst_118 {dimension_numbers = #tpu.dot_dimension_numbers<[1], [0], [0], [1], [0, 0, 1, 1], [], []>} : vector<2x32xf32>, vector<32x32xf32>, vector<2x32xf32> -> vector<2x32xf32>
    %c0_119 = arith.constant 0 : index
    %c0_120 = arith.constant 0 : index
    %515 = vector.load %arg20[%c0_119, %c0_120] : memref<1x32xf32, #tpu.memory_space<vmem>>, vector<1x32xf32>
    %516 = vector.broadcast %515 : vector<1x32xf32> to vector<2x32xf32>
    %517 = arith.addf %514, %516 : vector<2x32xf32>
    %c0_121 = arith.constant 0 : index
    %c0_122 = arith.constant 0 : index
    %518 = vector.load %arg21[%c0_121, %c0_122] : memref<32x64xf32, #tpu.memory_space<vmem>>, vector<32x64xf32>
    %cst_123 = arith.constant dense<0.000000e+00> : vector<2x64xf32>
    %519 = tpu.matmul %517, %518, %cst_123 {dimension_numbers = #tpu.dot_dimension_numbers<[1], [0], [0], [1], [0, 0, 1, 1], [], []>} : vector<2x32xf32>, vector<32x64xf32>, vector<2x64xf32> -> vector<2x64xf32>
    %c0_124 = arith.constant 0 : index
    %c0_125 = arith.constant 0 : index
    %520 = vector.load %arg22[%c0_124, %c0_125] : memref<1x64xf32, #tpu.memory_space<vmem>>, vector<1x64xf32>
    %521 = vector.broadcast %520 : vector<1x64xf32> to vector<2x64xf32>
    %522 = arith.addf %519, %521 : vector<2x64xf32>
    %cst_126 = arith.constant 0.000000e+00 : f32
    %523 = vector.broadcast %cst_126 : f32 to vector<2x64xf32>
    %524 = arith.cmpf ogt, %522, %523 : vector<2x64xf32>
    %cst_127 = arith.constant 5.000000e-02 : f32
    %525 = vector.broadcast %cst_127 : f32 to vector<2x64xf32>
    %526 = arith.mulf %525, %522 : vector<2x64xf32>
    %527 = arith.select %524, %522, %526 : vector<2x64xi1>, vector<2x64xf32>
    %c0_128 = arith.constant 0 : index
    %c0_129 = arith.constant 0 : index
    %528 = vector.load %arg23[%c0_128, %c0_129] : memref<64x64xf32, #tpu.memory_space<vmem>>, vector<64x64xf32>
    %cst_130 = arith.constant dense<0.000000e+00> : vector<2x64xf32>
    %529 = tpu.matmul %527, %528, %cst_130 {dimension_numbers = #tpu.dot_dimension_numbers<[1], [0], [0], [1], [0, 0, 1, 1], [], []>} : vector<2x64xf32>, vector<64x64xf32>, vector<2x64xf32> -> vector<2x64xf32>
    %c0_131 = arith.constant 0 : index
    %c0_132 = arith.constant 0 : index
    %530 = vector.load %arg24[%c0_131, %c0_132] : memref<1x64xf32, #tpu.memory_space<vmem>>, vector<1x64xf32>
    %531 = vector.broadcast %530 : vector<1x64xf32> to vector<2x64xf32>
    %532 = arith.addf %529, %531 : vector<2x64xf32>
    %cst_133 = arith.constant 0.000000e+00 : f32
    %533 = vector.broadcast %cst_133 : f32 to vector<2x64xf32>
    %534 = arith.cmpf ogt, %532, %533 : vector<2x64xf32>
    %cst_134 = arith.constant 5.000000e-02 : f32
    %535 = vector.broadcast %cst_134 : f32 to vector<2x64xf32>
    %536 = arith.mulf %535, %532 : vector<2x64xf32>
    %537 = arith.select %534, %532, %536 : vector<2x64xi1>, vector<2x64xf32>
    %c0_135 = arith.constant 0 : index
    %c0_136 = arith.constant 0 : index
    %538 = vector.load %arg25[%c0_135, %c0_136] : memref<64x128xf32, #tpu.memory_space<vmem>>, vector<64x128xf32>
    %cst_137 = arith.constant dense<0.000000e+00> : vector<2x128xf32>
    %539 = tpu.matmul %537, %538, %cst_137 {dimension_numbers = #tpu.dot_dimension_numbers<[1], [0], [0], [1], [0, 0, 1, 1], [], []>} : vector<2x64xf32>, vector<64x128xf32>, vector<2x128xf32> -> vector<2x128xf32>
    %c0_138 = arith.constant 0 : index
    %c0_139 = arith.constant 0 : index
    %540 = vector.load %arg26[%c0_138, %c0_139] : memref<1x128xf32, #tpu.memory_space<vmem>>, vector<1x128xf32>
    %541 = vector.broadcast %540 : vector<1x128xf32> to vector<2x128xf32>
    %542 = arith.addf %539, %541 : vector<2x128xf32>
    %c0_140 = arith.constant 0 : index
    %c0_141 = arith.constant 0 : index
    %543 = vector.load %arg27[%c0_140, %c0_141] : memref<2x128xf32, #tpu.memory_space<vmem>>, vector<2x128xf32>
    tpu.vector_store %arg27[%c0_140, %c0_141], %542 {strides = array<i32>} : memref<2x128xf32, #tpu.memory_space<vmem>>, vector<2x128xf32>,
    return
  }
  func.func @transform_0(%arg0: i32) -> (i32, i32, i32) {
    %c0_i32 = arith.constant 0 : i32
    %c0_i32_0 = arith.constant 0 : i32
    %c0_i32_1 = arith.constant 0 : i32
    %c0_i32_2 = arith.constant 0 : i32
    return %c0_i32, %c0_i32_0, %c0_i32_1 : i32, i32, i32
  }
  func.func @transform_1(%arg0: i32) -> (i32, i32) {
    %c0_i32 = arith.constant 0 : i32
    %c0_i32_0 = arith.constant 0 : i32
    %c0_i32_1 = arith.constant 0 : i32
    return %c0_i32, %c0_i32_0 : i32, i32
  }
  func.func @transform_2(%arg0: i32) -> (i32, i32) {
    %c0_i32 = arith.constant 0 : i32
    %c0_i32_0 = arith.constant 0 : i32
    %c0_i32_1 = arith.constant 0 : i32
    return %c0_i32, %c0_i32_0 : i32, i32
  }
  func.func @transform_3(%arg0: i32) -> (i32, i32) {
    %c0_i32 = arith.constant 0 : i32
    %c0_i32_0 = arith.constant 0 : i32
    %c0_i32_1 = arith.constant 0 : i32
    return %c0_i32, %c0_i32_0 : i32, i32
  }
  func.func @transform_4(%arg0: i32) -> (i32, i32) {
    %c0_i32 = arith.constant 0 : i32
    %c0_i32_0 = arith.constant 0 : i32
    %c0_i32_1 = arith.constant 0 : i32
    return %c0_i32, %c0_i32_0 : i32, i32
  }
  func.func @transform_5(%arg0: i32) -> (i32, i32) {
    %c0_i32 = arith.constant 0 : i32
    %c0_i32_0 = arith.constant 0 : i32
    %c0_i32_1 = arith.constant 0 : i32
    return %c0_i32, %c0_i32_0 : i32, i32
  }
  func.func @transform_6(%arg0: i32) -> (i32, i32) {
    %c0_i32 = arith.constant 0 : i32
    %c0_i32_0 = arith.constant 0 : i32
    %c0_i32_1 = arith.constant 0 : i32
    return %c0_i32, %c0_i32_0 : i32, i32
  }
  func.func @transform_7(%arg0: i32) -> (i32, i32) {
    %c0_i32 = arith.constant 0 : i32
    %c0_i32_0 = arith.constant 0 : i32
    %c0_i32_1 = arith.constant 0 : i32
    return %c0_i32, %c0_i32_0 : i32, i32
  }
  func.func @transform_8(%arg0: i32) -> (i32, i32) {
    %c0_i32 = arith.constant 0 : i32
    %c0_i32_0 = arith.constant 0 : i32
    %c0_i32_1 = arith.constant 0 : i32
    return %c0_i32, %c0_i32_0 : i32, i32
  }
  func.func @transform_9(%arg0: i32) -> (i32, i32) {
    %c0_i32 = arith.constant 0 : i32
    %c0_i32_0 = arith.constant 0 : i32
    %c0_i32_1 = arith.constant 0 : i32
    return %c0_i32, %c0_i32_0 : i32, i32
  }
  func.func @transform_10(%arg0: i32) -> (i32, i32) {
    %c0_i32 = arith.constant 0 : i32
    %c0_i32_0 = arith.constant 0 : i32
    %c0_i32_1 = arith.constant 0 : i32
    return %c0_i32, %c0_i32_0 : i32, i32
  }
  func.func @transform_11(%arg0: i32) -> (i32, i32) {
    %c0_i32 = arith.constant 0 : i32
    %c0_i32_0 = arith.constant 0 : i32
    %c0_i32_1 = arith.constant 0 : i32
    return %c0_i32, %c0_i32_0 : i32, i32
  }
  func.func @transform_12(%arg0: i32) -> (i32, i32) {
    %c0_i32 = arith.constant 0 : i32
    %c0_i32_0 = arith.constant 0 : i32
    %c0_i32_1 = arith.constant 0 : i32
    return %c0_i32, %c0_i32_0 : i32, i32
  }
  func.func @transform_13(%arg0: i32) -> (i32, i32) {
    %c0_i32 = arith.constant 0 : i32
    %c0_i32_0 = arith.constant 0 : i32
    %c0_i32_1 = arith.constant 0 : i32
    return %c0_i32, %c0_i32_0 : i32, i32
  }
  func.func @transform_14(%arg0: i32) -> (i32, i32) {
    %c0_i32 = arith.constant 0 : i32
    %c0_i32_0 = arith.constant 0 : i32
    %c0_i32_1 = arith.constant 0 : i32
    return %c0_i32, %c0_i32_0 : i32, i32
  }
  func.func @transform_15(%arg0: i32) -> (i32, i32) {
    %c0_i32 = arith.constant 0 : i32
    %c0_i32_0 = arith.constant 0 : i32
    %c0_i32_1 = arith.constant 0 : i32
    return %c0_i32, %c0_i32_0 : i32, i32
  }
  func.func @transform_16(%arg0: i32) -> (i32, i32) {
    %c0_i32 = arith.constant 0 : i32
    %c0_i32_0 = arith.constant 0 : i32
    %c0_i32_1 = arith.constant 0 : i32
    return %c0_i32, %c0_i32_0 : i32, i32
  }
  func.func @transform_17(%arg0: i32) -> (i32, i32) {
    %c0_i32 = arith.constant 0 : i32
    %c0_i32_0 = arith.constant 0 : i32
    %c0_i32_1 = arith.constant 0 : i32
    return %c0_i32, %c0_i32_0 : i32, i32
  }
  func.func @transform_18(%arg0: i32) -> (i32, i32) {
    %c0_i32 = arith.constant 0 : i32
    %c0_i32_0 = arith.constant 0 : i32
    %c0_i32_1 = arith.constant 0 : i32
    return %c0_i32, %c0_i32_0 : i32, i32
  }
  func.func @transform_19(%arg0: i32) -> (i32, i32) {
    %c0_i32 = arith.constant 0 : i32
    %c0_i32_0 = arith.constant 0 : i32
    %c0_i32_1 = arith.constant 0 : i32
    return %c0_i32, %c0_i32_0 : i32, i32
  }
  func.func @transform_20(%arg0: i32) -> (i32, i32) {
    %c0_i32 = arith.constant 0 : i32
    %c0_i32_0 = arith.constant 0 : i32
    %c0_i32_1 = arith.constant 0 : i32
    return %c0_i32, %c0_i32_0 : i32, i32
  }
  func.func @transform_21(%arg0: i32) -> (i32, i32) {
    %c0_i32 = arith.constant 0 : i32
    %c0_i32_0 = arith.constant 0 : i32
    %c0_i32_1 = arith.constant 0 : i32
    return %c0_i32, %c0_i32_0 : i32, i32
  }
  func.func @transform_22(%arg0: i32) -> (i32, i32) {
    %c0_i32 = arith.constant 0 : i32
    %c0_i32_0 = arith.constant 0 : i32
    %c0_i32_1 = arith.constant 0 : i32
    return %c0_i32, %c0_i32_0 : i32, i32
  }
  func.func @transform_23(%arg0: i32) -> (i32, i32) {
    %c0_i32 = arith.constant 0 : i32
    %c0_i32_0 = arith.constant 0 : i32
    %c0_i32_1 = arith.constant 0 : i32
    return %c0_i32, %c0_i32_0 : i32, i32
  }
  func.func @transform_24(%arg0: i32) -> (i32, i32) {
    %c0_i32 = arith.constant 0 : i32
    %c0_i32_0 = arith.constant 0 : i32
    %c0_i32_1 = arith.constant 0 : i32
    return %c0_i32, %c0_i32_0 : i32, i32
  }
  func.func @transform_25(%arg0: i32) -> (i32, i32) {
    %c0_i32 = arith.constant 0 : i32
    %c0_i32_0 = arith.constant 0 : i32
    %c0_i32_1 = arith.constant 0 : i32
    return %c0_i32, %c0_i32_0 : i32, i32
  }
  func.func @transform_26(%arg0: i32) -> (i32, i32) {
    %c0_i32 = arith.constant 0 : i32
    %c0_i32_0 = arith.constant 0 : i32
    %c0_i32_1 = arith.constant 0 : i32
    return %c0_i32, %c0_i32_0 : i32, i32
  }
}

</mosaic_0001>

<bundles_post_ra>
// kernel: tpu_custom_call.1
= control target key start
LH: loop header
LB: loop body
LE: loop exit
PB: predicated region body
PF: predicated region fallthrough
CT: control target
= control target key end

     0   :  { %s6368_s0 = inlined_call_operand.hbm [shape: f32[8,2,8], index: 0, kind: input, shape index: {}]   ;;  %s6369_s1 = inlined_call_operand.hbm [shape: f32[40,128], index: 1, kind: input, shape index: {}]   ;;  %s6370_s2 = inlined_call_operand.hbm [shape: f32[1,128], index: 2, kind: input, shape index: {}]   ;;  %s6371_s3 = inlined_call_operand.vmem [shape: f32[64,128], index: 3, kind: input, shape index: {}]   ;;  %s6372_s4 = inlined_call_operand.hbm [shape: f32[1,128], index: 4, kind: input, shape index: {}]   ;;  %s6373_s5 = inlined_call_operand.hbm [shape: f32[64,128], index: 5, kind: input, shape index: {}]   ;;  %s6374_s6 = inlined_call_operand.hbm [shape: f32[1,128], index: 6, kind: input, shape index: {}]   ;;  %s6375_s7 = inlined_call_operand.hbm [shape: f32[2,8], index: 7, kind: input, shape index: {}]   ;;  %s6376_s8 = inlined_call_operand.hbm [shape: f32[8,32], index: 8, kind: input, shape index: {}]   ;;  %s6377_s9 = inlined_call_operand.hbm [shape: f32[1,32], index: 9, kind: input, shape index: {}]   ;;  %s6378_s10 = inlined_call_operand.hbm [shape: f32[32,32], index: 10, kind: input, shape index: {}]   ;;  %s6379_s11 = inlined_call_operand.hbm [shape: f32[1,32], index: 11, kind: input, shape index: {}]   ;;  %s6380_s12 = inlined_call_operand.hbm [shape: f32[32,32], index: 12, kind: input, shape index: {}]   ;;  %s6381_s13 = inlined_call_operand.hbm [shape: f32[1,32], index: 13, kind: input, shape index: {}]   ;;  %s6382_s14 = inlined_call_operand.vmem [shape: f32[64,32], index: 14, kind: input, shape index: {}]   ;;  %s6383_s15 = inlined_call_operand.hbm [shape: f32[1,32], index: 15, kind: input, shape index: {}]   ;;  %s6384_s16 = inlined_call_operand.hbm [shape: f32[32,32], index: 16, kind: input, shape index: {}]   ;;  %s6385_s17 = inlined_call_operand.hbm [shape: f32[1,32], index: 17, kind: input, shape index: {}]   ;;  %s6386_s18 = inlined_call_operand.hbm [shape: f32[32,32], index: 18, kind: input, shape index: {}]   ;;  %s6387_s19 = inlined_call_operand.vmem [shape: f32[1,32], index: 19, kind: input, shape index: {}]   ;;  %s6388_s20 = inlined_call_operand.hbm [shape: f32[32,64], index: 20, kind: input, shape index: {}]   ;;  %s6389_s21 = inlined_call_operand.vmem [shape: f32[1,64], index: 21, kind: input, shape index: {}]   ;;  %s6390_s22 = inlined_call_operand.vmem [shape: f32[64,64], index: 22, kind: input, shape index: {}]   ;;  %s6391_s23 = inlined_call_operand.vmem [shape: f32[1,64], index: 23, kind: input, shape index: {}]   ;;  %s6392_s24 = inlined_call_operand.hbm [shape: f32[64,128], index: 24, kind: input, shape index: {}]   ;;  %s6393_s25 = inlined_call_operand.vmem [shape: f32[1,128], index: 25, kind: input, shape index: {}]   ;;  %s6394_s26 = inlined_call_operand.hbm [shape: f32[2,128], index: 26, kind: output, shape index: {}]  }
   0x1   :  { %6398 = sst [smem:[#allocation44_spill]] %s6368_s0 }
   0x2   :  { %6399 = sst [smem:[#allocation45_spill]] %s6369_s1 }
   0x3   :  { %6400 = sst [smem:[#allocation46_spill]] %s6370_s2 }
   0x4   :  { %6401 = sst [smem:[#allocation47_spill]] %s6371_s3 }
   0x5   :  { %6402 = sst [smem:[#allocation48_spill]] %s6372_s4 }
   0x6   :  { %6403 = sst [smem:[#allocation49_spill]] %s6373_s5 }
   0x7   :  { %6404 = sst [smem:[#allocation50_spill]] %s6374_s6 }
   0x8   :  { %6405 = sst [smem:[#allocation51_spill]] %s6375_s7 }
   0x9   :  { %6406 = sst [smem:[#allocation52_spill]] %s6376_s8 }
   0xa   :  { %6407 = sst [smem:[#allocation53_spill]] %s6377_s9 }
   0xb   :  { %6408 = sst [smem:[#allocation54_spill]] %s6378_s10 }
   0xc   :  { %31 = vsyncpa [#allocation3], 0 }
   0xd   :  { %32 = vsyncpa [#allocation6], 0 }
   0xe   :  { %33 = vsyncpa [#allocation9], 0 }
   0xf   :  { %34 = vsyncpa [#allocation12], 0 }
  0x10   :  { %35 = vsyncpa [#allocation15], 0 }
  0x11   :  { %36 = vsyncpa [#allocation18], 0 }
  0x12   :  { %37 = vsyncpa [#allocation21], 0 }
  0x13   :  { %38 = vsyncpa [#allocation24], 0 }
  0x14   :  { %39 = vsyncpa [#allocation27], 0 }
  0x15   :  { %40 = vsyncpa [#allocation30], 0 }
  0x16   :  { %41 = vsyncpa [#allocation4], 0  ;;  %s5192_s27 = smov [#allocation5]  }
  0x17   :  { %s59_s3 = sshll.u32 %s5192_s27, 4  ;;  %s60_s3 = int_to_ptr.vmem [resolvable:$true] %s59_s3 }
  0x18   :  { %s4778_s7 = scalar_lea.vmem %s60_s3, 640  ;;  %p4783_p1 = scmp.lt.s32.totalorder %s60_s3, %s60_s3 }
  0x19   :  { %p4779_p0 = scmp.ne.s32.totalorder %s60_s3, %s4778_s7  ;;  %p4784_p2 = scmp.lt.s32.totalorder %s4778_s7, %s4778_s7 }
  0x1b   :  { %p4785_p3 = por %p4784_p2, %p4783_p1 }
  0x1d   :  { %p4786_p4 = pnand %p4785_p3, %p4779_p0 }
  0x1f   :  { %4789 = shalt.err (!%p4786_p4)
}
  0x20   :  { %s6396_s28 = smov 128   ;;  %s5194_s8 = smov 8  }
  0x21   :  { %s6409_s0 = sld [smem:[#allocation45_spill]]  ;;  %s5195_s9 = smov [#allocation8]  }
  0x22   :  { %s84_s30 = sshll.u32 %s5195_s9, 4  ;;  %s5196_s2 = smov [#allocation11]   ;;  %s85_s30 = int_to_ptr.vmem [resolvable:$true] %s84_s30 }
  0x23   :  { %s106_s5 = sshll.u32 %s5196_s2, 4  ;;  %s4798_s10 = scalar_lea.vmem %s85_s30, 16  ;;  %s107_s5 = int_to_ptr.vmem [resolvable:$true] %s106_s5 }
  0x24   :  { %p4799_p5 = scmp.ne.s32.totalorder %s85_s30, %s4798_s10  ;;  %s4802_s6 = scalar_lea.vmem %s85_s30, 32 }
  0x25   :  { %p4803_p6 = scmp.lt.s32.totalorder %s85_s30, %s85_s30  ;;  %p4804_p7 = scmp.lt.s32.totalorder %s4802_s6, %s4798_s10 }
  0x27   :  { %65 = dma.hbm_to_vmem [thread:$0]  %s6409_s0, 640, %s60_s3, [#allocation6], %s6396_s28, %s6396_s28, %s5194_s8  }
  0x28   :  { %p4805_p8 = por %p4804_p7, %p4803_p6 }
  0x2a   :  { %p4806_p9 = pnand %p4805_p8, %p4799_p5 }
  0x2c   :  { %4809 = shalt.err (!%p4806_p9)
}
  0x2d   :  { %s6410_s7 = sld [smem:[#allocation48_spill]]  ;;  %s4818_s4 = scalar_lea.vmem %s107_s5, 16 }
  0x2e   :  { %p4819_p10 = scmp.ne.s32.totalorder %s107_s5, %s4818_s4  ;;  %s4822_s3 = scalar_lea.vmem %s107_s5, 32 }
  0x2f   :  { %p4823_p11 = scmp.lt.s32.totalorder %s107_s5, %s107_s5  ;;  %p4824_p12 = scmp.lt.s32.totalorder %s4822_s3, %s4818_s4 }
  0x31   :  { %p4825_p13 = por %p4824_p12, %p4823_p11 }
  0x33   :  { %87 = dma.hbm_to_vmem [thread:$0]  %s6410_s7, 16, %s85_s30, [#allocation9]  }
  0x34   :  { %p4826_p0 = pnand %p4825_p13, %p4819_p10 }
  0x36   :  { %4829 = shalt.err (!%p4826_p0)
}
  0x37   :  { %s6411_s9 = sld [smem:[#allocation50_spill]]  ;;  %s5197_s2 = smov [#allocation14]  }
  0x38   :  { %s126_s10 = sshll.u32 %s5197_s2, 4  ;;  %s5198_s6 = smov [#allocation17]   ;;  %s127_s10 = int_to_ptr.vmem [resolvable:$true] %s126_s10 }
  0x39   :  { %s145_s28 = sshll.u32 %s5198_s6, 4  ;;  %s4838_s1 = scalar_lea.vmem %s127_s10, 128  ;;  %s146_s28 = int_to_ptr.vmem [resolvable:$true] %s145_s28 }
  0x3a   :  { %p4839_p1 = scmp.ne.s32.totalorder %s127_s10, %s4838_s1  ;;  %p4843_p2 = scmp.lt.s32.totalorder %s127_s10, %s127_s10 }
  0x3b   :  { %p4844_p3 = scmp.lt.s32.totalorder %s4838_s1, %s4838_s1 }
  0x3d   :  { %109 = dma.hbm_to_vmem [thread:$0]  %s6411_s9, 16, %s107_s5, [#allocation12]  }
  0x3e   :  { %p4845_p4 = por %p4844_p3, %p4843_p2 }
  0x40   :  { %p4846_p5 = pnand %p4845_p4, %p4839_p1 }
  0x42   :  { %4849 = shalt.err (!%p4846_p5)
}
  0x43   :  { %s6412_s7 = sld [smem:[#allocation52_spill]]  ;;  %s4858_s4 = scalar_lea.vmem %s146_s28, 512 }
  0x44   :  { %p4859_p6 = scmp.ne.s32.totalorder %s146_s28, %s4858_s4  ;;  %p4863_p7 = scmp.lt.s32.totalorder %s146_s28, %s146_s28 }
  0x45   :  { %p4864_p8 = scmp.lt.s32.totalorder %s4858_s4, %s4858_s4 }
  0x47   :  { %p4865_p9 = por %p4864_p8, %p4863_p7 }
  0x49   :  { %129 = dma.hbm_to_vmem [thread:$0]  %s6412_s7, 128, %s127_s10, [#allocation15]  }
  0x4a   :  { %p4866_p10 = pnand %p4865_p9, %p4859_p6 }
  0x4c   :  { %4869 = shalt.err (!%p4866_p10)
}
  0x4d   :  { %s6413_s5 = smov 128   ;;  %s6414_s0 = sld [smem:[#allocation54_spill]] }
  0x4e   :  { %s5199_s9 = smov [#allocation20]   ;;  %s5200_s6 = smov [#allocation23]  }
  0x4f   :  { %s167_s2 = sshll.u32 %s5199_s9, 4  ;;  %s192_s10 = sshll.u32 %s5200_s6, 4  ;;  %s168_s2 = int_to_ptr.vmem [resolvable:$true] %s167_s2  ;;  %s193_s10 = int_to_ptr.vmem [resolvable:$true] %s192_s10 }
  0x50   :  { %s4878_s1 = scalar_lea.vmem %s168_s2, 512  ;;  %p4883_p12 = scmp.lt.s32.totalorder %s168_s2, %s168_s2 }
  0x51   :  { %p4879_p11 = scmp.ne.s32.totalorder %s168_s2, %s4878_s1  ;;  %p4884_p13 = scmp.lt.s32.totalorder %s4878_s1, %s4878_s1 }
  0x53   :  { %151 = dma.hbm_to_vmem [thread:$0]  %s6414_s0, 512, %s146_s28, [#allocation18], %s6413_s5, %s6413_s5, %s5194_s8  }
  0x54   :  { %p4885_p0 = por %p4884_p13, %p4883_p12 }
  0x56   :  { %p4886_p1 = pnand %p4885_p0, %p4879_p11 }
  0x58   :  { %4889 = shalt.err (!%p4886_p1)
}
  0x59   :  { %173 = dma.hbm_to_vmem [thread:$0]  %s6380_s12, 512, %s168_s2, [#allocation21], %s6413_s5, %s6413_s5, %s5194_s8  }
  0x5a   :  { %s4898_s28 = scalar_lea.vmem %s193_s10, 16  ;;  %s4902_s7 = scalar_lea.vmem %s193_s10, 32 }
  0x5b   :  { %p4899_p2 = scmp.ne.s32.totalorder %s193_s10, %s4898_s28  ;;  %p4903_p3 = scmp.lt.s32.totalorder %s193_s10, %s193_s10 }
  0x5c   :  { %p4904_p4 = scmp.lt.s32.totalorder %s4902_s7, %s4898_s28 }
  0x5e   :  { %p4905_p5 = por %p4904_p4, %p4903_p3 }
  0x60   :  { %p4906_p6 = pnand %p4905_p5, %p4899_p2 }
  0x62   :  { %4909 = shalt.err (!%p4906_p6)
}
  0x63   :  { %195 = dma.hbm_to_vmem [thread:$0]  %s6383_s15, 16, %s193_s10, [#allocation24]  }
  0x64   :  { %s5201_s29 = smov [#allocation26]   ;;  %s5202_s9 = smov [#allocation29]  }
  0x65   :  { %s214_s0 = sshll.u32 %s5201_s29, 4  ;;  %s237_s6 = sshll.u32 %s5202_s9, 4  ;;  %s215_s0 = int_to_ptr.vmem [resolvable:$true] %s214_s0  ;;  %s238_s6 = int_to_ptr.vmem [resolvable:$true] %s237_s6 }
  0x66   :  { %s4918_s1 = scalar_lea.vmem %s215_s0, 16  ;;  %s4922_s12 = scalar_lea.vmem %s215_s0, 32 }
  0x67   :  { %p4919_p7 = scmp.ne.s32.totalorder %s215_s0, %s4918_s1  ;;  %p4923_p8 = scmp.lt.s32.totalorder %s215_s0, %s215_s0 }
  0x68   :  { %p4924_p9 = scmp.lt.s32.totalorder %s4922_s12, %s4918_s1 }
  0x6a   :  { %p4925_p10 = por %p4924_p9, %p4923_p8 }
  0x6c   :  { %p4926_p11 = pnand %p4925_p10, %p4919_p7 }
  0x6e   :  { %4929 = shalt.err (!%p4926_p11)
}
  0x6f   :  { %217 = dma.hbm_to_vmem [thread:$0]  %s6385_s17, 16, %s215_s0, [#allocation27]  }
  0x70   :  { %s4938_s27 = scalar_lea.vmem %s238_s6, 512  ;;  %p4943_p13 = scmp.lt.s32.totalorder %s238_s6, %s238_s6 }
  0x71   :  { %p4939_p12 = scmp.ne.s32.totalorder %s238_s6, %s4938_s27  ;;  %p4944_p0 = scmp.lt.s32.totalorder %s4938_s27, %s4938_s27 }
  0x73   :  { %p4945_p1 = por %p4944_p0, %p4943_p13 }
  0x75   :  { %p4946_p2 = pnand %p4945_p1, %p4939_p12 }
  0x77   :  { %4949 = shalt.err (!%p4946_p2)
}
  0x78   :  { %243 = dma.hbm_to_vmem [thread:$0]  %s6388_s20, 512, %s238_s6, [#allocation30], %s6413_s5, %s6413_s5, %s5194_s8  }
  0x79   :  { %s5203_s28 = smov [#allocation2]  }
  0x7a   :  { %s47_s7 = sshll.u32 %s5203_s28, 4  ;;  %s48_s7 = int_to_ptr.vmem [resolvable:$true] %s47_s7 }
  0x7b   :  { %s4958_s4 = scalar_lea.vmem %s48_s7, 256  ;;  %p4963_p4 = scmp.lt.s32.totalorder %s48_s7, %s48_s7 }
  0x7c   :  { %p4959_p3 = scmp.ne.s32.totalorder %s48_s7, %s4958_s4  ;;  %p4964_p5 = scmp.lt.s32.totalorder %s4958_s4, %s4958_s4 }
  0x7e   :  { %p4965_p6 = por %p4964_p5, %p4963_p4 }
  0x80   :  { %p4966_p7 = pnand %p4965_p6, %p4959_p3 }
  0x82   :  { %4969 = shalt.err (!%p4966_p7)
}
  0x83   :  { %s5204_s17 = smov 32   ;;  %s5205_s3 = smov 2  }
  0x84   :  { %s6415_s9 = sld [smem:[#allocation44_spill]]  ;;  %s5206_s1 = smov [#allocation7]  }
  0x85   :  { %s72_s20 = sshll.u32 %s5206_s1, 4  ;;  %s5207_s6 = smov [#allocation10]   ;;  %s73_s20 = int_to_ptr.vmem [resolvable:$true] %s72_s20 }
  0x86   :  { %s93_s12 = sshll.u32 %s5207_s6, 4  ;;  %s4978_s2 = scalar_lea.vmem %s73_s20, 16  ;;  %s94_s12 = int_to_ptr.vmem [resolvable:$true] %s93_s12 }
  0x87   :  { %p4979_p8 = scmp.ne.s32.totalorder %s73_s20, %s4978_s2  ;;  %s4982_s30 = scalar_lea.vmem %s73_s20, 32 }
  0x88   :  { %p4983_p9 = scmp.lt.s32.totalorder %s73_s20, %s73_s20  ;;  %p4984_p10 = scmp.lt.s32.totalorder %s4982_s30, %s4978_s2 }
  0x8a   :  { %53 = dma.hbm_to_vmem [thread:$0]  %s6415_s9, 256, %s48_s7, [#allocation3], %s5204_s17, %s5204_s17, %s5205_s3  }
  0x8b   :  { %p4985_p11 = por %p4984_p10, %p4983_p9 }
  0x8d   :  { %p4986_p12 = pnand %p4985_p11, %p4979_p8 }
  0x8f   :  { %4989 = shalt.err (!%p4986_p12)
}
  0x90   :  { %s6416_s10 = sld [smem:[#allocation46_spill]]  ;;  %s4998_s28 = scalar_lea.vmem %s94_s12, 1024 }
  0x91   :  { %p4999_p13 = scmp.ne.s32.totalorder %s94_s12, %s4998_s28  ;;  %p5003_p0 = scmp.lt.s32.totalorder %s94_s12, %s94_s12 }
  0x92   :  { %p5004_p1 = scmp.lt.s32.totalorder %s4998_s28, %s4998_s28 }
  0x94   :  { %p5005_p2 = por %p5004_p1, %p5003_p0 }
  0x96   :  { %75 = dma.hbm_to_vmem [thread:$0]  %s6416_s10, 16, %s73_s20, [#allocation6]  }
  0x97   :  { %p5006_p3 = pnand %p5005_p2, %p4999_p13 }
  0x99   :  { %5009 = shalt.err (!%p5006_p3)
}
  0x9a   :  { %s6417_s3 = sld [smem:[#allocation49_spill]]  ;;  %s5208_s29 = smov [#allocation13]  }
  0x9b   :  { %s116_s0 = sshll.u32 %s5208_s29, 4  ;;  %s5209_s9 = smov [#allocation16]   ;;  %s117_s0 = int_to_ptr.vmem [resolvable:$true] %s116_s0 }
  0x9c   :  { %s136_s1 = sshll.u32 %s5209_s9, 4  ;;  %s5018_s20 = scalar_lea.vmem %s117_s0, 32  ;;  %s137_s1 = int_to_ptr.vmem [resolvable:$true] %s136_s1 }
  0x9d   :  { %p5019_p4 = scmp.ne.s32.totalorder %s117_s0, %s5018_s20  ;;  %p5023_p5 = scmp.lt.s32.totalorder %s117_s0, %s117_s0 }
  0x9e   :  { %p5024_p6 = scmp.lt.s32.totalorder %s5018_s20, %s5018_s20 }
  0xa0   :  { %99 = dma.hbm_to_vmem [thread:$0]  %s6417_s3, 1024, %s94_s12, [#allocation9], %s6413_s5, %s6413_s5, %s5194_s8  }
  0xa1   :  { %p5025_p7 = por %p5024_p6, %p5023_p5 }
  0xa3   :  { %p5026_p8 = pnand %p5025_p7, %p5019_p4 }
  0xa5   :  { %5029 = shalt.err (!%p5026_p8)
}
  0xa6   :  { %s6418_s30 = sld [smem:[#allocation51_spill]]  ;;  %s5038_s27 = scalar_lea.vmem %s137_s1, 16 }
  0xa7   :  { %p5039_p9 = scmp.ne.s32.totalorder %s137_s1, %s5038_s27  ;;  %s5042_s12 = scalar_lea.vmem %s137_s1, 32 }
  0xa8   :  { %p5043_p10 = scmp.lt.s32.totalorder %s137_s1, %s137_s1  ;;  %p5044_p11 = scmp.lt.s32.totalorder %s5042_s12, %s5038_s27 }
  0xaa   :  { %p5045_p12 = por %p5044_p11, %p5043_p10 }
  0xac   :  { %119 = dma.hbm_to_vmem [thread:$0]  %s6418_s30, 32, %s117_s0, [#allocation12]  }
  0xad   :  { %p5046_p13 = pnand %p5045_p12, %p5039_p9 }
  0xaf   :  { %5049 = shalt.err (!%p5046_p13)
}
  0xb0   :  { %s6419_s28 = sld [smem:[#allocation53_spill]]  ;;  %s5210_s7 = smov [#allocation19]  }
  0xb1   :  { %s158_s4 = sshll.u32 %s5210_s7, 4  ;;  %s5211_s3 = smov [#allocation22]   ;;  %s159_s4 = int_to_ptr.vmem [resolvable:$true] %s158_s4 }
  0xb2   :  { %s180_s29 = sshll.u32 %s5211_s3, 4  ;;  %s5058_s9 = scalar_lea.vmem %s159_s4, 16  ;;  %s181_s29 = int_to_ptr.vmem [resolvable:$true] %s180_s29 }
  0xb3   :  { %p5059_p0 = scmp.ne.s32.totalorder %s159_s4, %s5058_s9  ;;  %s5062_s0 = scalar_lea.vmem %s159_s4, 32 }
  0xb4   :  { %p5063_p1 = scmp.lt.s32.totalorder %s159_s4, %s159_s4  ;;  %p5064_p2 = scmp.lt.s32.totalorder %s5062_s0, %s5058_s9 }
  0xb6   :  { %139 = dma.hbm_to_vmem [thread:$0]  %s6419_s28, 16, %s137_s1, [#allocation15]  }
  0xb7   :  { %p5065_p3 = por %p5064_p2, %p5063_p1 }
  0xb9   :  { %p5066_p4 = pnand %p5065_p3, %p5059_p0 }
  0xbb   :  { %5069 = shalt.err (!%p5066_p4)
}
  0xbc   :  { %161 = dma.hbm_to_vmem [thread:$0]  %s6379_s11, 16, %s159_s4, [#allocation18]  }
  0xbd   :  { %s5078_s2 = scalar_lea.vmem %s181_s29, 16  ;;  %s5082_s1 = scalar_lea.vmem %s181_s29, 32 }
  0xbe   :  { %p5079_p5 = scmp.ne.s32.totalorder %s181_s29, %s5078_s2  ;;  %p5083_p6 = scmp.lt.s32.totalorder %s181_s29, %s181_s29 }
  0xbf   :  { %p5084_p7 = scmp.lt.s32.totalorder %s5082_s1, %s5078_s2 }
  0xc1   :  { %p5085_p8 = por %p5084_p7, %p5083_p6 }
  0xc3   :  { %p5086_p9 = pnand %p5085_p8, %p5079_p5 }
  0xc5   :  { %5089 = shalt.err (!%p5086_p9)
}
  0xc6   :  { %183 = dma.hbm_to_vmem [thread:$0]  %s6381_s13, 16, %s181_s29, [#allocation21]  }
  0xc7   :  { %s5212_s12 = smov [#allocation25]   ;;  %s5213_s10 = smov [#allocation28]  }
  0xc8   :  { %s201_s15 = sshll.u32 %s5212_s12, 4  ;;  %s223_s28 = sshll.u32 %s5213_s10, 4  ;;  %s202_s15 = int_to_ptr.vmem [resolvable:$true] %s201_s15  ;;  %s224_s28 = int_to_ptr.vmem [resolvable:$true] %s223_s28 }
  0xc9   :  { %s5098_s7 = scalar_lea.vmem %s202_s15, 512  ;;  %p5103_p11 = scmp.lt.s32.totalorder %s202_s15, %s202_s15 }
  0xca   :  { %p5099_p10 = scmp.ne.s32.totalorder %s202_s15, %s5098_s7  ;;  %p5104_p12 = scmp.lt.s32.totalorder %s5098_s7, %s5098_s7 }
  0xcc   :  { %p5105_p13 = por %p5104_p12, %p5103_p11 }
  0xce   :  { %p5106_p0 = pnand %p5105_p13, %p5099_p10 }
  0xd0   :  { %5109 = shalt.err (!%p5106_p0)
}
  0xd1   :  { %207 = dma.hbm_to_vmem [thread:$0]  %s6384_s16, 512, %s202_s15, [#allocation24], %s6413_s5, %s6413_s5, %s5194_s8  }
  0xd2   :  { %s5118_s13 = scalar_lea.vmem %s224_s28, 512  ;;  %p5123_p2 = scmp.lt.s32.totalorder %s224_s28, %s224_s28 }
  0xd3   :  { %p5119_p1 = scmp.ne.s32.totalorder %s224_s28, %s5118_s13  ;;  %p5124_p3 = scmp.lt.s32.totalorder %s5118_s13, %s5118_s13 }
  0xd5   :  { %p5125_p4 = por %p5124_p3, %p5123_p2 }
  0xd7   :  { %p5126_p5 = pnand %p5125_p4, %p5119_p1 }
  0xd9   :  { %5129 = shalt.err (!%p5126_p5)
}
  0xda   :  { %229 = dma.hbm_to_vmem [thread:$0]  %s6386_s18, 512, %s224_s28, [#allocation27], %s6413_s5, %s6413_s5, %s5194_s8  }
  0xdb   :  { %s5214_s9 = smov [#allocation31]  }
  0xdc   :  { %s255_s0 = sshll.u32 %s5214_s9, 4  ;;  %s256_s0 = int_to_ptr.vmem [resolvable:$true] %s255_s0 }
  0xdd   :  { %s5138_s20 = scalar_lea.vmem %s256_s0, 1024  ;;  %p5143_p7 = scmp.lt.s32.totalorder %s256_s0, %s256_s0 }
  0xde   :  { %p5139_p6 = scmp.ne.s32.totalorder %s256_s0, %s5138_s20  ;;  %p5144_p8 = scmp.lt.s32.totalorder %s5138_s20, %s5138_s20 }
  0xe0   :  { %p5145_p9 = por %p5144_p8, %p5143_p7 }
  0xe2   :  { %p5146_p10 = pnand %p5145_p9, %p5139_p6 }
  0xe4   :  { %5149 = shalt.err (!%p5146_p10)
}
  0xe5   :  { %261 = dma.hbm_to_vmem [thread:$0]  %s6392_s24, 1024, %s256_s0, [#allocation30], %s6413_s5, %s6413_s5, %s5194_s8  }
  0xe6   :  { %5170 = dma.done.wait [#allocation3], 256  }
  0xe7   :  { %5171 = vsyncadd [#allocation3], 4294967040 }
  0xe8   :  { %5172 = dma.done.wait [#allocation6], 656  }
  0xe9   :  { %5173 = vsyncadd [#allocation6], 4294966640 }
  0xea   :  { %5174 = dma.done.wait [#allocation9], 1040  }
  0xeb   :  { %5175 = vsyncadd [#allocation9], 4294966256 }
  0xec   :  { %5176 = dma.done.wait [#allocation12], 48  }
  0xed   :  { %5177 = vsyncadd [#allocation12], 4294967248 }
  0xee   :  { %5178 = dma.done.wait [#allocation15], 144  }
  0xef   :  { %5179 = vsyncadd [#allocation15], 4294967152 }
  0xf0   :  { %5180 = dma.done.wait [#allocation18], 528  }
  0xf1   :  { %5181 = vsyncadd [#allocation18], 4294966768 }
  0xf2   :  { %5182 = dma.done.wait [#allocation21], 528  }
  0xf3   :  { %5183 = vsyncadd [#allocation21], 4294966768 }
  0xf4   :  { %5184 = dma.done.wait [#allocation24], 528  }
  0xf5   :  { %5185 = vsyncadd [#allocation24], 4294966768 }
  0xf6   :  { %5186 = dma.done.wait [#allocation27], 528  }
  0xf7   :  { %5187 = vsyncadd [#allocation27], 4294966768 }
  0xf8   :  { %5188 = dma.done.wait [#allocation30], 1536  }
  0xf9   :  { %5189 = vsyncadd [#allocation30], 4294965760  ;;  %v5215_v0 = vmov 0.0   ;;  %vm5216_vm0 = vmmov 0   ;;  %vm330_vm1 = vcmask 64512   ;;  %v322_v1 = vld [vmem:[#allocation14] sm:$0xff] }
  0xfa   :  { %4001 = vmatprep.subr.mxu0 %v5215_v0  ;;  %4003 = vmatprep.mubr.msk.f32.mxu0 %vm5216_vm0, %v5215_v0  ;;  %v321_v2 = vld [vmem:[#allocation13] sm:$0x3]  ;;  %v410_v3 = vld [vmem:[#allocation17 + $0x18] sm:$0xff]  ;;  %v408_v5 = vld [vmem:[#allocation17 + $0x8] sm:$0xff]  ;;  %vm418_vm3 = vcmask 261120   ;;  %vm623_vm4 = vcmask 326656  }
  0xfb   :  { %4006 = vmatprep.subr.mxu1 %v5215_v0  ;;  %4014 = vmatprep.mubr.msk.f32.mxu1 %vm5216_vm0, %v5215_v0  ;;  %v409_v4 = vld [vmem:[#allocation17 + $0x10] sm:$0xff]  ;;  %v407_v6 = vld [vmem:[#allocation17] sm:$0xff]  ;;  %v3686_v8 = vld [vmem:[#allocation16] ss:$0 sm:$0xff]  ;;  %s5217_s18 = smov 64   ;;  %s6420_s5 = sld [smem:[#allocation47_spill]] }
  0xfc   :  { %4002 = vmatpush3.msra.mxu0 %v322_v1  ;;  %4007 = vmatpush3.msra.mxu1 %v410_v3  ;;  %v498_v7 = vld [vmem:[#allocation20 + $0x18] sm:$0xff]  ;;  %v5453_v13 = vld [vmem:[#allocation5 + $0x20] sm:$0xff]  ;;  %v5466_v17 = vld [vmem:[#allocation5 + $0x8] sm:$0xff]  ;;  %s5218_s9 = smov 40   ;;  %vm726_vm6 = vcmask 523264   ;;  %s5219_s2 = smov [#allocation32]  }
  0xfd   :  { %4004 = vmatmul.mubr.msk.f32.vlgmr.msra.gmra.mxu0 %vm330_vm1, %v321_v2  ;;  %4008 = vmatprep.subr.mxu1 %v5215_v0  ;;  %v5456_v15 = vld [vmem:[#allocation5 + $0x18] sm:$0xff]  ;;  %v5462_v16 = vld [vmem:[#allocation5 + $0x10] sm:$0xff]  ;;  %v5470_v19 = vld [vmem:[#allocation5] sm:$0xff]  ;;  %s3668_s1 = sshll.u32 %s5219_s2, 4  ;;  %s3669_s1 = int_to_ptr.vmem [resolvable:$true] %s3668_s1 }
  0xfe   :  { %4017 = vmatprep.subr.mxu0 %v5215_v0  ;;  %4025 = vmatprep.mubr.msk.f32.mxu0 %vm5216_vm0, %v5215_v0  ;;  %v621_v18 = vld [vmem:[#allocation2] sm:$0x3]  ;;  %v496_v22 = vld [vmem:[#allocation20 + $0x8] sm:$0xff]  ;;  %v495_v23 = vld [vmem:[#allocation20] sm:$0xff]  ;;  %p5155_p12 = scmp.lt.s32.totalorder %s3669_s1, %s3669_s1 }
  0xff   :  { %4009 = vmatpush3.msra.mxu1 %v409_v4  ;;  %4018 = vmatpush3.msra.mxu0 %v498_v7  ;;  %v622_v20 = vsel %vm330_vm1, %v621_v18, 0.0  ;;  %v497_v21 = vld [vmem:[#allocation20 + $0x10] sm:$0xff]  ;;  %v3688_v24 = vld [vmem:[#allocation19] ss:$0 sm:$0xff]  ;;  %v5486_v30 = vld [vmem:[#allocation7] ss:$0 sm:$0xff] }
 0x100   :  { %4010 = vmatprep.subr.mxu1 %v5215_v0  ;;  %4019 = vmatprep.subr.mxu0 %v5215_v0  ;;  %v927_v59 = vld [vmem:[#allocation2 + $0x2] sm:$0x3]  ;;  %v5573_v62 = vld [vmem:[#allocation8] ss:$0 sm:$0xff] }
 0x101   :  { %4011 = vmatpush3.msra.mxu1 %v408_v5  ;;  %4020 = vmatpush3.msra.mxu0 %v497_v21  ;;  %v5499_v46 = vld [vmem:[%s6420_s5 + $0x38] sm:$0xff]  ;;  %v5504_v47 = vld [vmem:[%s6420_s5 + $0x30] sm:$0xff]  ;;  %v5511_v48 = vld [vmem:[%s6420_s5 + $0x28] sm:$0xff] }
 0x102   :  { %4012 = vmatprep.subr.mxu1 %v5215_v0  ;;  %4021 = vmatprep.subr.mxu0 %v5215_v0  ;;  %v5518_v49 = vld [vmem:[%s6420_s5 + $0x20] sm:$0xff]  ;;  %v5525_v50 = vld [vmem:[%s6420_s5 + $0x18] sm:$0xff]  ;;  %v5532_v51 = vld [vmem:[%s6420_s5 + $0x10] sm:$0xff] }
 0x103   :  { %4013 = vmatpush3.msra.mxu1 %v407_v6  ;;  %4022 = vmatpush3.msra.mxu0 %v496_v22  ;;  %v5539_v53 = vld [vmem:[%s6420_s5 + $0x8] sm:$0xff]  ;;  %v5547_v54 = vld [vmem:[%s6420_s5] sm:$0xff] }
 0x104   :  { %4028 = vmatprep.subr.mxu1 %v5215_v0  ;;  %4023 = vmatprep.subr.mxu0 %v5215_v0 }
 0x105   :  { %4024 = vmatpush3.msra.mxu0 %v495_v23 }
 0x106   :  { %4041 = vmatprep.subr.mxu0 %v5215_v0 }
 0x1bd   :  { %v400_v9 = vpop.f32.mrf.mxu0 }
 0x1be   :  { %v401_v10 = vadd.f32 %v3686_v8, %v400_v9 }
 0x1bf   :  { %v4005_v11 = vpop.f32.mrf.mxu0 }
 0x1c0   :  { %vm404_vm2 = vcmp.gt.f32.partialorder %v401_v10, 0.0  ;;  %v405_v12 = vmul.f32 0.05, %v401_v10 }
 0x1c2   :  { %v406_v14 = vsel %vm404_vm2, %v401_v10, %v405_v12 }
 0x1c3   :  { %4015 = vmatmul.mubr.msk.f32.vlgmr.msra.gmra.mxu1 %vm418_vm3, %v406_v14 }
 0x1c4   :  { %4029 = vmatpush3.msra.mxu1 %v5453_v13  ;;  %4038 = vmatprep.mubr.msk.f32.mxu1 %vm5216_vm0, %v5215_v0 }
 0x1c5   :  { %4030 = vmatprep.subr.mxu1 %v5215_v0 }
 0x1c6   :  { %4031 = vmatpush3.msra.mxu1 %v5456_v15 }
 0x1c7   :  { %4032 = vmatprep.subr.mxu1 %v5215_v0 }
 0x1c8   :  { %4033 = vmatpush3.msra.mxu1 %v5462_v16 }
 0x1c9   :  { %4034 = vmatprep.subr.mxu1 %v5215_v0 }
 0x1ca   :  { %4035 = vmatpush3.msra.mxu1 %v5466_v17 }
 0x1cb   :  { %4036 = vmatprep.subr.mxu1 %v5215_v0 }
 0x1cc   :  { %4037 = vmatpush3.msra.mxu1 %v5470_v19 }
 0x1cd   :  { %4039 = vmatmul.mubr.msk.f32.vlgmr.msra.gmra.mxu1 %vm623_vm4, %v622_v20  ;;  %4060 = vmatprep.subr.mxu1 %v5215_v0 }
 0x1ce   :  { %4076 = vmatprep.mubr.msk.f32.mxu1 %vm5216_vm0, %v5215_v0 }
 0x283   :  { %v488_v25 = vpop.f32.mrf.mxu1 }
 0x284   :  { %v489_v26 = vadd.f32 %v3688_v24, %v488_v25 }
 0x285   :  { %v4016_v27 = vpop.f32.mrf.mxu1 }
 0x286   :  { %vm492_vm5 = vcmp.gt.f32.partialorder %v489_v26, 0.0  ;;  %v493_v28 = vmul.f32 0.05, %v489_v26 }
 0x288   :  { %v494_v29 = vsel %vm492_vm5, %v489_v26, %v493_v28 }
 0x289   :  { %4026 = vmatmul.mubr.msk.f32.vlgmr.msra.gmra.mxu0 %vm418_vm3, %v494_v29 }
 0x28a   :  { %4057 = vmatprep.mubr.msk.f32.mxu0 %vm5216_vm0, %v5215_v0  ;;  %4042 = vmatpush3.msra.mxu0 %v5499_v46 }
 0x28b   :  { %4043 = vmatprep.subr.mxu0 %v5215_v0 }
 0x28c   :  { %4044 = vmatpush3.msra.mxu0 %v5504_v47 }
 0x28d   :  { %v693_v31 = vpop.f32.mrf.mxu1  ;;  %4045 = vmatprep.subr.mxu0 %v5215_v0 }
 0x28e   :  { %v694_v32 = vadd.f32 %v5486_v30, %v693_v31  ;;  %4046 = vmatpush3.msra.mxu0 %v5511_v48 }
 0x28f   :  { %v4040_v33 = vpop.f32.mrf.mxu1  ;;  %4047 = vmatprep.subr.mxu0 %v5215_v0 }
 0x290   :  { %4554 = vtanh.f32 %v694_v32  ;;  %v3696_v35 = vmul.f32 -1.442695, %v694_v32  ;;  %4048 = vmatpush3.msra.mxu0 %v5518_v49  ;;  %v5589_v33 = vld [vmem:[#allocation10 + $0x38] sm:$0xff] }
 0x291   :  { %4049 = vmatprep.subr.mxu0 %v5215_v0  ;;  %4061 = vmatpush3.msra.mxu1 %v5589_v33 }
 0x292   :  { %4556 = vpow2.f32 %v3696_v35  ;;  %4050 = vmatpush3.msra.mxu0 %v5525_v50  ;;  %4062 = vmatprep.subr.mxu1 %v5215_v0  ;;  %v5596_v35 = vld [vmem:[#allocation10 + $0x28] sm:$0xff] }
 0x293   :  { %4051 = vmatprep.subr.mxu0 %v5215_v0 }
 0x294   :  { %4052 = vmatpush3.msra.mxu0 %v5532_v51 }
 0x295   :  { %4053 = vmatprep.subr.mxu0 %v5215_v0 }
 0x296   :  { %4054 = vmatpush3.msra.mxu0 %v5539_v53 }
 0x297   :  { %4055 = vmatprep.subr.mxu0 %v5215_v0 }
 0x298   :  { %4056 = vmatpush3.msra.mxu0 %v5547_v54 }
 0x299   :  { %4079 = vmatprep.subr.mxu0 %v5215_v0 }
 0x29d   :  { %v4555_v34 = vpop.eup %4554 }
 0x29e   :  { %706 = vrot.lane.b32.xlu0 %v4555_v34, %s5217_s18  ;;  %v5591_v34 = vld [vmem:[#allocation10 + $0x30] sm:$0xff] }
 0x29f   :  { %v4557_v36 = vpop.eup %4556  ;;  %4063 = vmatpush3.msra.mxu1 %v5591_v34 }
 0x2a0   :  { %v700_v37 = vadd.f32 1.0, %v4557_v36  ;;  %4064 = vmatprep.subr.mxu1 %v5215_v0  ;;  %v5602_v36 = vld [vmem:[#allocation10 + $0x20] sm:$0xff] }
 0x2a1   :  { %4065 = vmatpush3.msra.mxu1 %v5596_v35 }
 0x2a2   :  { %4558 = vrcp.f32 %v700_v37  ;;  %4066 = vmatprep.subr.mxu1 %v5215_v0 }
 0x2a3   :  { %4067 = vmatpush3.msra.mxu1 %v5602_v36 }
 0x2a4   :  { %4068 = vmatprep.subr.mxu1 %v5215_v0 }
 0x2af   :  { %v4559_v38 = vpop.eup %4558 }
 0x2b0   :  { %v704_v43 = vmul.f32 0.0, %v4559_v38 }
 0x310   :  { %v707_v39 = vpop.permute.xlu0 %706 }
 0x311   :  { %v709_v40 = vmul.f32 %v4559_v38, %v707_v39  ;;  %v5614_v39 = vld [vmem:[#allocation10 + $0x10] sm:$0xff] }
 0x313   :  { %711 = vrot.lane.b32.xlu0 %v709_v40, %s5204_s17  ;;  %v5620_v40 = vld [vmem:[#allocation10 + $0x8] sm:$0xff] }
 0x349   :  { %v5491_v41 = vpop.f32.mrf.mxu0 }
 0x34b   :  { %v4027_v42 = vpop.f32.mrf.mxu0 }
 0x34c   :  { %v5626_v42 = vld [vmem:[#allocation10] sm:$0xff] }
 0x385   :  { %v712_v44 = vpop.permute.xlu0 %711 }
 0x386   :  { %v5493_v45 = vadd.f32 %v712_v44, %v704_v43 }
 0x388   :  { %4560 = vtanh.f32 %v5493_v45 }
 0x395   :  { %v4561_v52 = vpop.eup %4560 }
 0x396   :  { %717 = vrot.lane.b32.xlu1 %v4561_v52, %s5217_s18 }
 0x408   :  { %v718_v55 = vpop.permute.xlu1 %717 }
 0x409   :  { %v720_v56 = vmul.f32 %v4559_v38, %v718_v55  ;;  %v5608_v38 = vld [vmem:[#allocation10 + $0x18] sm:$0xff] }
 0x40a   :  { %4069 = vmatpush3.msra.mxu1 %v5608_v38 }
 0x40b   :  { %928 = vrot.lane.b32.xlu0 %v720_v56, %s5218_s9  ;;  %722 = vrot.lane.b32.xlu1 %v720_v56, %s5204_s17 }
 0x40c   :  { %4070 = vmatprep.subr.mxu1 %v5215_v0 }
 0x40d   :  { %4071 = vmatpush3.msra.mxu1 %v5614_v39 }
 0x40e   :  { %4072 = vmatprep.subr.mxu1 %v5215_v0 }
 0x40f   :  { %4073 = vmatpush3.msra.mxu1 %v5620_v40 }
 0x410   :  { %4074 = vmatprep.subr.mxu1 %v5215_v0 }
 0x411   :  { %4075 = vmatpush3.msra.mxu1 %v5626_v42 }
 0x412   :  { %4092 = vmatprep.subr.mxu1 %v5215_v0 }
 0x47d   :  { %v723_v57 = vpop.permute.xlu1 %722  ;;  %v929_v60 = vpop.permute.xlu0 %928 }
 0x47e   :  { %v725_v58 = vsel %vm418_vm3, %v723_v57, 0.0  ;;  %v931_v61 = vsel %vm330_vm1, %v927_v59, %v929_v60  ;;  %v1241_v60 = vld [vmem:[#allocation2 + $0x4] sm:$0x3] }
 0x47f   :  { %4058 = vmatmul.mubr.msk.f32.vlgmr.msra.gmra.mxu0 %vm726_vm6, %v725_v58 }
 0x480   :  { %4080 = vmatpush3.msra.mxu0 %v5453_v13  ;;  %4089 = vmatprep.mubr.msk.f32.mxu0 %vm5216_vm0, %v5215_v0 }
 0x481   :  { %4081 = vmatprep.subr.mxu0 %v5215_v0 }
 0x482   :  { %4082 = vmatpush3.msra.mxu0 %v5456_v15 }
 0x483   :  { %4083 = vmatprep.subr.mxu0 %v5215_v0 }
 0x484   :  { %4084 = vmatpush3.msra.mxu0 %v5462_v16 }
 0x485   :  { %4085 = vmatprep.subr.mxu0 %v5215_v0 }
 0x486   :  { %4086 = vmatpush3.msra.mxu0 %v5466_v17 }
 0x487   :  { %4087 = vmatprep.subr.mxu0 %v5215_v0 }
 0x488   :  { %4088 = vmatpush3.msra.mxu0 %v5470_v19 }
 0x489   :  { %4090 = vmatmul.mubr.msk.f32.vlgmr.msra.gmra.mxu0 %vm623_vm4, %v931_v61  ;;  %4111 = vmatprep.subr.mxu0 %v5215_v0 }
 0x48a   :  { %4127 = vmatprep.mubr.msk.f32.mxu0 %vm5216_vm0, %v5215_v0  ;;  %4112 = vmatpush3.msra.mxu0 %v5589_v33 }
 0x48b   :  { %4113 = vmatprep.subr.mxu0 %v5215_v0 }
 0x48c   :  { %4114 = vmatpush3.msra.mxu0 %v5591_v34 }
 0x48d   :  { %4115 = vmatprep.subr.mxu0 %v5215_v0 }
 0x48e   :  { %4116 = vmatpush3.msra.mxu0 %v5596_v35 }
 0x48f   :  { %4117 = vmatprep.subr.mxu0 %v5215_v0 }
 0x490   :  { %4118 = vmatpush3.msra.mxu0 %v5602_v36 }
 0x491   :  { %4119 = vmatprep.subr.mxu0 %v5215_v0 }
 0x492   :  { %4120 = vmatpush3.msra.mxu0 %v5608_v38 }
 0x493   :  { %4121 = vmatprep.subr.mxu0 %v5215_v0 }
 0x494   :  { %4122 = vmatpush3.msra.mxu0 %v5614_v39 }
 0x495   :  { %4123 = vmatprep.subr.mxu0 %v5215_v0 }
 0x496   :  { %4124 = vmatpush3.msra.mxu0 %v5620_v40 }
 0x497   :  { %4125 = vmatprep.subr.mxu0 %v5215_v0 }
 0x498   :  { %4126 = vmatpush3.msra.mxu0 %v5626_v42 }
 0x499   :  { %4143 = vmatprep.subr.mxu0 %v5215_v0 }
 0x53f   :  { %v796_v63 = vpop.f32.mrf.mxu0 }
 0x540   :  { %v797_v1 = vadd.f32 %v5573_v62, %v796_v63 }
 0x541   :  { %v4059_v2 = vpop.f32.mrf.mxu0 }
 0x542   :  { %4562 = vtanh.f32 %v797_v1  ;;  %v3698_v8 = vmul.f32 -1.442695, %v797_v1  ;;  %v5696_v1 = vld [vmem:[#allocation11] ss:$0 sm:$0xff] }
 0x549   :  { %v1001_v3 = vpop.f32.mrf.mxu0 }
 0x54a   :  { %v1002_v4 = vadd.f32 %v5486_v30, %v1001_v3 }
 0x54b   :  { %v4091_v5 = vpop.f32.mrf.mxu0 }
 0x54c   :  { %4564 = vtanh.f32 %v1002_v4  ;;  %v3702_v9 = vmul.f32 -1.442695, %v1002_v4 }
 0x54d   :  { %4566 = vpow2.f32 %v3698_v8 }
 0x54e   :  { %4568 = vpow2.f32 %v3702_v9 }
 0x54f   :  { %v4563_v6 = vpop.eup %4562 }
 0x550   :  { %809 = vrot.lane.b32.xlu1 %v4563_v6, %s5217_s18 }
 0x559   :  { %v4565_v7 = vpop.eup %4564 }
 0x55a   :  { %1014 = vrot.lane.b32.xlu0 %v4565_v7, %s5217_s18  ;;  %v4567_v10 = vpop.eup %4566 }
 0x55b   :  { %v803_v11 = vadd.f32 1.0, %v4567_v10  ;;  %v4569_v12 = vpop.eup %4568 }
 0x55c   :  { %v1008_v14 = vadd.f32 1.0, %v4569_v12 }
 0x55d   :  { %4570 = vrcp.f32 %v803_v11 }
 0x55e   :  { %4572 = vrcp.f32 %v1008_v14 }
 0x56a   :  { %v4571_v18 = vpop.eup %4570 }
 0x56b   :  { %v4573_v22 = vpop.eup %4572  ;;  %v807_v25 = vmul.f32 0.0, %v4571_v18 }
 0x56c   :  { %v1012_v28 = vmul.f32 %v4573_v22, %v5493_v45 }
 0x5c2   :  { %v810_v20 = vpop.permute.xlu1 %809 }
 0x5c3   :  { %v812_v21 = vmul.f32 %v4571_v18, %v810_v20 }
 0x5c5   :  { %814 = vrot.lane.b32.xlu1 %v812_v21, %s5204_s17 }
 0x5cc   :  { %v1015_v23 = vpop.permute.xlu0 %1014 }
 0x5cd   :  { %v1017_v24 = vmul.f32 %v4573_v22, %v1015_v23 }
 0x5cf   :  { %1019 = vrot.lane.b32.xlu0 %v1017_v24, %s5204_s17 }
 0x637   :  { %v815_v26 = vpop.permute.xlu1 %814 }
 0x638   :  { %v5581_v27 = vadd.f32 %v815_v26, %v807_v25 }
 0x63a   :  { %4574 = vtanh.f32 %v5581_v27 }
 0x641   :  { %v1020_v29 = vpop.permute.xlu0 %1019 }
 0x642   :  { %v5585_v31 = vadd.f32 %v1020_v29, %v1012_v28 }
 0x644   :  { %4576 = vtanh.f32 %v5585_v31 }
 0x647   :  { %v4575_v32 = vpop.eup %4574 }
 0x648   :  { %820 = vrot.lane.b32.xlu1 %v4575_v32, %s5217_s18 }
 0x651   :  { %v4577_v37 = vpop.eup %4576 }
 0x652   :  { %1025 = vrot.lane.b32.xlu0 %v4577_v37, %s5217_s18 }
 0x6ba   :  { %v821_v43 = vpop.permute.xlu1 %820 }
 0x6bb   :  { %v823_v44 = vmul.f32 %v4571_v18, %v821_v43 }
 0x6bd   :  { %825 = vrot.lane.b32.xlu1 %v823_v44, %s5204_s17 }
 0x6c1   :  { %1033 = vrot.lane.b32.xlu1 %v823_v44, %s5217_s18 }
 0x6c4   :  { %v1026_v45 = vpop.permute.xlu0 %1025 }
 0x6c5   :  { %v1028_v52 = vmul.f32 %v4573_v22, %v1026_v45 }
 0x6c7   :  { %1030 = vrot.lane.b32.xlu0 %v1028_v52, %s5204_s17 }
 0x6cb   :  { %1242 = vrot.lane.b32.xlu0 %v1028_v52, %s5218_s9 }
 0x72f   :  { %v826_v55 = vpop.permute.xlu1 %825 }
 0x730   :  { %v828_v56 = vsel %vm418_vm3, %v826_v55, 0.0 }
 0x731   :  { %4077 = vmatmul.mubr.msk.f32.vlgmr.msra.gmra.mxu1 %vm726_vm6, %v828_v56 }
 0x732   :  { %4093 = vmatpush3.msra.mxu1 %v5499_v46  ;;  %4108 = vmatprep.mubr.msk.f32.mxu1 %vm5216_vm0, %v5215_v0 }
 0x733   :  { %4094 = vmatprep.subr.mxu1 %v5215_v0  ;;  %v1034_v58 = vpop.permute.xlu1 %1033 }
 0x734   :  { %4095 = vmatpush3.msra.mxu1 %v5504_v47 }
 0x735   :  { %4096 = vmatprep.subr.mxu1 %v5215_v0 }
 0x736   :  { %4097 = vmatpush3.msra.mxu1 %v5511_v48 }
 0x737   :  { %4098 = vmatprep.subr.mxu1 %v5215_v0 }
 0x738   :  { %4099 = vmatpush3.msra.mxu1 %v5518_v49 }
 0x739   :  { %4100 = vmatprep.subr.mxu1 %v5215_v0  ;;  %v1031_v57 = vpop.permute.xlu0 %1030 }
 0x73a   :  { %4101 = vmatpush3.msra.mxu1 %v5525_v50  ;;  %v1036_v59 = vsel %vm418_vm3, %v1031_v57, %v1034_v58 }
 0x73b   :  { %4102 = vmatprep.subr.mxu1 %v5215_v0 }
 0x73c   :  { %4103 = vmatpush3.msra.mxu1 %v5532_v51 }
 0x73d   :  { %4104 = vmatprep.subr.mxu1 %v5215_v0  ;;  %v1243_v61 = vpop.permute.xlu0 %1242 }
 0x73e   :  { %4105 = vmatpush3.msra.mxu1 %v5539_v53  ;;  %v1245_v63 = vsel %vm330_vm1, %v1241_v60, %v1243_v61 }
 0x73f   :  { %4106 = vmatprep.subr.mxu1 %v5215_v0 }
 0x740   :  { %4107 = vmatpush3.msra.mxu1 %v5547_v54 }
 0x741   :  { %4109 = vmatmul.mubr.msk.f32.vlgmr.msra.gmra.mxu1 %vm726_vm6, %v1036_v59  ;;  %4130 = vmatprep.subr.mxu1 %v5215_v0 }
 0x742   :  { %4131 = vmatpush3.msra.mxu1 %v5453_v13  ;;  %4140 = vmatprep.mubr.msk.f32.mxu1 %vm5216_vm0, %v5215_v0 }
 0x743   :  { %4132 = vmatprep.subr.mxu1 %v5215_v0 }
 0x744   :  { %4133 = vmatpush3.msra.mxu1 %v5456_v15 }
 0x745   :  { %4134 = vmatprep.subr.mxu1 %v5215_v0 }
 0x746   :  { %4135 = vmatpush3.msra.mxu1 %v5462_v16 }
 0x747   :  { %4136 = vmatprep.subr.mxu1 %v5215_v0 }
 0x748   :  { %4137 = vmatpush3.msra.mxu1 %v5466_v17 }
 0x749   :  { %4138 = vmatprep.subr.mxu1 %v5215_v0 }
 0x74a   :  { %4139 = vmatpush3.msra.mxu1 %v5470_v19 }
 0x74b   :  { %4141 = vmatmul.mubr.msk.f32.vlgmr.msra.gmra.mxu1 %vm623_vm4, %v1245_v63  ;;  %4162 = vmatprep.subr.mxu1 %v5215_v0 }
 0x74c   :  { %4163 = vmatpush3.msra.mxu1 %v5589_v33  ;;  %4178 = vmatprep.mubr.msk.f32.mxu1 %vm5216_vm0, %v5215_v0 }
 0x74d   :  { %4164 = vmatprep.subr.mxu1 %v5215_v0 }
 0x74e   :  { %4165 = vmatpush3.msra.mxu1 %v5591_v34 }
 0x74f   :  { %4166 = vmatprep.subr.mxu1 %v5215_v0 }
 0x750   :  { %4167 = vmatpush3.msra.mxu1 %v5596_v35 }
 0x751   :  { %4168 = vmatprep.subr.mxu1 %v5215_v0 }
 0x752   :  { %4169 = vmatpush3.msra.mxu1 %v5602_v36 }
 0x753   :  { %4170 = vmatprep.subr.mxu1 %v5215_v0 }
 0x754   :  { %4171 = vmatpush3.msra.mxu1 %v5608_v38 }
 0x755   :  { %4172 = vmatprep.subr.mxu1 %v5215_v0 }
 0x756   :  { %4173 = vmatpush3.msra.mxu1 %v5614_v39 }
 0x757   :  { %4174 = vmatprep.subr.mxu1 %v5215_v0 }
 0x758   :  { %4175 = vmatpush3.msra.mxu1 %v5620_v40 }
 0x759   :  { %4176 = vmatprep.subr.mxu1 %v5215_v0 }
 0x75a   :  { %4177 = vmatpush3.msra.mxu1 %v5626_v42 }
 0x75b   :  { %4194 = vmatprep.subr.mxu1 %v5215_v0 }
 0x7f1   :  { %v898_v2 = vpop.f32.mrf.mxu1 }
 0x7f2   :  { %v899_v3 = vadd.f32 %v5696_v1, %v898_v2 }
 0x7f3   :  { %v4078_v4 = vpop.f32.mrf.mxu1 }
 0x7f4   :  { %4578 = vtanh.f32 %v899_v3  ;;  %v3700_v18 = vmul.f32 -1.442695, %v899_v3 }
 0x801   :  { %v4579_v5 = vpop.eup %4578  ;;  %v1106_v6 = vpop.f32.mrf.mxu1 }
 0x802   :  { %v1107_v7 = vadd.f32 %v5573_v62, %v1106_v6  ;;  %911 = vrot.lane.b32.xlu1 %v4579_v5, %s5217_s18 }
 0x803   :  { %v4110_v8 = vpop.f32.mrf.mxu1 }
 0x804   :  { %4580 = vtanh.f32 %v1107_v7  ;;  %v3704_v20 = vmul.f32 -1.442695, %v1107_v7 }
 0x80b   :  { %v1315_v9 = vpop.f32.mrf.mxu1 }
 0x80c   :  { %v1316_v10 = vadd.f32 %v5486_v30, %v1315_v9 }
 0x80d   :  { %v4142_v11 = vpop.f32.mrf.mxu1 }
 0x80e   :  { %4582 = vtanh.f32 %v1316_v10  ;;  %v3708_v23 = vmul.f32 -1.442695, %v1316_v10 }
 0x80f   :  { %4584 = vpow2.f32 %v3700_v18 }
 0x810   :  { %4586 = vpow2.f32 %v3704_v20 }
 0x811   :  { %v4581_v12 = vpop.eup %4580 }
 0x812   :  { %1119 = vrot.lane.b32.xlu0 %v4581_v12, %s5217_s18 }
 0x81b   :  { %v4583_v14 = vpop.eup %4582 }
 0x81c   :  { %1328 = vrot.lane.b32.xlu1 %v4583_v14, %s5217_s18  ;;  %v4585_v21 = vpop.eup %4584 }
 0x81d   :  { %v905_v22 = vadd.f32 1.0, %v4585_v21  ;;  %v4587_v24 = vpop.eup %4586 }
 0x81e   :  { %v1113_v25 = vadd.f32 1.0, %v4587_v24 }
 0x81f   :  { %4588 = vrcp.f32 %v905_v22 }
 0x820   :  { %4590 = vpow2.f32 %v3708_v23  ;;  %v1555_v23 = vld [vmem:[#allocation2 + $0x6] sm:$0x3] }
 0x821   :  { %4592 = vrcp.f32 %v1113_v25 }
 0x82c   :  { %v4589_v26 = vpop.eup %4588 }
 0x82d   :  { %v4591_v32 = vpop.eup %4590  ;;  %v909_v57 = vmul.f32 0.0, %v4589_v26 }
 0x82e   :  { %v1322_v37 = vadd.f32 1.0, %v4591_v32  ;;  %v4593_v43 = vpop.eup %4592 }
 0x82f   :  { %v1117_v60 = vmul.f32 %v4593_v43, %v5581_v27 }
 0x830   :  { %4594 = vrcp.f32 %v1322_v37 }
 0x83d   :  { %v4595_v52 = vpop.eup %4594 }
 0x83e   :  { %v1326_v3 = vmul.f32 %v4595_v52, %v5585_v31 }
 0x874   :  { %v912_v28 = vpop.permute.xlu1 %911 }
 0x875   :  { %v914_v29 = vmul.f32 %v4589_v26, %v912_v28 }
 0x877   :  { %916 = vrot.lane.b32.xlu0 %v914_v29, %s5204_s17 }
 0x884   :  { %v1120_v44 = vpop.permute.xlu0 %1119 }
 0x885   :  { %v1122_v45 = vmul.f32 %v4593_v43, %v1120_v44 }
 0x887   :  { %1124 = vrot.lane.b32.xlu1 %v1122_v45, %s5204_s17 }
 0x88e   :  { %v1329_v55 = vpop.permute.xlu1 %1328 }
 0x88f   :  { %v1331_v56 = vmul.f32 %v4595_v52, %v1329_v55 }
 0x891   :  { %1333 = vrot.lane.b32.xlu0 %v1331_v56, %s5204_s17 }
 0x8e9   :  { %v917_v58 = vpop.permute.xlu0 %916 }
 0x8ea   :  { %v5707_v59 = vadd.f32 %v917_v58, %v909_v57 }
 0x8ec   :  { %4596 = vtanh.f32 %v5707_v59 }
 0x8f9   :  { %v4597_v61 = vpop.eup %4596  ;;  %v1125_v63 = vpop.permute.xlu1 %1124 }
 0x8fa   :  { %v5711_v2 = vadd.f32 %v1125_v63, %v1117_v60  ;;  %922 = vrot.lane.b32.xlu1 %v4597_v61, %s5217_s18 }
 0x8fc   :  { %4598 = vtanh.f32 %v5711_v2 }
 0x903   :  { %v1334_v4 = vpop.permute.xlu0 %1333 }
 0x904   :  { %v5716_v5 = vadd.f32 %v1334_v4, %v1326_v3 }
 0x906   :  { %4600 = vtanh.f32 %v5716_v5 }
 0x909   :  { %v4599_v6 = vpop.eup %4598 }
 0x90a   :  { %1130 = vrot.lane.b32.xlu0 %v4599_v6, %s5217_s18 }
 0x913   :  { %v4601_v7 = vpop.eup %4600 }
 0x914   :  { %1339 = vrot.lane.b32.xlu1 %v4601_v7, %s5217_s18 }
 0x96c   :  { %v923_v27 = vpop.permute.xlu1 %922 }
 0x96d   :  { %v925_v8 = vmul.f32 %v4589_v26, %v923_v27 }
 0x96f   :  { %1139 = vrot.lane.b32.xlu1 %v925_v8, %s5217_s18 }
 0x97c   :  { %v1131_v9 = vpop.permute.xlu0 %1130 }
 0x97d   :  { %v1133_v10 = vmul.f32 %v4593_v43, %v1131_v9 }
 0x97f   :  { %1347 = vrot.lane.b32.xlu1 %v1133_v10, %s5217_s18  ;;  %1135 = vrot.lane.b32.xlu0 %v1133_v10, %s5204_s17 }
 0x986   :  { %v1340_v31 = vpop.permute.xlu1 %1339 }
 0x987   :  { %v1342_v11 = vmul.f32 %v4595_v52, %v1340_v31 }
 0x989   :  { %1344 = vrot.lane.b32.xlu0 %v1342_v11, %s5204_s17 }
 0x98d   :  { %1556 = vrot.lane.b32.xlu0 %v1342_v11, %s5218_s9 }
 0x9e1   :  { %v1140_v12 = vpop.permute.xlu1 %1139 }
 0x9f1   :  { %v1136_v14 = vpop.permute.xlu0 %1135  ;;  %v1348_v21 = vpop.permute.xlu1 %1347 }
 0x9f2   :  { %v1142_v18 = vsel %vm418_vm3, %v1136_v14, %v1140_v12 }
 0x9f3   :  { %4128 = vmatmul.mubr.msk.f32.vlgmr.msra.gmra.mxu0 %vm726_vm6, %v1142_v18 }
 0x9f4   :  { %4144 = vmatpush3.msra.mxu0 %v5499_v46  ;;  %4159 = vmatprep.mubr.msk.f32.mxu0 %vm5216_vm0, %v5215_v0 }
 0x9f5   :  { %4145 = vmatprep.subr.mxu0 %v5215_v0 }
 0x9f6   :  { %4146 = vmatpush3.msra.mxu0 %v5504_v47 }
 0x9f7   :  { %4147 = vmatprep.subr.mxu0 %v5215_v0 }
 0x9f8   :  { %4148 = vmatpush3.msra.mxu0 %v5511_v48 }
 0x9f9   :  { %4149 = vmatprep.subr.mxu0 %v5215_v0 }
 0x9fa   :  { %4150 = vmatpush3.msra.mxu0 %v5518_v49 }
 0x9fb   :  { %4151 = vmatprep.subr.mxu0 %v5215_v0  ;;  %v1345_v20 = vpop.permute.xlu0 %1344 }
 0x9fc   :  { %4152 = vmatpush3.msra.mxu0 %v5525_v50  ;;  %v1350_v22 = vsel %vm418_vm3, %v1345_v20, %v1348_v21 }
 0x9fd   :  { %4153 = vmatprep.subr.mxu0 %v5215_v0 }
 0x9fe   :  { %4154 = vmatpush3.msra.mxu0 %v5532_v51 }
 0x9ff   :  { %4155 = vmatprep.subr.mxu0 %v5215_v0  ;;  %v1557_v24 = vpop.permute.xlu0 %1556 }
 0xa00   :  { %4156 = vmatpush3.msra.mxu0 %v5539_v53  ;;  %v1559_v25 = vsel %vm330_vm1, %v1555_v23, %v1557_v24 }
 0xa01   :  { %4157 = vmatprep.subr.mxu0 %v5215_v0 }
 0xa02   :  { %4158 = vmatpush3.msra.mxu0 %v5547_v54 }
 0xa03   :  { %4160 = vmatmul.mubr.msk.f32.vlgmr.msra.gmra.mxu0 %vm726_vm6, %v1350_v22  ;;  %4181 = vmatprep.subr.mxu0 %v5215_v0 }
 0xa04   :  { %4182 = vmatpush3.msra.mxu0 %v5453_v13  ;;  %4191 = vmatprep.mubr.msk.f32.mxu0 %vm5216_vm0, %v5215_v0 }
 0xa05   :  { %4183 = vmatprep.subr.mxu0 %v5215_v0 }
 0xa06   :  { %4184 = vmatpush3.msra.mxu0 %v5456_v15 }
 0xa07   :  { %4185 = vmatprep.subr.mxu0 %v5215_v0 }
 0xa08   :  { %4186 = vmatpush3.msra.mxu0 %v5462_v16 }
 0xa09   :  { %4187 = vmatprep.subr.mxu0 %v5215_v0 }
 0xa0a   :  { %4188 = vmatpush3.msra.mxu0 %v5466_v17 }
 0xa0b   :  { %4189 = vmatprep.subr.mxu0 %v5215_v0 }
 0xa0c   :  { %4190 = vmatpush3.msra.mxu0 %v5470_v19 }
 0xa0d   :  { %4192 = vmatmul.mubr.msk.f32.vlgmr.msra.gmra.mxu0 %vm623_vm4, %v1559_v25  ;;  %4213 = vmatprep.subr.mxu0 %v5215_v0 }
 0xa0e   :  { %4214 = vmatpush3.msra.mxu0 %v5589_v33  ;;  %4229 = vmatprep.mubr.msk.f32.mxu0 %vm5216_vm0, %v5215_v0 }
 0xa0f   :  { %4215 = vmatprep.subr.mxu0 %v5215_v0 }
 0xa10   :  { %4216 = vmatpush3.msra.mxu0 %v5591_v34 }
 0xa11   :  { %4217 = vmatprep.subr.mxu0 %v5215_v0 }
 0xa12   :  { %4218 = vmatpush3.msra.mxu0 %v5596_v35 }
 0xa13   :  { %4219 = vmatprep.subr.mxu0 %v5215_v0 }
 0xa14   :  { %4220 = vmatpush3.msra.mxu0 %v5602_v36 }
 0xa15   :  { %4221 = vmatprep.subr.mxu0 %v5215_v0 }
 0xa16   :  { %4222 = vmatpush3.msra.mxu0 %v5608_v38 }
 0xa17   :  { %4223 = vmatprep.subr.mxu0 %v5215_v0 }
 0xa18   :  { %4224 = vmatpush3.msra.mxu0 %v5614_v39 }
 0xa19   :  { %4225 = vmatprep.subr.mxu0 %v5215_v0 }
 0xa1a   :  { %4226 = vmatpush3.msra.mxu0 %v5620_v40 }
 0xa1b   :  { %4227 = vmatprep.subr.mxu0 %v5215_v0 }
 0xa1c   :  { %4228 = vmatpush3.msra.mxu0 %v5626_v42 }
 0xa1d   :  { %4245 = vmatprep.subr.mxu0 %v5215_v0 }
 0xab3   :  { %v1212_v26 = vpop.f32.mrf.mxu0 }
 0xab4   :  { %v1213_v28 = vadd.f32 %v5696_v1, %v1212_v26 }
 0xab5   :  { %v4129_v29 = vpop.f32.mrf.mxu0 }
 0xab6   :  { %4602 = vtanh.f32 %v1213_v28  ;;  %v3706_v58 = vmul.f32 -1.442695, %v1213_v28 }
 0xac3   :  { %v4603_v32 = vpop.eup %4602  ;;  %v1420_v37 = vpop.f32.mrf.mxu0 }
 0xac4   :  { %v1421_v43 = vadd.f32 %v5573_v62, %v1420_v37  ;;  %1225 = vrot.lane.b32.xlu1 %v4603_v32, %s5217_s18 }
 0xac5   :  { %v4161_v44 = vpop.f32.mrf.mxu0 }
 0xac6   :  { %4604 = vtanh.f32 %v1421_v43  ;;  %v3710_v60 = vmul.f32 -1.442695, %v1421_v43 }
 0xacd   :  { %v1629_v45 = vpop.f32.mrf.mxu0 }
 0xace   :  { %v1630_v52 = vadd.f32 %v5486_v30, %v1629_v45 }
 0xacf   :  { %v4193_v55 = vpop.f32.mrf.mxu0 }
 0xad0   :  { %4606 = vtanh.f32 %v1630_v52  ;;  %v3714_v3 = vmul.f32 -1.442695, %v1630_v52 }
 0xad1   :  { %4608 = vpow2.f32 %v3706_v58 }
 0xad2   :  { %4610 = vpow2.f32 %v3710_v60 }
 0xad3   :  { %v4605_v56 = vpop.eup %4604 }
 0xad4   :  { %1433 = vrot.lane.b32.xlu0 %v4605_v56, %s5217_s18 }
 0xadd   :  { %v4607_v57 = vpop.eup %4606 }
 0xade   :  { %1642 = vrot.lane.b32.xlu1 %v4607_v57, %s5217_s18  ;;  %v4609_v61 = vpop.eup %4608 }
 0xadf   :  { %v1219_v63 = vadd.f32 1.0, %v4609_v61  ;;  %v4611_v4 = vpop.eup %4610 }
 0xae0   :  { %v1427_v6 = vadd.f32 1.0, %v4611_v4 }
 0xae1   :  { %4612 = vrcp.f32 %v1219_v63 }
 0xae2   :  { %4614 = vpow2.f32 %v3714_v3 }
 0xae3   :  { %4616 = vrcp.f32 %v1427_v6 }
 0xaee   :  { %v4613_v7 = vpop.eup %4612 }
 0xaef   :  { %v4615_v9 = vpop.eup %4614  ;;  %v1223_v21 = vmul.f32 %v4613_v7, %v5707_v59 }
 0xaf0   :  { %v1636_v10 = vadd.f32 1.0, %v4615_v9  ;;  %v4617_v31 = vpop.eup %4616 }
 0xaf1   :  { %v1431_v24 = vmul.f32 %v4617_v31, %v5711_v2 }
 0xaf2   :  { %4618 = vrcp.f32 %v1636_v10 }
 0xaff   :  { %v4619_v14 = vpop.eup %4618 }
 0xb00   :  { %v1640_v29 = vmul.f32 %v4619_v14, %v5716_v5 }
 0xb36   :  { %v1226_v27 = vpop.permute.xlu1 %1225 }
 0xb37   :  { %v1228_v8 = vmul.f32 %v4613_v7, %v1226_v27 }
 0xb39   :  { %1230 = vrot.lane.b32.xlu0 %v1228_v8, %s5204_s17 }
 0xb46   :  { %v1434_v11 = vpop.permute.xlu0 %1433 }
 0xb47   :  { %v1436_v12 = vmul.f32 %v4617_v31, %v1434_v11 }
 0xb49   :  { %1438 = vrot.lane.b32.xlu1 %v1436_v12, %s5204_s17 }
 0xb50   :  { %v1643_v18 = vpop.permute.xlu1 %1642 }
 0xb51   :  { %v1645_v20 = vmul.f32 %v4619_v14, %v1643_v18 }
 0xb53   :  { %1647 = vrot.lane.b32.xlu0 %v1645_v20, %s5204_s17 }
 0xbab   :  { %v1231_v22 = vpop.permute.xlu0 %1230 }
 0xbac   :  { %v5790_v23 = vadd.f32 %v1231_v22, %v1223_v21 }
 0xbae   :  { %4620 = vtanh.f32 %v5790_v23 }
 0xbbb   :  { %v4621_v25 = vpop.eup %4620  ;;  %v1439_v26 = vpop.permute.xlu1 %1438 }
 0xbbc   :  { %v5794_v28 = vadd.f32 %v1439_v26, %v1431_v24  ;;  %1236 = vrot.lane.b32.xlu1 %v4621_v25, %s5217_s18 }
 0xbbe   :  { %4622 = vtanh.f32 %v5794_v28 }
 0xbc5   :  { %v1648_v32 = vpop.permute.xlu0 %1647 }
 0xbc6   :  { %v5799_v37 = vadd.f32 %v1648_v32, %v1640_v29 }
 0xbc8   :  { %4624 = vtanh.f32 %v5799_v37 }
 0xbcb   :  { %v4623_v59 = vpop.eup %4622 }
 0xbcc   :  { %1444 = vrot.lane.b32.xlu0 %v4623_v59, %s5217_s18 }
 0xbd5   :  { %v4625_v43 = vpop.eup %4624 }
 0xbd6   :  { %1653 = vrot.lane.b32.xlu1 %v4625_v43, %s5217_s18 }
 0xc2e   :  { %v1237_v2 = vpop.permute.xlu1 %1236 }
 0xc2f   :  { %v1239_v44 = vmul.f32 %v4613_v7, %v1237_v2 }
 0xc31   :  { %1453 = vrot.lane.b32.xlu1 %v1239_v44, %s5217_s18 }
 0xc3e   :  { %v1445_v45 = vpop.permute.xlu0 %1444 }
 0xc3f   :  { %v1447_v52 = vmul.f32 %v4617_v31, %v1445_v45 }
 0xc41   :  { %1449 = vrot.lane.b32.xlu0 %v1447_v52, %s5204_s17  ;;  %1661 = vrot.lane.b32.xlu1 %v1447_v52, %s5217_s18 }
 0xc48   :  { %v1654_v5 = vpop.permute.xlu1 %1653 }
 0xc49   :  { %v1656_v55 = vmul.f32 %v4619_v14, %v1654_v5 }
 0xc4b   :  { %1658 = vrot.lane.b32.xlu0 %v1656_v55, %s5204_s17 }
 0xc4f   :  { %1870 = vrot.lane.b32.xlu0 %v1656_v55, %s5218_s9 }
 0xca3   :  { %v1454_v56 = vpop.permute.xlu1 %1453 }
 0xcb3   :  { %v1450_v57 = vpop.permute.xlu0 %1449 }
 0xcb4   :  { %v1456_v58 = vsel %vm418_vm3, %v1450_v57, %v1454_v56 }
 0xcb5   :  { %4179 = vmatmul.mubr.msk.f32.vlgmr.msra.gmra.mxu1 %vm726_vm6, %v1456_v58 }
 0xcb6   :  { %4195 = vmatpush3.msra.mxu1 %v5499_v46  ;;  %4210 = vmatprep.mubr.msk.f32.mxu1 %vm5216_vm0, %v5215_v0 }
 0xcb7   :  { %4196 = vmatprep.subr.mxu1 %v5215_v0 }
 0xcb8   :  { %4197 = vmatpush3.msra.mxu1 %v5504_v47  ;;  %v1662_v47 = vpop.permute.xlu1 %1661 }
 0xcb9   :  { %4198 = vmatprep.subr.mxu1 %v5215_v0 }
 0xcba   :  { %4199 = vmatpush3.msra.mxu1 %v5511_v48 }
 0xcbb   :  { %4200 = vmatprep.subr.mxu1 %v5215_v0 }
 0xcbc   :  { %4201 = vmatpush3.msra.mxu1 %v5518_v49  ;;  %v1869_v49 = vld [vmem:[#allocation2 + $0x8] sm:$0x3] }
 0xcbd   :  { %4202 = vmatprep.subr.mxu1 %v5215_v0  ;;  %v1659_v46 = vpop.permute.xlu0 %1658 }
 0xcbe   :  { %4203 = vmatpush3.msra.mxu1 %v5525_v50  ;;  %v1664_v48 = vsel %vm418_vm3, %v1659_v46, %v1662_v47 }
 0xcbf   :  { %4204 = vmatprep.subr.mxu1 %v5215_v0 }
 0xcc0   :  { %4205 = vmatpush3.msra.mxu1 %v5532_v51 }
 0xcc1   :  { %4206 = vmatprep.subr.mxu1 %v5215_v0  ;;  %v1871_v50 = vpop.permute.xlu0 %1870 }
 0xcc2   :  { %4207 = vmatpush3.msra.mxu1 %v5539_v53 }
 0xcc3   :  { %4208 = vmatprep.subr.mxu1 %v5215_v0 }
 0xcc4   :  { %4209 = vmatpush3.msra.mxu1 %v5547_v54 }
 0xcc5   :  { %4211 = vmatmul.mubr.msk.f32.vlgmr.msra.gmra.mxu1 %vm726_vm6, %v1664_v48  ;;  %4232 = vmatprep.subr.mxu1 %v5215_v0 }
 0xcc6   :  { %4233 = vmatpush3.msra.mxu1 %v5453_v13  ;;  %4242 = vmatprep.mubr.msk.f32.mxu1 %vm5216_vm0, %v5215_v0  ;;  %v1873_v13 = vsel %vm330_vm1, %v1869_v49, %v1871_v50  ;;  %v5897_v50 = vld [vmem:[%s6420_s5 + $0x38] sm:$0xff] }
 0xcc7   :  { %4234 = vmatprep.subr.mxu1 %v5215_v0 }
 0xcc8   :  { %4235 = vmatpush3.msra.mxu1 %v5456_v15 }
 0xcc9   :  { %4236 = vmatprep.subr.mxu1 %v5215_v0 }
 0xcca   :  { %4237 = vmatpush3.msra.mxu1 %v5462_v16 }
 0xccb   :  { %4238 = vmatprep.subr.mxu1 %v5215_v0 }
 0xccc   :  { %4239 = vmatpush3.msra.mxu1 %v5466_v17 }
 0xccd   :  { %4240 = vmatprep.subr.mxu1 %v5215_v0 }
 0xcce   :  { %4241 = vmatpush3.msra.mxu1 %v5470_v19 }
 0xccf   :  { %4243 = vmatmul.mubr.msk.f32.vlgmr.msra.gmra.mxu1 %vm623_vm4, %v1873_v13  ;;  %4264 = vmatprep.subr.mxu1 %v5215_v0  ;;  %v5906_v13 = vld [vmem:[%s6420_s5 + $0x30] sm:$0xff] }
 0xcd0   :  { %4265 = vmatpush3.msra.mxu1 %v5589_v33  ;;  %4280 = vmatprep.mubr.msk.f32.mxu1 %vm5216_vm0, %v5215_v0 }
 0xcd1   :  { %4266 = vmatprep.subr.mxu1 %v5215_v0 }
 0xcd2   :  { %4267 = vmatpush3.msra.mxu1 %v5591_v34 }
 0xcd3   :  { %4268 = vmatprep.subr.mxu1 %v5215_v0 }
 0xcd4   :  { %4269 = vmatpush3.msra.mxu1 %v5596_v35 }
 0xcd5   :  { %4270 = vmatprep.subr.mxu1 %v5215_v0 }
 0xcd6   :  { %4271 = vmatpush3.msra.mxu1 %v5602_v36 }
 0xcd7   :  { %4272 = vmatprep.subr.mxu1 %v5215_v0 }
 0xcd8   :  { %4273 = vmatpush3.msra.mxu1 %v5608_v38 }
 0xcd9   :  { %4274 = vmatprep.subr.mxu1 %v5215_v0 }
 0xcda   :  { %4275 = vmatpush3.msra.mxu1 %v5614_v39 }
 0xcdb   :  { %4276 = vmatprep.subr.mxu1 %v5215_v0 }
 0xcdc   :  { %4277 = vmatpush3.msra.mxu1 %v5620_v40 }
 0xcdd   :  { %4278 = vmatprep.subr.mxu1 %v5215_v0 }
 0xcde   :  { %4279 = vmatpush3.msra.mxu1 %v5626_v42 }
 0xcdf   :  { %4296 = vmatprep.subr.mxu1 %v5215_v0 }
 0xd75   :  { %v1526_v15 = vpop.f32.mrf.mxu1 }
 0xd76   :  { %v1527_v16 = vadd.f32 %v5696_v1, %v1526_v15  ;;  %v5913_v15 = vld [vmem:[%s6420_s5 + $0x28] sm:$0xff] }
 0xd77   :  { %v4180_v17 = vpop.f32.mrf.mxu1 }
 0xd78   :  { %4626 = vtanh.f32 %v1527_v16  ;;  %v3712_v6 = vmul.f32 -1.442695, %v1527_v16  ;;  %v5920_v16 = vld [vmem:[%s6420_s5 + $0x20] sm:$0xff]  ;;  %v5927_v17 = vld [vmem:[%s6420_s5 + $0x18] sm:$0xff] }
 0xd85   :  { %v4627_v19 = vpop.eup %4626  ;;  %v1734_v51 = vpop.f32.mrf.mxu1 }
 0xd86   :  { %v1735_v53 = vadd.f32 %v5573_v62, %v1734_v51  ;;  %1539 = vrot.lane.b32.xlu1 %v4627_v19, %s5217_s18  ;;  %v5934_v19 = vld [vmem:[%s6420_s5 + $0x10] sm:$0xff] }
 0xd87   :  { %v4212_v54 = vpop.f32.mrf.mxu1 }
 0xd88   :  { %4628 = vtanh.f32 %v1735_v53  ;;  %v3716_v7 = vmul.f32 -1.442695, %v1735_v53  ;;  %v5941_v53 = vld [vmem:[%s6420_s5 + $0x8] sm:$0xff] }
 0xd8f   :  { %v1943_v60 = vpop.f32.mrf.mxu1 }
 0xd90   :  { %v1944_v61 = vadd.f32 %v5486_v30, %v1943_v60 }
 0xd91   :  { %v4244_v63 = vpop.f32.mrf.mxu1 }
 0xd92   :  { %4630 = vtanh.f32 %v1944_v61  ;;  %v3720_v8 = vmul.f32 -1.442695, %v1944_v61  ;;  %v5949_v61 = vld [vmem:[%s6420_s5] sm:$0xff]  ;;  %v5954_v63 = vld [vmem:[#allocation5 + $0x20] sm:$0xff] }
 0xd93   :  { %4632 = vpow2.f32 %v3712_v6  ;;  %v2183_v6 = vld [vmem:[#allocation2 + $0xa] sm:$0x3] }
 0xd94   :  { %4634 = vpow2.f32 %v3716_v7 }
 0xd95   :  { %v4629_v3 = vpop.eup %4628 }
 0xd96   :  { %1747 = vrot.lane.b32.xlu0 %v4629_v3, %s5217_s18  ;;  %v5960_v3 = vld [vmem:[#allocation5 + $0x18] sm:$0xff] }
 0xd9f   :  { %v4631_v4 = vpop.eup %4630 }
 0xda0   :  { %1956 = vrot.lane.b32.xlu1 %v4631_v4, %s5217_s18  ;;  %v4633_v27 = vpop.eup %4632  ;;  %v5964_v4 = vld [vmem:[#allocation5 + $0x10] sm:$0xff] }
 0xda1   :  { %v1533_v62 = vadd.f32 1.0, %v4633_v27  ;;  %v4635_v9 = vpop.eup %4634  ;;  %v5968_v27 = vld [vmem:[#allocation5 + $0x8] sm:$0xff] }
 0xda2   :  { %v1741_v10 = vadd.f32 1.0, %v4635_v9  ;;  %v5997_v9 = vld [vmem:[#allocation8] ss:$0 sm:$0xff] }
 0xda3   :  { %4636 = vrcp.f32 %v1533_v62 }
 0xda4   :  { %4638 = vpow2.f32 %v3720_v8  ;;  %v5973_v8 = vld [vmem:[#allocation5] sm:$0xff] }
 0xda5   :  { %4640 = vrcp.f32 %v1741_v10 }
 0xdb0   :  { %v4637_v30 = vpop.eup %4636 }
 0xdb1   :  { %v4639_v12 = vpop.eup %4638  ;;  %v1537_v26 = vmul.f32 %v4637_v30, %v5790_v23 }
 0xdb2   :  { %v1950_v14 = vadd.f32 1.0, %v4639_v12  ;;  %v4641_v18 = vpop.eup %4640 }
 0xdb3   :  { %v1745_v59 = vmul.f32 %v4641_v18, %v5794_v28 }
 0xdb4   :  { %4642 = vrcp.f32 %v1950_v14 }
 0xdc1   :  { %v4643_v22 = vpop.eup %4642 }
 0xdc2   :  { %v1954_v45 = vmul.f32 %v4643_v22, %v5799_v37 }
 0xdf8   :  { %v1540_v31 = vpop.permute.xlu1 %1539 }
 0xdf9   :  { %v1542_v11 = vmul.f32 %v4637_v30, %v1540_v31 }
 0xdfb   :  { %1544 = vrot.lane.b32.xlu0 %v1542_v11, %s5204_s17 }
 0xe08   :  { %v1748_v20 = vpop.permute.xlu0 %1747 }
 0xe09   :  { %v1750_v21 = vmul.f32 %v4641_v18, %v1748_v20 }
 0xe0b   :  { %1752 = vrot.lane.b32.xlu1 %v1750_v21, %s5204_s17 }
 0xe12   :  { %v1957_v24 = vpop.permute.xlu1 %1956 }
 0xe13   :  { %v1959_v25 = vmul.f32 %v4643_v22, %v1957_v24 }
 0xe15   :  { %1961 = vrot.lane.b32.xlu0 %v1959_v25, %s5204_s17 }
 0xe6d   :  { %v1545_v29 = vpop.permute.xlu0 %1544 }
 0xe6e   :  { %v5873_v32 = vadd.f32 %v1545_v29, %v1537_v26 }
 0xe70   :  { %4644 = vtanh.f32 %v5873_v32 }
 0xe7d   :  { %v4645_v43 = vpop.eup %4644  ;;  %v1753_v2 = vpop.permute.xlu1 %1752 }
 0xe7e   :  { %v5877_v44 = vadd.f32 %v1753_v2, %v1745_v59  ;;  %1550 = vrot.lane.b32.xlu1 %v4645_v43, %s5217_s18 }
 0xe80   :  { %4646 = vtanh.f32 %v5877_v44 }
 0xe87   :  { %v1962_v52 = vpop.permute.xlu0 %1961 }
 0xe88   :  { %v5882_v5 = vadd.f32 %v1962_v52, %v1954_v45 }
 0xe8a   :  { %4648 = vtanh.f32 %v5882_v5 }
 0xe8d   :  { %v4647_v23 = vpop.eup %4646 }
 0xe8e   :  { %1758 = vrot.lane.b32.xlu0 %v4647_v23, %s5217_s18 }
 0xe97   :  { %v4649_v55 = vpop.eup %4648 }
 0xe98   :  { %1967 = vrot.lane.b32.xlu1 %v4649_v55, %s5217_s18 }
 0xef0   :  { %v1551_v28 = vpop.permute.xlu1 %1550 }
 0xef1   :  { %v1553_v56 = vmul.f32 %v4637_v30, %v1551_v28  ;;  %v6001_v30 = vld [vmem:[#allocation7] ss:$0 sm:$0xff] }
 0xef3   :  { %1767 = vrot.lane.b32.xlu1 %v1553_v56, %s5217_s18 }
 0xf00   :  { %v1759_v57 = vpop.permute.xlu0 %1758 }
 0xf01   :  { %v1761_v58 = vmul.f32 %v4641_v18, %v1759_v57 }
 0xf03   :  { %1763 = vrot.lane.b32.xlu0 %v1761_v58, %s5204_s17  ;;  %1975 = vrot.lane.b32.xlu1 %v1761_v58, %s5217_s18 }
 0xf0a   :  { %v1968_v37 = vpop.permute.xlu1 %1967 }
 0xf0b   :  { %v1970_v46 = vmul.f32 %v4643_v22, %v1968_v37 }
 0xf0d   :  { %1972 = vrot.lane.b32.xlu0 %v1970_v46, %s5204_s17 }
 0xf11   :  { %2184 = vrot.lane.b32.xlu0 %v1970_v46, %s5218_s9 }
 0xf65   :  { %v1768_v47 = vpop.permute.xlu1 %1767 }
 0xf75   :  { %v1764_v48 = vpop.permute.xlu0 %1763  ;;  %v1976_v54 = vpop.permute.xlu1 %1975 }
 0xf76   :  { %v1770_v49 = vsel %vm418_vm3, %v1764_v48, %v1768_v47 }
 0xf77   :  { %4230 = vmatmul.mubr.msk.f32.vlgmr.msra.gmra.mxu0 %vm726_vm6, %v1770_v49 }
 0xf78   :  { %4246 = vmatpush3.msra.mxu0 %v5897_v50  ;;  %4261 = vmatprep.mubr.msk.f32.mxu0 %vm5216_vm0, %v5215_v0 }
 0xf79   :  { %4247 = vmatprep.subr.mxu0 %v5215_v0 }
 0xf7a   :  { %4248 = vmatpush3.msra.mxu0 %v5906_v13 }
 0xf7b   :  { %4249 = vmatprep.subr.mxu0 %v5215_v0 }
 0xf7c   :  { %4250 = vmatpush3.msra.mxu0 %v5913_v15 }
 0xf7d   :  { %4251 = vmatprep.subr.mxu0 %v5215_v0 }
 0xf7e   :  { %4252 = vmatpush3.msra.mxu0 %v5920_v16 }
 0xf7f   :  { %4253 = vmatprep.subr.mxu0 %v5215_v0  ;;  %v1973_v51 = vpop.permute.xlu0 %1972 }
 0xf80   :  { %4254 = vmatpush3.msra.mxu0 %v5927_v17  ;;  %v1978_v60 = vsel %vm418_vm3, %v1973_v51, %v1976_v54 }
 0xf81   :  { %4255 = vmatprep.subr.mxu0 %v5215_v0 }
 0xf82   :  { %4256 = vmatpush3.msra.mxu0 %v5934_v19 }
 0xf83   :  { %4257 = vmatprep.subr.mxu0 %v5215_v0  ;;  %v2185_v7 = vpop.permute.xlu0 %2184 }
 0xf84   :  { %4258 = vmatpush3.msra.mxu0 %v5941_v53  ;;  %v2187_v62 = vsel %vm330_vm1, %v2183_v6, %v2185_v7 }
 0xf85   :  { %4259 = vmatprep.subr.mxu0 %v5215_v0 }
 0xf86   :  { %4260 = vmatpush3.msra.mxu0 %v5949_v61 }
 0xf87   :  { %4262 = vmatmul.mubr.msk.f32.vlgmr.msra.gmra.mxu0 %vm726_vm6, %v1978_v60  ;;  %4283 = vmatprep.subr.mxu0 %v5215_v0 }
 0xf88   :  { %4284 = vmatpush3.msra.mxu0 %v5954_v63  ;;  %4293 = vmatprep.mubr.msk.f32.mxu0 %vm5216_vm0, %v5215_v0 }
 0xf89   :  { %4285 = vmatprep.subr.mxu0 %v5215_v0 }
 0xf8a   :  { %4286 = vmatpush3.msra.mxu0 %v5960_v3 }
 0xf8b   :  { %4287 = vmatprep.subr.mxu0 %v5215_v0 }
 0xf8c   :  { %4288 = vmatpush3.msra.mxu0 %v5964_v4 }
 0xf8d   :  { %4289 = vmatprep.subr.mxu0 %v5215_v0 }
 0xf8e   :  { %4290 = vmatpush3.msra.mxu0 %v5968_v27 }
 0xf8f   :  { %4291 = vmatprep.subr.mxu0 %v5215_v0 }
 0xf90   :  { %4292 = vmatpush3.msra.mxu0 %v5973_v8 }
 0xf91   :  { %4294 = vmatmul.mubr.msk.f32.vlgmr.msra.gmra.mxu0 %vm623_vm4, %v2187_v62  ;;  %4315 = vmatprep.subr.mxu0 %v5215_v0 }
 0xf92   :  { %4316 = vmatpush3.msra.mxu0 %v5589_v33  ;;  %4331 = vmatprep.mubr.msk.f32.mxu0 %vm5216_vm0, %v5215_v0 }
 0xf93   :  { %4317 = vmatprep.subr.mxu0 %v5215_v0 }
 0xf94   :  { %4318 = vmatpush3.msra.mxu0 %v5591_v34 }
 0xf95   :  { %4319 = vmatprep.subr.mxu0 %v5215_v0 }
 0xf96   :  { %4320 = vmatpush3.msra.mxu0 %v5596_v35 }
 0xf97   :  { %4321 = vmatprep.subr.mxu0 %v5215_v0 }
 0xf98   :  { %4322 = vmatpush3.msra.mxu0 %v5602_v36 }
 0xf99   :  { %4323 = vmatprep.subr.mxu0 %v5215_v0 }
 0xf9a   :  { %4324 = vmatpush3.msra.mxu0 %v5608_v38 }
 0xf9b   :  { %4325 = vmatprep.subr.mxu0 %v5215_v0 }
 0xf9c   :  { %4326 = vmatpush3.msra.mxu0 %v5614_v39 }
 0xf9d   :  { %4327 = vmatprep.subr.mxu0 %v5215_v0 }
 0xf9e   :  { %4328 = vmatpush3.msra.mxu0 %v5620_v40 }
 0xf9f   :  { %4329 = vmatprep.subr.mxu0 %v5215_v0 }
 0xfa0   :  { %4330 = vmatpush3.msra.mxu0 %v5626_v42 }
 0xfa1   :  { %4347 = vmatprep.subr.mxu0 %v5215_v0 }
0x1037   :  { %v1840_v33 = vpop.f32.mrf.mxu0 }
0x1038   :  { %v1841_v34 = vadd.f32 %v5696_v1, %v1840_v33 }
0x1039   :  { %v4231_v35 = vpop.f32.mrf.mxu0 }
0x103a   :  { %4650 = vtanh.f32 %v1841_v34  ;;  %v3718_v12 = vmul.f32 -1.442695, %v1841_v34 }
0x1047   :  { %v4651_v36 = vpop.eup %4650  ;;  %v2048_v38 = vpop.f32.mrf.mxu0 }
0x1048   :  { %v2049_v39 = vadd.f32 %v5997_v9, %v2048_v38  ;;  %1853 = vrot.lane.b32.xlu1 %v4651_v36, %s5217_s18 }
0x1049   :  { %v4263_v40 = vpop.f32.mrf.mxu0 }
0x104a   :  { %4652 = vtanh.f32 %v2049_v39  ;;  %v3722_v14 = vmul.f32 -1.442695, %v2049_v39 }
0x1051   :  { %v2257_v10 = vpop.f32.mrf.mxu0 }
0x1052   :  { %v2258_v42 = vadd.f32 %v6001_v30, %v2257_v10  ;;  %v2497_v10 = vld [vmem:[#allocation2 + $0xc] sm:$0x3] }
0x1053   :  { %v4295_v31 = vpop.f32.mrf.mxu0 }
0x1054   :  { %4654 = vtanh.f32 %v2258_v42  ;;  %v3726_v21 = vmul.f32 -1.442695, %v2258_v42 }
0x1055   :  { %4656 = vpow2.f32 %v3718_v12  ;;  %v6075_v12 = vld [vmem:[#allocation10 + $0x28] sm:$0xff] }
0x1056   :  { %4658 = vpow2.f32 %v3722_v14  ;;  %v6079_v14 = vld [vmem:[#allocation10 + $0x20] sm:$0xff] }
0x1057   :  { %v4653_v1 = vpop.eup %4652 }
0x1058   :  { %2061 = vrot.lane.b32.xlu0 %v4653_v1, %s5217_s18  ;;  %v6065_v1 = vld [vmem:[#allocation10 + $0x38] sm:$0xff] }
0x1061   :  { %v4655_v11 = vpop.eup %4654 }
0x1062   :  { %2270 = vrot.lane.b32.xlu1 %v4655_v11, %s5217_s18  ;;  %v4657_v18 = vpop.eup %4656  ;;  %v6071_v11 = vld [vmem:[#allocation10 + $0x30] sm:$0xff] }
0x1063   :  { %v1847_v20 = vadd.f32 1.0, %v4657_v18  ;;  %v4659_v22 = vpop.eup %4658  ;;  %v6083_v18 = vld [vmem:[#allocation10 + $0x18] sm:$0xff] }
0x1064   :  { %v2055_v24 = vadd.f32 1.0, %v4659_v22  ;;  %v6095_v22 = vld [vmem:[#allocation10] sm:$0xff] }
0x1065   :  { %4660 = vrcp.f32 %v1847_v20  ;;  %v6087_v20 = vld [vmem:[#allocation10 + $0x10] sm:$0xff] }
0x1066   :  { %4662 = vpow2.f32 %v3726_v21  ;;  %v6091_v21 = vld [vmem:[#allocation10 + $0x8] sm:$0xff] }
0x1067   :  { %4664 = vrcp.f32 %v2055_v24 }
0x1072   :  { %v4661_v25 = vpop.eup %4660 }
0x1073   :  { %v4663_v59 = vpop.eup %4662  ;;  %v1851_v56 = vmul.f32 %v4661_v25, %v5873_v32 }
0x1074   :  { %v2264_v43 = vadd.f32 1.0, %v4663_v59  ;;  %v4665_v2 = vpop.eup %4664 }
0x1075   :  { %v2059_v37 = vmul.f32 %v4665_v2, %v5877_v44 }
0x1076   :  { %4666 = vrcp.f32 %v2264_v43 }
0x1083   :  { %v4667_v23 = vpop.eup %4666 }
0x1084   :  { %v2268_v49 = vmul.f32 %v4667_v23, %v5882_v5 }
0x10ba   :  { %v1854_v26 = vpop.permute.xlu1 %1853 }
0x10bb   :  { %v1856_v29 = vmul.f32 %v4661_v25, %v1854_v26 }
0x10bd   :  { %1858 = vrot.lane.b32.xlu0 %v1856_v29, %s5204_s17 }
0x10ca   :  { %v2062_v45 = vpop.permute.xlu0 %2061 }
0x10cb   :  { %v2064_v52 = vmul.f32 %v4665_v2, %v2062_v45 }
0x10cd   :  { %2066 = vrot.lane.b32.xlu1 %v2064_v52, %s5204_s17 }
0x10d4   :  { %v2271_v55 = vpop.permute.xlu1 %2270 }
0x10d5   :  { %v2273_v28 = vmul.f32 %v4667_v23, %v2271_v55 }
0x10d7   :  { %2275 = vrot.lane.b32.xlu0 %v2273_v28, %s5204_s17 }
0x112f   :  { %v1859_v57 = vpop.permute.xlu0 %1858 }
0x1130   :  { %v6010_v58 = vadd.f32 %v1859_v57, %v1851_v56 }
0x1132   :  { %4668 = vtanh.f32 %v6010_v58 }
0x113f   :  { %v4669_v46 = vpop.eup %4668  ;;  %v2067_v47 = vpop.permute.xlu1 %2066 }
0x1140   :  { %v6014_v48 = vadd.f32 %v2067_v47, %v2059_v37  ;;  %1864 = vrot.lane.b32.xlu1 %v4669_v46, %s5217_s18 }
0x1142   :  { %4670 = vtanh.f32 %v6014_v48 }
0x1149   :  { %v2276_v51 = vpop.permute.xlu0 %2275 }
0x114a   :  { %v6019_v54 = vadd.f32 %v2276_v51, %v2268_v49 }
0x114c   :  { %4672 = vtanh.f32 %v6019_v54 }
0x114f   :  { %v4671_v32 = vpop.eup %4670 }
0x1150   :  { %2072 = vrot.lane.b32.xlu0 %v4671_v32, %s5217_s18 }
0x1159   :  { %v4673_v60 = vpop.eup %4672 }
0x115a   :  { %2281 = vrot.lane.b32.xlu1 %v4673_v60, %s5217_s18 }
0x11b2   :  { %v1865_v44 = vpop.permute.xlu1 %1864 }
0x11b3   :  { %v1867_v6 = vmul.f32 %v4661_v25, %v1865_v44  ;;  %v6099_v25 = vld [vmem:[#allocation11] ss:$0 sm:$0xff] }
0x11b5   :  { %2081 = vrot.lane.b32.xlu1 %v1867_v6, %s5217_s18 }
0x11c2   :  { %v2073_v7 = vpop.permute.xlu0 %2072 }
0x11c3   :  { %v2075_v62 = vmul.f32 %v4665_v2, %v2073_v7 }
0x11c5   :  { %2077 = vrot.lane.b32.xlu0 %v2075_v62, %s5204_s17  ;;  %2289 = vrot.lane.b32.xlu1 %v2075_v62, %s5217_s18 }
0x11cc   :  { %v2282_v5 = vpop.permute.xlu1 %2281 }
0x11cd   :  { %v2284_v33 = vmul.f32 %v4667_v23, %v2282_v5 }
0x11cf   :  { %2286 = vrot.lane.b32.xlu0 %v2284_v33, %s5204_s17 }
0x11d3   :  { %2498 = vrot.lane.b32.xlu0 %v2284_v33, %s5218_s9 }
0x1227   :  { %v2082_v34 = vpop.permute.xlu1 %2081 }
0x1237   :  { %v2078_v35 = vpop.permute.xlu0 %2077  ;;  %v2290_v39 = vpop.permute.xlu1 %2289 }
0x1238   :  { %v2084_v36 = vsel %vm418_vm3, %v2078_v35, %v2082_v34 }
0x1239   :  { %4281 = vmatmul.mubr.msk.f32.vlgmr.msra.gmra.mxu1 %vm726_vm6, %v2084_v36 }
0x123a   :  { %4297 = vmatpush3.msra.mxu1 %v5897_v50  ;;  %4312 = vmatprep.mubr.msk.f32.mxu1 %vm5216_vm0, %v5215_v0 }
0x123b   :  { %4298 = vmatprep.subr.mxu1 %v5215_v0 }
0x123c   :  { %4299 = vmatpush3.msra.mxu1 %v5906_v13 }
0x123d   :  { %4300 = vmatprep.subr.mxu1 %v5215_v0 }
0x123e   :  { %4301 = vmatpush3.msra.mxu1 %v5913_v15 }
0x123f   :  { %4302 = vmatprep.subr.mxu1 %v5215_v0 }
0x1240   :  { %4303 = vmatpush3.msra.mxu1 %v5920_v16 }
0x1241   :  { %4304 = vmatprep.subr.mxu1 %v5215_v0  ;;  %v2287_v38 = vpop.permute.xlu0 %2286 }
0x1242   :  { %4305 = vmatpush3.msra.mxu1 %v5927_v17  ;;  %v2292_v40 = vsel %vm418_vm3, %v2287_v38, %v2290_v39 }
0x1243   :  { %4306 = vmatprep.subr.mxu1 %v5215_v0 }
0x1244   :  { %4307 = vmatpush3.msra.mxu1 %v5934_v19 }
0x1245   :  { %4308 = vmatprep.subr.mxu1 %v5215_v0  ;;  %v2499_v42 = vpop.permute.xlu0 %2498 }
0x1246   :  { %4309 = vmatpush3.msra.mxu1 %v5941_v53  ;;  %v2501_v31 = vsel %vm330_vm1, %v2497_v10, %v2499_v42 }
0x1247   :  { %4310 = vmatprep.subr.mxu1 %v5215_v0 }
0x1248   :  { %4311 = vmatpush3.msra.mxu1 %v5949_v61 }
0x1249   :  { %4313 = vmatmul.mubr.msk.f32.vlgmr.msra.gmra.mxu1 %vm726_vm6, %v2292_v40  ;;  %4334 = vmatprep.subr.mxu1 %v5215_v0 }
0x124a   :  { %4335 = vmatpush3.msra.mxu1 %v5954_v63  ;;  %4344 = vmatprep.mubr.msk.f32.mxu1 %vm5216_vm0, %v5215_v0 }
0x124b   :  { %4336 = vmatprep.subr.mxu1 %v5215_v0 }
0x124c   :  { %4337 = vmatpush3.msra.mxu1 %v5960_v3 }
0x124d   :  { %4338 = vmatprep.subr.mxu1 %v5215_v0 }
0x124e   :  { %4339 = vmatpush3.msra.mxu1 %v5964_v4 }
0x124f   :  { %4340 = vmatprep.subr.mxu1 %v5215_v0 }
0x1250   :  { %4341 = vmatpush3.msra.mxu1 %v5968_v27 }
0x1251   :  { %4342 = vmatprep.subr.mxu1 %v5215_v0 }
0x1252   :  { %4343 = vmatpush3.msra.mxu1 %v5973_v8 }
0x1253   :  { %4345 = vmatmul.mubr.msk.f32.vlgmr.msra.gmra.mxu1 %vm623_vm4, %v2501_v31  ;;  %4366 = vmatprep.subr.mxu1 %v5215_v0 }
0x1254   :  { %4367 = vmatpush3.msra.mxu1 %v6065_v1  ;;  %4382 = vmatprep.mubr.msk.f32.mxu1 %vm5216_vm0, %v5215_v0 }
0x1255   :  { %4368 = vmatprep.subr.mxu1 %v5215_v0 }
0x1256   :  { %4369 = vmatpush3.msra.mxu1 %v6071_v11 }
0x1257   :  { %4370 = vmatprep.subr.mxu1 %v5215_v0 }
0x1258   :  { %4371 = vmatpush3.msra.mxu1 %v6075_v12 }
0x1259   :  { %4372 = vmatprep.subr.mxu1 %v5215_v0 }
0x125a   :  { %4373 = vmatpush3.msra.mxu1 %v6079_v14 }
0x125b   :  { %4374 = vmatprep.subr.mxu1 %v5215_v0 }
0x125c   :  { %4375 = vmatpush3.msra.mxu1 %v6083_v18 }
0x125d   :  { %4376 = vmatprep.subr.mxu1 %v5215_v0 }
0x125e   :  { %4377 = vmatpush3.msra.mxu1 %v6087_v20 }
0x125f   :  { %4378 = vmatprep.subr.mxu1 %v5215_v0 }
0x1260   :  { %4379 = vmatpush3.msra.mxu1 %v6091_v21 }
0x1261   :  { %4380 = vmatprep.subr.mxu1 %v5215_v0 }
0x1262   :  { %4381 = vmatpush3.msra.mxu1 %v6095_v22 }
0x1263   :  { %4398 = vmatprep.subr.mxu1 %v5215_v0 }
0x12f9   :  { %v2154_v24 = vpop.f32.mrf.mxu1 }
0x12fa   :  { %v2155_v26 = vadd.f32 %v6099_v25, %v2154_v24 }
0x12fb   :  { %v4282_v29 = vpop.f32.mrf.mxu1 }
0x12fc   :  { %4674 = vtanh.f32 %v2155_v26  ;;  %v3724_v57 = vmul.f32 -1.442695, %v2155_v26 }
0x1309   :  { %v4675_v59 = vpop.eup %4674  ;;  %v2362_v43 = vpop.f32.mrf.mxu1 }
0x130a   :  { %v2363_v2 = vadd.f32 %v5997_v9, %v2362_v43  ;;  %2167 = vrot.lane.b32.xlu1 %v4675_v59, %s5217_s18 }
0x130b   :  { %v4314_v45 = vpop.f32.mrf.mxu1 }
0x130c   :  { %4676 = vtanh.f32 %v2363_v2  ;;  %v3728_v37 = vmul.f32 -1.442695, %v2363_v2 }
0x1313   :  { %v2571_v52 = vpop.f32.mrf.mxu1 }
0x1314   :  { %v2572_v23 = vadd.f32 %v6001_v30, %v2571_v52 }
0x1315   :  { %v4346_v55 = vpop.f32.mrf.mxu1 }
0x1316   :  { %4678 = vtanh.f32 %v2572_v23  ;;  %v3732_v49 = vmul.f32 -1.442695, %v2572_v23 }
0x1317   :  { %4680 = vpow2.f32 %v3724_v57 }
0x1318   :  { %4682 = vpow2.f32 %v3728_v37 }
0x1319   :  { %v4677_v28 = vpop.eup %4676 }
0x131a   :  { %2375 = vrot.lane.b32.xlu0 %v4677_v28, %s5217_s18 }
0x1323   :  { %v4679_v56 = vpop.eup %4678 }
0x1324   :  { %2584 = vrot.lane.b32.xlu1 %v4679_v56, %s5217_s18  ;;  %v4681_v46 = vpop.eup %4680 }
0x1325   :  { %v2161_v47 = vadd.f32 1.0, %v4681_v46  ;;  %v4683_v51 = vpop.eup %4682 }
0x1326   :  { %v2369_v32 = vadd.f32 1.0, %v4683_v51 }
0x1327   :  { %4684 = vrcp.f32 %v2161_v47 }
0x1328   :  { %4686 = vpow2.f32 %v3732_v49  ;;  %v2811_v49 = vld [vmem:[#allocation2 + $0xe] sm:$0x3] }
0x1329   :  { %4688 = vrcp.f32 %v2369_v32 }
0x1334   :  { %v4685_v60 = vpop.eup %4684 }
0x1335   :  { %v4687_v7 = vpop.eup %4686  ;;  %v2165_v39 = vmul.f32 %v4685_v60, %v6010_v58 }
0x1336   :  { %v2578_v62 = vadd.f32 1.0, %v4687_v7  ;;  %v4689_v5 = vpop.eup %4688 }
0x1337   :  { %v2373_v42 = vmul.f32 %v4689_v5, %v6014_v48 }
0x1338   :  { %4690 = vrcp.f32 %v2578_v62 }
0x1345   :  { %v4691_v35 = vpop.eup %4690 }
0x1346   :  { %v2582_v29 = vmul.f32 %v4691_v35, %v6019_v54 }
0x137c   :  { %v2168_v44 = vpop.permute.xlu1 %2167 }
0x137d   :  { %v2170_v6 = vmul.f32 %v4685_v60, %v2168_v44 }
0x137f   :  { %2172 = vrot.lane.b32.xlu0 %v2170_v6, %s5204_s17 }
0x138c   :  { %v2376_v33 = vpop.permute.xlu0 %2375 }
0x138d   :  { %v2378_v34 = vmul.f32 %v4689_v5, %v2376_v33 }
0x138f   :  { %2380 = vrot.lane.b32.xlu1 %v2378_v34, %s5204_s17 }
0x1396   :  { %v2585_v36 = vpop.permute.xlu1 %2584 }
0x1397   :  { %v2587_v38 = vmul.f32 %v4691_v35, %v2585_v36 }
0x1399   :  { %2589 = vrot.lane.b32.xlu0 %v2587_v38, %s5204_s17 }
0x13f1   :  { %v2173_v40 = vpop.permute.xlu0 %2172 }
0x13f2   :  { %v6111_v10 = vadd.f32 %v2173_v40, %v2165_v39 }
0x13f4   :  { %4692 = vtanh.f32 %v6111_v10 }
0x1401   :  { %v4693_v31 = vpop.eup %4692  ;;  %v2381_v24 = vpop.permute.xlu1 %2380 }
0x1402   :  { %v6115_v26 = vadd.f32 %v2381_v24, %v2373_v42  ;;  %2178 = vrot.lane.b32.xlu1 %v4693_v31, %s5217_s18 }
0x1404   :  { %4694 = vtanh.f32 %v6115_v26 }
0x140b   :  { %v2590_v59 = vpop.permute.xlu0 %2589 }
0x140c   :  { %v6120_v43 = vadd.f32 %v2590_v59, %v2582_v29 }
0x140e   :  { %4696 = vtanh.f32 %v6120_v43 }
0x1411   :  { %v4695_v58 = vpop.eup %4694 }
0x1412   :  { %2386 = vrot.lane.b32.xlu0 %v4695_v58, %s5217_s18 }
0x141b   :  { %v4697_v2 = vpop.eup %4696 }
0x141c   :  { %2595 = vrot.lane.b32.xlu1 %v4697_v2, %s5217_s18 }
0x1474   :  { %v2179_v48 = vpop.permute.xlu1 %2178 }
0x1475   :  { %v2181_v45 = vmul.f32 %v4685_v60, %v2179_v48 }
0x1477   :  { %2395 = vrot.lane.b32.xlu1 %v2181_v45, %s5217_s18 }
0x1484   :  { %v2387_v52 = vpop.permute.xlu0 %2386 }
0x1485   :  { %v2389_v23 = vmul.f32 %v4689_v5, %v2387_v52 }
0x1487   :  { %2391 = vrot.lane.b32.xlu0 %v2389_v23, %s5204_s17  ;;  %2603 = vrot.lane.b32.xlu1 %v2389_v23, %s5217_s18 }
0x148e   :  { %v2596_v54 = vpop.permute.xlu1 %2595 }
0x148f   :  { %v2598_v55 = vmul.f32 %v4691_v35, %v2596_v54 }
0x1491   :  { %2600 = vrot.lane.b32.xlu0 %v2598_v55, %s5204_s17 }
0x1495   :  { %2812 = vrot.lane.b32.xlu0 %v2598_v55, %s5218_s9 }
0x14e9   :  { %v2396_v28 = vpop.permute.xlu1 %2395 }
0x14f9   :  { %v2392_v56 = vpop.permute.xlu0 %2391  ;;  %v2604_v46 = vpop.permute.xlu1 %2603 }
0x14fa   :  { %v2398_v57 = vsel %vm418_vm3, %v2392_v56, %v2396_v28 }
0x14fb   :  { %4332 = vmatmul.mubr.msk.f32.vlgmr.msra.gmra.mxu0 %vm726_vm6, %v2398_v57 }
0x14fc   :  { %4348 = vmatpush3.msra.mxu0 %v5897_v50  ;;  %4363 = vmatprep.mubr.msk.f32.mxu0 %vm5216_vm0, %v5215_v0 }
0x14fd   :  { %4349 = vmatprep.subr.mxu0 %v5215_v0 }
0x14fe   :  { %4350 = vmatpush3.msra.mxu0 %v5906_v13 }
0x14ff   :  { %4351 = vmatprep.subr.mxu0 %v5215_v0 }
0x1500   :  { %4352 = vmatpush3.msra.mxu0 %v5913_v15 }
0x1501   :  { %4353 = vmatprep.subr.mxu0 %v5215_v0 }
0x1502   :  { %4354 = vmatpush3.msra.mxu0 %v5920_v16 }
0x1503   :  { %4355 = vmatprep.subr.mxu0 %v5215_v0  ;;  %v2601_v37 = vpop.permute.xlu0 %2600 }
0x1504   :  { %4356 = vmatpush3.msra.mxu0 %v5927_v17  ;;  %v2606_v47 = vsel %vm418_vm3, %v2601_v37, %v2604_v46 }
0x1505   :  { %4357 = vmatprep.subr.mxu0 %v5215_v0 }
0x1506   :  { %4358 = vmatpush3.msra.mxu0 %v5934_v19 }
0x1507   :  { %4359 = vmatprep.subr.mxu0 %v5215_v0  ;;  %v2813_v51 = vpop.permute.xlu0 %2812 }
0x1508   :  { %4360 = vmatpush3.msra.mxu0 %v5941_v53 }
0x1509   :  { %4361 = vmatprep.subr.mxu0 %v5215_v0 }
0x150a   :  { %4362 = vmatpush3.msra.mxu0 %v5949_v61 }
0x150b   :  { %4364 = vmatmul.mubr.msk.f32.vlgmr.msra.gmra.mxu0 %vm726_vm6, %v2606_v47  ;;  %4385 = vmatprep.subr.mxu0 %v5215_v0 }
0x150c   :  { %4386 = vmatpush3.msra.mxu0 %v5954_v63  ;;  %4395 = vmatprep.mubr.msk.f32.mxu0 %vm5216_vm0, %v5215_v0  ;;  %v2815_v63 = vsel %vm330_vm1, %v2811_v49, %v2813_v51 }
0x150d   :  { %4387 = vmatprep.subr.mxu0 %v5215_v0 }
0x150e   :  { %4388 = vmatpush3.msra.mxu0 %v5960_v3 }
0x150f   :  { %4389 = vmatprep.subr.mxu0 %v5215_v0 }
0x1510   :  { %4390 = vmatpush3.msra.mxu0 %v5964_v4 }
0x1511   :  { %4391 = vmatprep.subr.mxu0 %v5215_v0 }
0x1512   :  { %4392 = vmatpush3.msra.mxu0 %v5968_v27 }
0x1513   :  { %4393 = vmatprep.subr.mxu0 %v5215_v0 }
0x1514   :  { %4394 = vmatpush3.msra.mxu0 %v5973_v8 }
0x1515   :  { %4396 = vmatmul.mubr.msk.f32.vlgmr.msra.gmra.mxu0 %vm623_vm4, %v2815_v63  ;;  %4417 = vmatprep.subr.mxu0 %v5215_v0 }
0x1516   :  { %4418 = vmatpush3.msra.mxu0 %v6065_v1  ;;  %4433 = vmatprep.mubr.msk.f32.mxu0 %vm5216_vm0, %v5215_v0 }
0x1517   :  { %4419 = vmatprep.subr.mxu0 %v5215_v0 }
0x1518   :  { %4420 = vmatpush3.msra.mxu0 %v6071_v11 }
0x1519   :  { %4421 = vmatprep.subr.mxu0 %v5215_v0 }
0x151a   :  { %4422 = vmatpush3.msra.mxu0 %v6075_v12 }
0x151b   :  { %4423 = vmatprep.subr.mxu0 %v5215_v0 }
0x151c   :  { %4424 = vmatpush3.msra.mxu0 %v6079_v14 }
0x151d   :  { %4425 = vmatprep.subr.mxu0 %v5215_v0 }
0x151e   :  { %4426 = vmatpush3.msra.mxu0 %v6083_v18 }
0x151f   :  { %4427 = vmatprep.subr.mxu0 %v5215_v0 }
0x1520   :  { %4428 = vmatpush3.msra.mxu0 %v6087_v20 }
0x1521   :  { %4429 = vmatprep.subr.mxu0 %v5215_v0 }
0x1522   :  { %4430 = vmatpush3.msra.mxu0 %v6091_v21 }
0x1523   :  { %4431 = vmatprep.subr.mxu0 %v5215_v0 }
0x1524   :  { %4432 = vmatpush3.msra.mxu0 %v6095_v22 }
0x1525   :  { %4455 = vmatprep.subr.mxu0 %v5215_v0 }
0x15bb   :  { %v2468_v3 = vpop.f32.mrf.mxu0 }
0x15bc   :  { %v2469_v4 = vadd.f32 %v6099_v25, %v2468_v3 }
0x15bd   :  { %v4333_v27 = vpop.f32.mrf.mxu0 }
0x15be   :  { %4698 = vtanh.f32 %v2469_v4  ;;  %v3730_v32 = vmul.f32 -1.442695, %v2469_v4 }
0x15cb   :  { %v4699_v8 = vpop.eup %4698  ;;  %v2676_v1 = vpop.f32.mrf.mxu0 }
0x15cc   :  { %v2677_v11 = vadd.f32 %v5997_v9, %v2676_v1  ;;  %2481 = vrot.lane.b32.xlu1 %v4699_v8, %s5217_s18 }
0x15cd   :  { %v4365_v12 = vpop.f32.mrf.mxu0 }
0x15ce   :  { %4700 = vtanh.f32 %v2677_v11  ;;  %v3734_v60 = vmul.f32 -1.442695, %v2677_v11 }
0x15d5   :  { %v2885_v14 = vpop.f32.mrf.mxu0 }
0x15d6   :  { %v2886_v18 = vadd.f32 %v6001_v30, %v2885_v14 }
0x15d7   :  { %v4397_v20 = vpop.f32.mrf.mxu0 }
0x15d8   :  { %4702 = vtanh.f32 %v2886_v18  ;;  %v3738_v7 = vmul.f32 -1.442695, %v2886_v18 }
0x15d9   :  { %4704 = vpow2.f32 %v3730_v32 }
0x15da   :  { %4706 = vpow2.f32 %v3734_v60 }
0x15db   :  { %v4701_v21 = vpop.eup %4700 }
0x15dc   :  { %2689 = vrot.lane.b32.xlu0 %v4701_v21, %s5217_s18 }
0x15e5   :  { %v4703_v22 = vpop.eup %4702 }
0x15e6   :  { %2898 = vrot.lane.b32.xlu1 %v4703_v22, %s5217_s18  ;;  %v4705_v44 = vpop.eup %4704 }
0x15e7   :  { %v2475_v6 = vadd.f32 1.0, %v4705_v44  ;;  %v4707_v62 = vpop.eup %4706 }
0x15e8   :  { %v2683_v5 = vadd.f32 1.0, %v4707_v62 }
0x15e9   :  { %4708 = vrcp.f32 %v2475_v6 }
0x15ea   :  { %4710 = vpow2.f32 %v3738_v7 }
0x15eb   :  { %4712 = vrcp.f32 %v2683_v5 }
0x15f6   :  { %v4709_v30 = vpop.eup %4708 }
0x15f7   :  { %v4711_v35 = vpop.eup %4710  ;;  %v2479_v29 = vmul.f32 %v4709_v30, %v6111_v10 }
0x15f8   :  { %v2892_v36 = vadd.f32 1.0, %v4711_v35  ;;  %v4713_v38 = vpop.eup %4712 }
0x15f9   :  { %v2687_v2 = vmul.f32 %v4713_v38, %v6115_v26 }
0x15fa   :  { %4714 = vrcp.f32 %v2892_v36 }
0x1607   :  { %v4715_v42 = vpop.eup %4714 }
0x1608   :  { %v2896_v23 = vmul.f32 %v4715_v42, %v6120_v43 }
0x163e   :  { %v2482_v33 = vpop.permute.xlu1 %2481 }
0x163f   :  { %v2484_v34 = vmul.f32 %v4709_v30, %v2482_v33 }
0x1641   :  { %2486 = vrot.lane.b32.xlu0 %v2484_v34, %s5204_s17 }
0x164e   :  { %v2690_v39 = vpop.permute.xlu0 %2689 }
0x164f   :  { %v2692_v40 = vmul.f32 %v4713_v38, %v2690_v39 }
0x1651   :  { %2694 = vrot.lane.b32.xlu1 %v2692_v40, %s5204_s17 }
0x1658   :  { %v2899_v31 = vpop.permute.xlu1 %2898 }
0x1659   :  { %v2901_v24 = vmul.f32 %v4715_v42, %v2899_v31 }
0x165b   :  { %2903 = vrot.lane.b32.xlu0 %v2901_v24, %s5204_s17 }
0x16b3   :  { %v2487_v59 = vpop.permute.xlu0 %2486 }
0x16b4   :  { %v6194_v58 = vadd.f32 %v2487_v59, %v2479_v29 }
0x16b6   :  { %4716 = vtanh.f32 %v6194_v58 }
0x16c3   :  { %v4717_v48 = vpop.eup %4716  ;;  %v2695_v45 = vpop.permute.xlu1 %2694 }
0x16c4   :  { %v6198_v52 = vadd.f32 %v2695_v45, %v2687_v2  ;;  %2492 = vrot.lane.b32.xlu1 %v4717_v48, %s5217_s18 }
0x16c6   :  { %4718 = vtanh.f32 %v6198_v52 }
0x16cd   :  { %v2904_v54 = vpop.permute.xlu0 %2903 }
0x16ce   :  { %v2906_v55 = vadd.f32 %v2904_v54, %v2896_v23 }
0x16d0   :  { %4720 = vtanh.f32 %v2906_v55 }
0x16d3   :  { %v4719_v10 = vpop.eup %4718 }
0x16d4   :  { %2700 = vrot.lane.b32.xlu0 %v4719_v10, %s5217_s18 }
0x16dd   :  { %v4721_v28 = vpop.eup %4720 }
0x16de   :  { %2909 = vrot.lane.b32.xlu1 %v4721_v28, %s5217_s18  ;;  %v3139_v28 = vld [vmem:[%s6382_s14 + $0x30] sm:$0xff] }
0x1736   :  { %v2493_v26 = vpop.permute.xlu1 %2492 }
0x1737   :  { %v2495_v56 = vmul.f32 %v4709_v30, %v2493_v26  ;;  %v3138_v26 = vld [vmem:[%s6382_s14 + $0x28] sm:$0xff] }
0x1739   :  { %2709 = vrot.lane.b32.xlu1 %v2495_v56, %s5217_s18  ;;  %v3137_v56 = vld [vmem:[%s6382_s14 + $0x20] sm:$0xff] }
0x1746   :  { %v2701_v57 = vpop.permute.xlu0 %2700 }
0x1747   :  { %v2703_v37 = vmul.f32 %v4713_v38, %v2701_v57  ;;  %v3136_v57 = vld [vmem:[%s6382_s14 + $0x18] sm:$0xff] }
0x1749   :  { %2705 = vrot.lane.b32.xlu0 %v2703_v37, %s5204_s17  ;;  %2917 = vrot.lane.b32.xlu1 %v2703_v37, %s5217_s18  ;;  %v3135_v37 = vld [vmem:[%s6382_s14 + $0x10] sm:$0xff] }
0x1750   :  { %v2910_v43 = vpop.permute.xlu1 %2909 }
0x1751   :  { %v2912_v46 = vmul.f32 %v4715_v42, %v2910_v43 }
0x1753   :  { %2914 = vrot.lane.b32.xlu0 %v2912_v46, %s5204_s17  ;;  %v3690_v46 = vld [vmem:[#allocation22] ss:$0 sm:$0xff] }
0x17ab   :  { %v2710_v47 = vpop.permute.xlu1 %2709 }
0x17bb   :  { %v2706_v49 = vpop.permute.xlu0 %2705 }
0x17bc   :  { %v2712_v51 = vsel %vm418_vm3, %v2706_v49, %v2710_v47  ;;  %v3134_v47 = vld [vmem:[%s6382_s14 + $0x8] sm:$0xff]  ;;  %v576_v49 = vadd.f32 %v3690_v46, %v5491_v41 }
0x17bd   :  { %4383 = vmatmul.mubr.msk.f32.vlgmr.msra.gmra.mxu1 %vm726_vm6, %v2712_v51  ;;  %v3133_v51 = vld [vmem:[%s6382_s14] sm:$0xff] }
0x17be   :  { %4399 = vmatpush3.msra.mxu1 %v5897_v50  ;;  %4414 = vmatprep.mubr.msk.f32.mxu1 %vm5216_vm0, %v5215_v0 }
0x17bf   :  { %4400 = vmatprep.subr.mxu1 %v5215_v0 }
0x17c0   :  { %4401 = vmatpush3.msra.mxu1 %v5906_v13  ;;  %v2918_v13 = vpop.permute.xlu1 %2917 }
0x17c1   :  { %4402 = vmatprep.subr.mxu1 %v5215_v0 }
0x17c2   :  { %4403 = vmatpush3.msra.mxu1 %v5913_v15 }
0x17c3   :  { %4404 = vmatprep.subr.mxu1 %v5215_v0 }
0x17c4   :  { %4405 = vmatpush3.msra.mxu1 %v5920_v16 }
0x17c5   :  { %4406 = vmatprep.subr.mxu1 %v5215_v0  ;;  %v2915_v50 = vpop.permute.xlu0 %2914 }
0x17c6   :  { %4407 = vmatpush3.msra.mxu1 %v5927_v17  ;;  %v2920_v15 = vsel %vm418_vm3, %v2915_v50, %v2918_v13  ;;  %v3227_v50 = vld [vmem:[#allocation25 + $0x18] sm:$0xff] }
0x17c7   :  { %4408 = vmatprep.subr.mxu1 %v5215_v0 }
0x17c8   :  { %4409 = vmatpush3.msra.mxu1 %v5934_v19 }
0x17c9   :  { %4410 = vmatprep.subr.mxu1 %v5215_v0 }
0x17ca   :  { %4411 = vmatpush3.msra.mxu1 %v5941_v53 }
0x17cb   :  { %4412 = vmatprep.subr.mxu1 %v5215_v0 }
0x17cc   :  { %4413 = vmatpush3.msra.mxu1 %v5949_v61 }
0x17cd   :  { %4415 = vmatmul.mubr.msk.f32.vlgmr.msra.gmra.mxu1 %vm726_vm6, %v2920_v15  ;;  %4436 = vmatprep.subr.mxu1 %v5215_v0 }
0x17ce   :  { %4452 = vmatprep.mubr.msk.f32.mxu1 %vm5216_vm0, %v5215_v0 }
0x187d   :  { %v2782_v16 = vpop.f32.mrf.mxu1 }
0x187e   :  { %v2783_v17 = vadd.f32 %v6099_v25, %v2782_v16 }
0x187f   :  { %v4384_v19 = vpop.f32.mrf.mxu1 }
0x1880   :  { %4722 = vtanh.f32 %v2783_v17  ;;  %v3736_v27 = vmul.f32 -1.442695, %v2783_v17  ;;  %v3226_v19 = vld [vmem:[#allocation25 + $0x10] sm:$0xff] }
0x188d   :  { %v4723_v53 = vpop.eup %4722  ;;  %v2990_v63 = vpop.f32.mrf.mxu1 }
0x188e   :  { %v2991_v3 = vadd.f32 %v5997_v9, %v2990_v63  ;;  %2795 = vrot.lane.b32.xlu0 %v4723_v53, %s5217_s18  ;;  %v3225_v53 = vld [vmem:[#allocation25 + $0x8] sm:$0xff]  ;;  %v3224_v63 = vld [vmem:[#allocation25] sm:$0xff] }
0x188f   :  { %v4416_v4 = vpop.f32.mrf.mxu1 }
0x1890   :  { %4724 = vtanh.f32 %v2991_v3  ;;  %v3740_v8 = vmul.f32 -1.442695, %v2991_v3  ;;  %v3743_v3 = vld [vmem:[#allocation23] ss:$0 sm:$0xff] }
0x1891   :  { %4726 = vpow2.f32 %v3736_v27 }
0x1892   :  { %4728 = vpow2.f32 %v3740_v8 }
0x189d   :  { %v4725_v61 = vpop.eup %4724 }
0x189e   :  { %3003 = vrot.lane.b32.xlu1 %v4725_v61, %s5217_s18  ;;  %v4727_v1 = vpop.eup %4726 }
0x189f   :  { %v2789_v11 = vadd.f32 1.0, %v4727_v1  ;;  %v4729_v12 = vpop.eup %4728  ;;  %v3314_v1 = vld [vmem:[#allocation28 + $0x18] sm:$0xff] }
0x18a0   :  { %v2997_v14 = vadd.f32 1.0, %v4729_v12  ;;  %v3313_v12 = vld [vmem:[#allocation28 + $0x10] sm:$0xff] }
0x18a1   :  { %4730 = vrcp.f32 %v2789_v11 }
0x18a2   :  { %4732 = vrcp.f32 %v2997_v14  ;;  %v3312_v14 = vld [vmem:[#allocation28 + $0x8] sm:$0xff] }
0x18ae   :  { %v4731_v18 = vpop.eup %4730 }
0x18af   :  { %v4733_v9 = vpop.eup %4732  ;;  %v2793_v60 = vmul.f32 %v4731_v18, %v6194_v58 }
0x18b0   :  { %v3001_v7 = vmul.f32 %v4733_v9, %v6198_v52 }
0x1900   :  { %v2796_v20 = vpop.permute.xlu0 %2795 }
0x1901   :  { %v2798_v21 = vmul.f32 %v4731_v18, %v2796_v20  ;;  %v3398_v20 = vld [vmem:[#allocation29 + $0x18] sm:$0xff] }
0x1903   :  { %2800 = vrot.lane.b32.xlu0 %v2798_v21, %s5204_s17  ;;  %v3397_v21 = vld [vmem:[#allocation29 + $0x10] sm:$0xff] }
0x1910   :  { %v3004_v22 = vpop.permute.xlu1 %3003 }
0x1911   :  { %v3006_v32 = vmul.f32 %v4733_v9, %v3004_v22 }
0x1913   :  { %3008 = vrot.lane.b32.xlu1 %v3006_v32, %s5204_s17 }
0x1975   :  { %v2801_v44 = vpop.permute.xlu0 %2800 }
0x1976   :  { %v2803_v6 = vadd.f32 %v2801_v44, %v2793_v60 }
0x1978   :  { %4734 = vtanh.f32 %v2803_v6 }
0x1985   :  { %v4735_v62 = vpop.eup %4734  ;;  %v3009_v5 = vpop.permute.xlu1 %3008 }
0x1986   :  { %v3011_v30 = vadd.f32 %v3009_v5, %v3001_v7  ;;  %2806 = vrot.lane.b32.xlu0 %v4735_v62, %s5217_s18  ;;  %v3396_v7 = vld [vmem:[#allocation29 + $0x8] sm:$0xff]  ;;  %v3395_v62 = vld [vmem:[#allocation29] sm:$0xff] }
0x1987   :  { %v3489_v5 = vld [vmem:[%s6390_s22 + $0x38] sm:$0xff] }
0x1988   :  { %4736 = vtanh.f32 %v3011_v30  ;;  %v3488_v30 = vld [vmem:[%s6390_s22 + $0x30] sm:$0xff] }
0x1995   :  { %v4737_v33 = vpop.eup %4736 }
0x1996   :  { %3014 = vrot.lane.b32.xlu1 %v4737_v33, %s5217_s18  ;;  %v3487_v33 = vld [vmem:[%s6390_s22 + $0x28] sm:$0xff] }
0x19f8   :  { %v2807_v34 = vpop.permute.xlu0 %2806 }
0x19f9   :  { %v2809_v35 = vmul.f32 %v4731_v18, %v2807_v34  ;;  %v3311_v18 = vld [vmem:[#allocation28] sm:$0xff]  ;;  %v3486_v34 = vld [vmem:[%s6390_s22 + $0x20] sm:$0xff] }
0x19fb   :  { %3023 = vrot.lane.b32.xlu1 %v2809_v35, %s5217_s18  ;;  %v3485_v35 = vld [vmem:[%s6390_s22 + $0x18] sm:$0xff] }
0x1a08   :  { %v3015_v36 = vpop.permute.xlu1 %3014 }
0x1a09   :  { %v3017_v38 = vmul.f32 %v4733_v9, %v3015_v36  ;;  %v3745_v9 = vld [vmem:[#allocation26] ss:$0 sm:$0xff]  ;;  %v3747_v36 = vld [vmem:[%s6387_s19] ss:$0 sm:$0xff] }
0x1a0b   :  { %3019 = vrot.lane.b32.xlu0 %v3017_v38, %s5204_s17 }
0x1a6d   :  { %v3024_v39 = vpop.permute.xlu1 %3023 }
0x1a7d   :  { %v3020_v40 = vpop.permute.xlu0 %3019 }
0x1a7e   :  { %v3026_v42 = vsel %vm418_vm3, %v3020_v40, %v3024_v39 }
0x1a7f   :  { %4434 = vmatmul.mubr.msk.f32.vlgmr.msra.gmra.mxu0 %vm726_vm6, %v3026_v42  ;;  %v3484_v42 = vld [vmem:[%s6390_s22 + $0x10] sm:$0xff] }
0x1a80   :  { %4463 = vmatprep.mubr.msk.f32.mxu0 %vm5216_vm0, %v5215_v0  ;;  %4456 = vmatpush3.msra.mxu0 %v3227_v50 }
0x1a81   :  { %4457 = vmatprep.subr.mxu0 %v5215_v0 }
0x1a82   :  { %4458 = vmatpush3.msra.mxu0 %v3226_v19 }
0x1a83   :  { %4459 = vmatprep.subr.mxu0 %v5215_v0 }
0x1a84   :  { %4460 = vmatpush3.msra.mxu0 %v3225_v53 }
0x1a85   :  { %4461 = vmatprep.subr.mxu0 %v5215_v0 }
0x1a86   :  { %4462 = vmatpush3.msra.mxu0 %v3224_v63 }
0x1a87   :  { %4466 = vmatprep.subr.mxu0 %v5215_v0 }
0x1b3f   :  { %v3096_v31 = vpop.f32.mrf.mxu0 }
0x1b40   :  { %v3097_v24 = vadd.f32 %v6099_v25, %v3096_v31  ;;  %v3140_v25 = vld [vmem:[%s6382_s14 + $0x38] sm:$0xff]  ;;  %v3483_v31 = vld [vmem:[%s6390_s22 + $0x8] sm:$0xff] }
0x1b41   :  { %v4435_v29 = vpop.f32.mrf.mxu0  ;;  %4437 = vmatpush3.msra.mxu1 %v3140_v25  ;;  %v3575_v25 = vld [vmem:[#allocation31 + $0x10] sm:$0xff] }
0x1b42   :  { %4738 = vtanh.f32 %v3097_v24  ;;  %v3742_v58 = vmul.f32 -1.442695, %v3097_v24  ;;  %4438 = vmatprep.subr.mxu1 %v5215_v0  ;;  %v3482_v24 = vld [vmem:[%s6390_s22] sm:$0xff]  ;;  %v3580_v29 = vld [vmem:[#allocation31 + $0x38] sm:$0xff] }
0x1b43   :  { %4439 = vmatpush3.msra.mxu1 %v3139_v28  ;;  %v3574_v28 = vld [vmem:[#allocation31 + $0x8] sm:$0xff] }
0x1b44   :  { %4740 = vpow2.f32 %v3742_v58  ;;  %4440 = vmatprep.subr.mxu1 %v5215_v0  ;;  %v3578_v58 = vld [vmem:[#allocation31 + $0x28] sm:$0xff] }
0x1b45   :  { %4441 = vmatpush3.msra.mxu1 %v3138_v26  ;;  %v3573_v26 = vld [vmem:[#allocation31] sm:$0xff] }
0x1b46   :  { %4442 = vmatprep.subr.mxu1 %v5215_v0 }
0x1b47   :  { %4443 = vmatpush3.msra.mxu1 %v3137_v56  ;;  %v3751_v56 = vld [vmem:[%s6391_s23] ss:$0 sm:$0xff]  ;;  %s5150_s23 = scalar_lea.vmem %s3669_s1, 32 }
0x1b48   :  { %4444 = vmatprep.subr.mxu1 %v5215_v0  ;;  %p5151_p11 = scmp.ne.s32.totalorder %s3669_s1, %s5150_s23  ;;  %p5156_p13 = scmp.lt.s32.totalorder %s5150_s23, %s5150_s23 }
0x1b49   :  { %4445 = vmatpush3.msra.mxu1 %v3136_v57 }
0x1b4a   :  { %4446 = vmatprep.subr.mxu1 %v5215_v0  ;;  %p5157_p0 = por %p5156_p13, %p5155_p12 }
0x1b4b   :  { %4447 = vmatpush3.msra.mxu1 %v3135_v37 }
0x1b4c   :  { %4448 = vmatprep.subr.mxu1 %v5215_v0  ;;  %p5158_p1 = pnand %p5157_p0, %p5151_p11 }
0x1b4d   :  { %4449 = vmatpush3.msra.mxu1 %v3134_v47 }
0x1b4e   :  { %4450 = vmatprep.subr.mxu1 %v5215_v0 }
0x1b4f   :  { %v4739_v59 = vpop.eup %4738  ;;  %4451 = vmatpush3.msra.mxu1 %v3133_v51 }
0x1b50   :  { %3109 = vrot.lane.b32.xlu0 %v4739_v59, %s5217_s18  ;;  %4477 = vmatprep.subr.mxu1 %v5215_v0  ;;  %v3579_v59 = vld [vmem:[#allocation31 + $0x30] sm:$0xff] }
0x1b51   :  { %v4741_v2 = vpop.eup %4740 }
0x1b52   :  { %v3103_v48 = vadd.f32 1.0, %v4741_v2  ;;  %v3577_v2 = vld [vmem:[#allocation31 + $0x20] sm:$0xff] }
0x1b54   :  { %4742 = vrcp.f32 %v3103_v48  ;;  %v3576_v48 = vld [vmem:[#allocation31 + $0x18] sm:$0xff] }
0x1b61   :  { %v4743_v45 = vpop.eup %4742 }
0x1b62   :  { %v3107_v54 = vmul.f32 %v4743_v45, %v2803_v6 }
0x1bc2   :  { %v3110_v52 = vpop.permute.xlu0 %3109 }
0x1bc3   :  { %v3112_v23 = vmul.f32 %v4743_v45, %v3110_v52 }
0x1bc5   :  { %3114 = vrot.lane.b32.xlu1 %v3112_v23, %s5204_s17 }
0x1c37   :  { %v3115_v55 = vpop.permute.xlu1 %3114 }
0x1c38   :  { %v3117_v10 = vadd.f32 %v3115_v55, %v3107_v54 }
0x1c3a   :  { %4744 = vtanh.f32 %v3117_v10 }
0x1c47   :  { %v4745_v43 = vpop.eup %4744 }
0x1c48   :  { %3120 = vrot.lane.b32.xlu0 %v4745_v43, %s5217_s18 }
0x1c4c   :  { %3129 = vrot.lane.b32.xlu0 %v576_v49, %s5204_s17  ;;  %v3753_v49 = vld [vmem:[%s6393_s25] ss:$0 sm:$0xff] }
0x1cba   :  { %v3121_v13 = vpop.permute.xlu0 %3120 }
0x1cbb   :  { %v3123_v41 = vmul.f32 %v4743_v45, %v3121_v13  ;;  %v3749_v45 = vld [vmem:[%s6389_s21] ss:$0 sm:$0xff] }
0x1cbd   :  { %3125 = vrot.lane.b32.xlu1 %v3123_v41, %s5204_s17 }
0x1cbe   :  { %v3130_v15 = vpop.permute.xlu0 %3129 }
0x1d2f   :  { %v3126_v16 = vpop.permute.xlu1 %3125 }
0x1d30   :  { %v3132_v17 = vsel %vm418_vm3, %v3126_v16, %v3130_v15 }
0x1d31   :  { %4453 = vmatmul.mubr.msk.f32.vlgmr.msra.gmra.mxu1 %vm726_vm6, %v3132_v17 }
0x1d32   :  { %4485 = vmatprep.mubr.msk.f32.mxu1 %vm5216_vm0, %v5215_v0  ;;  %4478 = vmatpush3.msra.mxu1 %v3398_v20 }
0x1d33   :  { %4479 = vmatprep.subr.mxu1 %v5215_v0 }
0x1d34   :  { %4480 = vmatpush3.msra.mxu1 %v3397_v21 }
0x1d35   :  { %4481 = vmatprep.subr.mxu1 %v5215_v0 }
0x1d36   :  { %4482 = vmatpush3.msra.mxu1 %v3396_v7 }
0x1d37   :  { %4483 = vmatprep.subr.mxu1 %v5215_v0 }
0x1d38   :  { %4484 = vmatpush3.msra.mxu1 %v3395_v62 }
0x1d39   :  { %4507 = vmatprep.subr.mxu1 %v5215_v0 }
0x1df1   :  { %v3217_v4 = vpop.f32.mrf.mxu1 }
0x1df2   :  { %v3218_v61 = vadd.f32 %v3743_v3, %v3217_v4 }
0x1df3   :  { %v4454_v27 = vpop.f32.mrf.mxu1 }
0x1df4   :  { %vm3221_vm7 = vcmp.gt.f32.partialorder %v3218_v61, 0.0  ;;  %v3222_v8 = vmul.f32 0.05, %v3218_v61 }
0x1df6   :  { %v3223_v11 = vsel %vm3221_vm7, %v3218_v61, %v3222_v8 }
0x1df7   :  { %4464 = vmatmul.mubr.msk.f32.vlgmr.msra.gmra.mxu0 %vm418_vm3, %v3223_v11 }
0x1df8   :  { %4467 = vmatpush3.msra.mxu0 %v3314_v1  ;;  %4474 = vmatprep.mubr.msk.f32.mxu0 %vm5216_vm0, %v5215_v0 }
0x1df9   :  { %4468 = vmatprep.subr.mxu0 %v5215_v0 }
0x1dfa   :  { %4469 = vmatpush3.msra.mxu0 %v3313_v12 }
0x1dfb   :  { %4470 = vmatprep.subr.mxu0 %v5215_v0 }
0x1dfc   :  { %4471 = vmatpush3.msra.mxu0 %v3312_v14 }
0x1dfd   :  { %4472 = vmatprep.subr.mxu0 %v5215_v0 }
0x1dfe   :  { %4473 = vmatpush3.msra.mxu0 %v3311_v18 }
0x1dff   :  { %4488 = vmatprep.subr.mxu0 %v5215_v0 }
0x1eb7   :  { %v3304_v22 = vpop.f32.mrf.mxu0 }
0x1eb8   :  { %v3305_v32 = vadd.f32 %v3745_v9, %v3304_v22 }
0x1eb9   :  { %v4465_v60 = vpop.f32.mrf.mxu0 }
0x1eba   :  { %vm3308_vm8 = vcmp.gt.f32.partialorder %v3305_v32, 0.0  ;;  %v3309_v44 = vmul.f32 0.05, %v3305_v32 }
0x1ebc   :  { %v3310_v6 = vsel %vm3308_vm8, %v3305_v32, %v3309_v44 }
0x1ebd   :  { %4475 = vmatmul.mubr.msk.f32.vlgmr.msra.gmra.mxu0 %vm418_vm3, %v3310_v6 }
0x1ebe   :  { %4504 = vmatprep.mubr.msk.f32.mxu0 %vm5216_vm0, %v5215_v0  ;;  %4489 = vmatpush3.msra.mxu0 %v3489_v5 }
0x1ebf   :  { %4490 = vmatprep.subr.mxu0 %v5215_v0 }
0x1ec0   :  { %4491 = vmatpush3.msra.mxu0 %v3488_v30 }
0x1ec1   :  { %4492 = vmatprep.subr.mxu0 %v5215_v0 }
0x1ec2   :  { %4493 = vmatpush3.msra.mxu0 %v3487_v33 }
0x1ec3   :  { %4494 = vmatprep.subr.mxu0 %v5215_v0 }
0x1ec4   :  { %4495 = vmatpush3.msra.mxu0 %v3486_v34 }
0x1ec5   :  { %4496 = vmatprep.subr.mxu0 %v5215_v0 }
0x1ec6   :  { %4497 = vmatpush3.msra.mxu0 %v3485_v35 }
0x1ec7   :  { %4498 = vmatprep.subr.mxu0 %v5215_v0 }
0x1ec8   :  { %4499 = vmatpush3.msra.mxu0 %v3484_v42 }
0x1ec9   :  { %4500 = vmatprep.subr.mxu0 %v5215_v0 }
0x1eca   :  { %4501 = vmatpush3.msra.mxu0 %v3483_v31 }
0x1ecb   :  { %4502 = vmatprep.subr.mxu0 %v5215_v0 }
0x1ecc   :  { %4503 = vmatpush3.msra.mxu0 %v3482_v24 }
0x1f7d   :  { %v3391_v38 = vpop.f32.mrf.mxu0 }
0x1f7e   :  { %v3392_v39 = vadd.f32 %v3747_v36, %v3391_v38 }
0x1f7f   :  { %v4476_v40 = vpop.f32.mrf.mxu0 }
0x1f80   :  { %4486 = vmatmul.mubr.msk.f32.vlgmr.msra.gmra.mxu1 %vm418_vm3, %v3392_v39 }
0x1f81   :  { %4523 = vmatprep.mubr.msk.f32.mxu1 %vm5216_vm0, %v5215_v0  ;;  %4508 = vmatpush3.msra.mxu1 %v3580_v29 }
0x1f82   :  { %4509 = vmatprep.subr.mxu1 %v5215_v0 }
0x1f83   :  { %4510 = vmatpush3.msra.mxu1 %v3579_v59 }
0x1f84   :  { %4511 = vmatprep.subr.mxu1 %v5215_v0 }
0x1f85   :  { %4512 = vmatpush3.msra.mxu1 %v3578_v58 }
0x1f86   :  { %4513 = vmatprep.subr.mxu1 %v5215_v0 }
0x1f87   :  { %4514 = vmatpush3.msra.mxu1 %v3577_v2 }
0x1f88   :  { %4515 = vmatprep.subr.mxu1 %v5215_v0 }
0x1f89   :  { %4516 = vmatpush3.msra.mxu1 %v3576_v48 }
0x1f8a   :  { %4517 = vmatprep.subr.mxu1 %v5215_v0 }
0x1f8b   :  { %4518 = vmatpush3.msra.mxu1 %v3575_v25 }
0x1f8c   :  { %4519 = vmatprep.subr.mxu1 %v5215_v0 }
0x1f8d   :  { %4520 = vmatpush3.msra.mxu1 %v3574_v28 }
0x1f8e   :  { %4521 = vmatprep.subr.mxu1 %v5215_v0 }
0x1f8f   :  { %4522 = vmatpush3.msra.mxu1 %v3573_v26 }
0x2040   :  { %v3475_v52 = vpop.f32.mrf.mxu1 }
0x2041   :  { %v3476_v23 = vadd.f32 %v3749_v45, %v3475_v52 }
0x2042   :  { %v4487_v54 = vpop.f32.mrf.mxu1 }
0x2043   :  { %vm3479_vm9 = vcmp.gt.f32.partialorder %v3476_v23, 0.0  ;;  %v3480_v55 = vmul.f32 0.05, %v3476_v23 }
0x2045   :  { %v3481_v10 = vsel %vm3479_vm9, %v3476_v23, %v3480_v55 }
0x2046   :  { %4505 = vmatmul.mubr.msk.f32.vlgmr.msra.gmra.mxu0 %vm726_vm6, %v3481_v10 }
0x2106   :  { %v3566_v57 = vpop.f32.mrf.mxu0 }
0x2107   :  { %v3567_v37 = vadd.f32 %v3751_v56, %v3566_v57 }
0x2108   :  { %v4506_v43 = vpop.f32.mrf.mxu0 }
0x2109   :  { %vm3570_vm10 = vcmp.gt.f32.partialorder %v3567_v37, 0.0  ;;  %v3571_v46 = vmul.f32 0.05, %v3567_v37 }
0x210b   :  { %v3572_v47 = vsel %vm3570_vm10, %v3567_v37, %v3571_v46 }
0x210c   :  { %4524 = vmatmul.mubr.msk.f32.vlgmr.msra.gmra.mxu1 %vm726_vm6, %v3572_v47 }
0x21cc   :  { %v3657_v0 = vpop.f32.mrf.mxu1 }
0x21cd   :  { %v3658_v51 = vadd.f32 %v3753_v49, %v3657_v0 }
0x21ce   :  { %v4525_v50 = vpop.f32.mrf.mxu1 }
0x21cf   :  { %3661 = vst [vmem:[#allocation32] sm:$0x3] %v3658_v51 }
0x21d0   :  { %5161 = shalt.err (!%p5158_p1)
}
0x21d1   :  { %3671 = dma.vmem_to_hbm [thread:$0]  %s3669_s1, 32, %s6394_s26, [#allocation4]  }
0x21d2   :  { %5190 = dma.done.wait [#allocation4], 32  }
0x21d3   :  { %5191 = vsyncadd [#allocation4], 4294967264 }
0x21d4   :  { %3675 = vsyncpa [#allocation3], 1 }
0x21d5   :  { %3676 = vsyncpa [#allocation6], 1 }
0x21d6   :  { %3677 = vsyncpa [#allocation9], 1 }
0x21d7   :  { %3678 = vsyncpa [#allocation12], 1 }
0x21d8   :  { %3679 = vsyncpa [#allocation15], 1 }
0x21d9   :  { %3680 = vsyncpa [#allocation18], 1 }
0x21da   :  { %3681 = vsyncpa [#allocation21], 1 }
0x21db   :  { %3682 = vsyncpa [#allocation24], 1 }
0x21dc   :  { %3683 = vsyncpa [#allocation27], 1 }
0x21dd   :  { %3684 = vsyncpa [#allocation30], 1 }
0x21de   :  { %3685 = vsyncpa [#allocation4], 1 }

</bundles_post_ra>
